<compile_context>
chip_gen: v7x
topology: tpu7x:2x2x1
jax: 0.10.0
libtpu: 0.0.40
codegen_flags: <defaults>
</compile_context>

<pallas_src>
import functools

import jax
import jax.numpy as jnp
import numpy as np
from jax.experimental import pallas as pl
from jax.experimental.pallas import tpu as pltpu


# ---------------------------------------------------------------------------
# Single fused kernel: conv1 -> pool1 -> conv2 -> pool2 -> fc1 -> fc2 -> fc3
# ---------------------------------------------------------------------------
def _net_kernel(pat1_ref, w1_ref, b1_ref, w2_ref, b2_ref,
                w1t_ref, b1f_ref, w2t_ref, b2f_ref, w3t_ref, b3f_ref,
                o_ref, y1_sc, p1_sc, z_sc, hmt_sc, q_sc, *, nb):
    # ---- conv1 as one lane-dense matmul + bias + ReLU ---------------------
    # pat1 columns: dj*465*nb + hslot*15*nb + pw*nb + n  (dj = pool-w offset,
    # hslot = h parity-grouped [16 evens | 15 odds], pw = pooled w, n = batch).
    y1 = jnp.dot(w1_ref[...], pat1_ref[...], preferred_element_type=jnp.float32)
    y1_sc[...] = jnp.maximum(y1 + b1_ref[...], 0.0)

    # ---- maxpool #1 (3,2): contiguous-slice max tree ----------------------
    blk = 465 * nb            # columns per dj group (31 h-slots * 15 pw * nb)
    even = 240 * nb           # even-h sub-block (16 h-slots)
    p1w = 225 * nb            # pooled width: 15*15*nb, columns (ph, pw, n)
    hstep = 15 * nb
    p1 = None
    for d in range(3):        # max over the 3 w-offsets of the pooling window
        base = d * blk
        hd = jnp.maximum(
            jnp.maximum(y1_sc[:, base:base + p1w],                    # h = 2ph
                        y1_sc[:, base + hstep:base + hstep + p1w]),   # h = 2ph+2
            y1_sc[:, base + even:base + even + p1w])                  # h = 2ph+1
        p1 = hd if p1 is None else jnp.maximum(p1, hd)
    p1_sc[...] = jnp.zeros_like(p1_sc)        # zero tail so shifted reads stay finite
    p1_sc[:, 0:p1w] = p1                      # (8, 450): rows (ci, 2 zero pads)

    # ---- conv2: 25 shifted contiguous-slice accumulating matmuls ----------
    zw = 165 * nb                             # covers cols oh2*15*nb + w*nb + n
    z = None
    for ki in range(5):
        for kj in range(5):
            off = (ki * 15 + kj) * nb
            t = jnp.dot(w2_ref[ki * 5 + kj], p1_sc[:, off:off + zw],
                        preferred_element_type=jnp.float32)
            z = t if z is None else z + t
    za = jnp.maximum(z + b2_ref[...], 0.0)    # (16, 330); w'>10 columns are junk
    z_sc[:, 0:zw] = za

    # ---- maxpool #2 (3,2): two contiguous-slice max trees -----------------
    ww = 163 * nb
    wm = jnp.maximum(jnp.maximum(z_sc[:, 0:ww], z_sc[:, nb:nb + ww]),
                     z_sc[:, 2 * nb:2 * nb + ww])
    z_sc[:, 0:ww] = wm
    hmw = 133 * nb
    hm = jnp.maximum(
        jnp.maximum(z_sc[:, 0:hmw], z_sc[:, 15 * nb:15 * nb + hmw]),
        z_sc[:, 30 * nb:30 * nb + hmw])       # pooled value at col (30ph2+2pw2)*nb + n

    # ---- channels -> lanes: one aligned 2-D transpose ---------------------
    z_sc[...] = jnp.zeros_like(z_sc)
    z_sc[:, 0:hmw] = hm
    hmt_sc[...] = jnp.transpose(z_sc[...])    # (zpad, 16): rows = (pos, n), cols = co

    # ---- gather pooled 5x5 features into q (nb, 400), lanes = (p, co) -----
    for p in range(25):
        ph2, pw2 = divmod(p, 5)
        r = (30 * ph2 + 2 * pw2) * nb
        q_sc[:, p * 16:(p + 1) * 16] = hmt_sc[r:r + nb, :]

    # ---- fc chain, batch on sublanes / features on lanes ------------------
    q = q_sc[...]                                                     # (nb, 400)
    h1 = jnp.maximum(jnp.dot(q, w1t_ref[...],
                             preferred_element_type=jnp.float32) + b1f_ref[...], 0.0)
    h2 = jnp.maximum(jnp.dot(h1, w2t_ref[...],
                             preferred_element_type=jnp.float32) + b2f_ref[...], 0.0)
    o_ref[...] = (jnp.dot(h2, w3t_ref[...], preferred_element_type=jnp.float32)
                  + b3f_ref[...])                                     # (nb, 6)


# ---------------------------------------------------------------------------
# Forward pass (mirrors the PyTorch Net.forward)
# ---------------------------------------------------------------------------
def net_forward(x, p):
    n = x.shape[0]
    xt = jnp.transpose(x, (1, 2, 3, 0))                         # (3, 65, 65, N) f32

    # conv1 im2col (the only XLA-side prep): rows (ci, ki, kj), columns ordered
    # (dj, h-parity-grouped, pw, n) so in-kernel pool-1 is contiguous slices.
    sl = [jax.lax.slice(xt, (0, ki, kj, 0), (3, ki + 61, kj + 61, n), (1, 2, 2, 1))
          for ki in range(5) for kj in range(5)]                 # each (3, 31, 31, N)
    a = jnp.stack(sl, axis=1)                                    # (3, 25, 31, 31, N)
    b = jnp.stack([a[:, :, :, dj:dj + 29:2, :] for dj in range(3)], axis=2)
    c = jnp.concatenate([b[:, :, :, 0::2], b[:, :, :, 1::2]], axis=3)
    pat1 = c.reshape(75, 3 * 31 * 15 * n)                        # (75, 2790)
    m1 = pat1.shape[1]
    m1p = 128 * ((m1 + 127) // 128)                              # lane-aligned 2816
    pat1 = jnp.pad(pat1, ((0, 128 - 75), (0, m1p - m1)))

    # weights in the layouts the kernel consumes (pure host-side prep).
    w1 = jnp.pad(p["conv1_w"].reshape(6, 75), ((0, 2), (0, 53)))          # (8, 128)
    b1 = jnp.pad(p["conv1_b"], (0, 2)).reshape(8, 1)
    w2 = jnp.pad(jnp.transpose(p["conv2_w"], (2, 3, 0, 1)).reshape(25, 16, 6),
                 ((0, 0), (0, 0), (0, 2)))                                # (25,16,8)
    b2 = p["conv2_b"].reshape(16, 1)
    w1t = jnp.transpose(p["fc1_w"].reshape(120, 16, 25),
                        (2, 1, 0)).reshape(400, 120)   # row = p*16 + co (matches q)
    b1f = p["fc1_b"].reshape(1, 120)
    w2t = p["fc2_w"].T                                                    # (120, 84)
    b2f = p["fc2_b"].reshape(1, 84)
    w3t = p["fc3_w"].T                                                    # (84, 6)
    b3f = p["fc3_b"].reshape(1, 6)

    zpad = 128 * ((165 * n + 127) // 128)                                 # 384 for N=2

    return pl.pallas_call(
        functools.partial(_net_kernel, nb=n),
        out_shape=jax.ShapeDtypeStruct((n, 6), jnp.float32),
        scratch_shapes=[pltpu.VMEM((8, m1p), jnp.float32),       # conv1+relu output
                        pltpu.VMEM((8, 229 * n), jnp.float32),   # pool-1 output
                        pltpu.VMEM((16, zpad), jnp.float32),     # conv2 / pool-2 work
                        pltpu.VMEM((zpad, 16), jnp.float32),     # transposed pooled
                        pltpu.VMEM((n, 400), jnp.float32)],      # flattened fc1 input
    )(pat1, w1, b1, w2, b2, w1t, b1f, w2t, b2f, w3t, b3f)
    # TODO(synk): on v7x the single fused call occupies one TensorCore; splitting
    # this ~6 MFLOP net across both cores would cost more in sync than it saves.


# ---------------------------------------------------------------------------
# Parameters (deterministic, PyTorch-default-style uniform init)
# ---------------------------------------------------------------------------
def init_params(key):
    def uniform(k, shape, fan_in):
        bound = float(fan_in) ** -0.5
        return jax.random.uniform(k, shape, jnp.float32, -bound, bound)

    ks = jax.random.split(key, 10)
    return dict(
        conv1_w=uniform(ks[0], (6, 3, 5, 5), 3 * 25),
        conv1_b=uniform(ks[1], (6,), 3 * 25),
        conv2_w=uniform(ks[2], (16, 6, 5, 5), 6 * 25),
        conv2_b=uniform(ks[3], (16,), 6 * 25),
        fc1_w=uniform(ks[4], (120, 400), 400),
        fc1_b=uniform(ks[5], (120,), 400),
        fc2_w=uniform(ks[6], (84, 120), 120),
        fc2_b=uniform(ks[7], (84,), 120),
        fc3_w=uniform(ks[8], (6, 84), 84),
        fc3_b=uniform(ks[9], (6,), 84),
    )


# Pure-JAX reference for the correctness check.
def reference_forward(x, p):
    def conv(x, w, b, stride):
        y = jax.lax.conv_general_dilated(
            x, w, (stride, stride), "VALID",
            dimension_numbers=("NCHW", "OIHW", "NCHW"),
            precision=jax.lax.Precision.HIGHEST)
        return y + b.reshape(1, -1, 1, 1)

    def pool(x):
        return jax.lax.reduce_window(
            x, -jnp.inf, jax.lax.max, (1, 1, 3, 3), (1, 1, 2, 2), "VALID")

    y = pool(jax.nn.relu(conv(x, p["conv1_w"], p["conv1_b"], 2)))
    y = pool(jax.nn.relu(conv(y, p["conv2_w"], p["conv2_b"], 1)))
    y = y.reshape(-1, 16 * 5 * 5)
    y = jax.nn.relu(y @ p["fc1_w"].T + p["fc1_b"])
    y = jax.nn.relu(y @ p["fc2_w"].T + p["fc2_b"])
    return y @ p["fc3_w"].T + p["fc3_b"]


if __name__ == "__main__":
    key = jax.random.PRNGKey(0)
    kx, kp = jax.random.split(key)

    # Smallest input consistent with the module's 16*5*5 flatten: (N, 3, 65, 65).
    x = jax.random.normal(kx, (2, 3, 65, 65), jnp.float32)
    params = init_params(kp)

    out = jax.block_until_ready(jax.jit(net_forward)(x, params))
    assert out.shape == (2, 6), out.shape

    ref = reference_forward(x, params)
    np.testing.assert_allclose(np.asarray(out), np.asarray(ref),
                               rtol=2e-2, atol=2e-2)
    print("KERNEL_OK")
</pallas_src>

<mosaic_0001>
module attributes {stable_mosaic.version = 11 : i64} {
  func.func @_net_kernel(%arg0: memref<128x2816xf32, #tpu.memory_space<vmem>>, %arg1: memref<8x128xf32, #tpu.memory_space<vmem>>, %arg2: memref<8x1xf32, #tpu.memory_space<vmem>>, %arg3: memref<25x16x8xf32, #tpu.memory_space<vmem>>, %arg4: memref<16x1xf32, #tpu.memory_space<vmem>>, %arg5: memref<400x120xf32, #tpu.memory_space<vmem>>, %arg6: memref<1x120xf32, #tpu.memory_space<vmem>>, %arg7: memref<120x84xf32, #tpu.memory_space<vmem>>, %arg8: memref<1x84xf32, #tpu.memory_space<vmem>>, %arg9: memref<84x6xf32, #tpu.memory_space<vmem>>, %arg10: memref<1x6xf32, #tpu.memory_space<vmem>>, %arg11: memref<2x6xf32, #tpu.memory_space<vmem>>, %arg12: memref<8x2816xf32, #tpu.memory_space<vmem>>, %arg13: memref<8x458xf32, #tpu.memory_space<vmem>>, %arg14: memref<16x384xf32, #tpu.memory_space<vmem>>, %arg15: memref<384x16xf32, #tpu.memory_space<vmem>>, %arg16: memref<2x400xf32, #tpu.memory_space<vmem>>) attributes {dimension_semantics = [], scalar_prefetch = 0 : i64, scratch_operands = 5 : i64, tpu.core_type = #tpu.core_type<tc>} {
    %c0 = arith.constant 0 : index
    %c0_0 = arith.constant 0 : index
    %0 = vector.load %arg1[%c0, %c0_0] : memref<8x128xf32, #tpu.memory_space<vmem>>, vector<8x128xf32>
    %c0_1 = arith.constant 0 : index
    %c0_2 = arith.constant 0 : index
    %1 = vector.load %arg0[%c0_1, %c0_2] : memref<128x2816xf32, #tpu.memory_space<vmem>>, vector<128x2816xf32>
    %cst = arith.constant dense<0.000000e+00> : vector<8x2816xf32>
    %2 = tpu.matmul %0, %1, %cst {dimension_numbers = #tpu.dot_dimension_numbers<[1], [0], [0], [1], [0, 0, 1, 1], [], []>} : vector<8x128xf32>, vector<128x2816xf32>, vector<8x2816xf32> -> vector<8x2816xf32>
    %c0_3 = arith.constant 0 : index
    %c0_4 = arith.constant 0 : index
    %3 = vector.load %arg2[%c0_3, %c0_4] : memref<8x1xf32, #tpu.memory_space<vmem>>, vector<8x1xf32>
    %4 = vector.broadcast %3 : vector<8x1xf32> to vector<8x2816xf32>
    %5 = arith.addf %2, %4 : vector<8x2816xf32>
    %cst_5 = arith.constant 0.000000e+00 : f32
    %6 = vector.broadcast %cst_5 : f32 to vector<8x2816xf32>
    %7 = arith.maximumf %5, %6 : vector<8x2816xf32>
    %c0_6 = arith.constant 0 : index
    %c0_7 = arith.constant 0 : index
    %8 = vector.load %arg12[%c0_6, %c0_7] : memref<8x2816xf32, #tpu.memory_space<vmem>>, vector<8x2816xf32>
    tpu.vector_store %arg12[%c0_6, %c0_7], %7 {strides = array<i32>} : memref<8x2816xf32, #tpu.memory_space<vmem>>, vector<8x2816xf32>,
    %c0_8 = arith.constant 0 : index
    %c0_9 = arith.constant 0 : index
    %9 = vector.load %arg12[%c0_8, %c0_9] : memref<8x2816xf32, #tpu.memory_space<vmem>>, vector<8x450xf32>
    %c0_10 = arith.constant 0 : index
    %c30 = arith.constant 30 : index
    %10 = vector.load %arg12[%c0_10, %c30] : memref<8x2816xf32, #tpu.memory_space<vmem>>, vector<8x450xf32>
    %11 = arith.maximumf %9, %10 : vector<8x450xf32>
    %c0_11 = arith.constant 0 : index
    %c480 = arith.constant 480 : index
    %12 = vector.load %arg12[%c0_11, %c480] : memref<8x2816xf32, #tpu.memory_space<vmem>>, vector<8x450xf32>
    %13 = arith.maximumf %11, %12 : vector<8x450xf32>
    %c0_12 = arith.constant 0 : index
    %c930 = arith.constant 930 : index
    %14 = vector.load %arg12[%c0_12, %c930] : memref<8x2816xf32, #tpu.memory_space<vmem>>, vector<8x450xf32>
    %c0_13 = arith.constant 0 : index
    %c960 = arith.constant 960 : index
    %15 = vector.load %arg12[%c0_13, %c960] : memref<8x2816xf32, #tpu.memory_space<vmem>>, vector<8x450xf32>
    %16 = arith.maximumf %14, %15 : vector<8x450xf32>
    %c0_14 = arith.constant 0 : index
    %c1410 = arith.constant 1410 : index
    %17 = vector.load %arg12[%c0_14, %c1410] : memref<8x2816xf32, #tpu.memory_space<vmem>>, vector<8x450xf32>
    %18 = arith.maximumf %16, %17 : vector<8x450xf32>
    %19 = arith.maximumf %13, %18 : vector<8x450xf32>
    %c0_15 = arith.constant 0 : index
    %c1860 = arith.constant 1860 : index
    %20 = vector.load %arg12[%c0_15, %c1860] : memref<8x2816xf32, #tpu.memory_space<vmem>>, vector<8x450xf32>
    %c0_16 = arith.constant 0 : index
    %c1890 = arith.constant 1890 : index
    %21 = vector.load %arg12[%c0_16, %c1890] : memref<8x2816xf32, #tpu.memory_space<vmem>>, vector<8x450xf32>
    %22 = arith.maximumf %20, %21 : vector<8x450xf32>
    %c0_17 = arith.constant 0 : index
    %c2340 = arith.constant 2340 : index
    %23 = vector.load %arg12[%c0_17, %c2340] : memref<8x2816xf32, #tpu.memory_space<vmem>>, vector<8x450xf32>
    %24 = arith.maximumf %22, %23 : vector<8x450xf32>
    %25 = arith.maximumf %19, %24 : vector<8x450xf32>
    %cst_18 = arith.constant 0.000000e+00 : f32
    %26 = vector.broadcast %cst_18 : f32 to vector<8x458xf32>
    %c0_19 = arith.constant 0 : index
    %c0_20 = arith.constant 0 : index
    %27 = vector.load %arg13[%c0_19, %c0_20] : memref<8x458xf32, #tpu.memory_space<vmem>>, vector<8x458xf32>
    tpu.vector_store %arg13[%c0_19, %c0_20], %26 {strides = array<i32>} : memref<8x458xf32, #tpu.memory_space<vmem>>, vector<8x458xf32>,
    %c0_21 = arith.constant 0 : index
    %c0_22 = arith.constant 0 : index
    %28 = vector.load %arg13[%c0_21, %c0_22] : memref<8x458xf32, #tpu.memory_space<vmem>>, vector<8x450xf32>
    tpu.vector_store %arg13[%c0_21, %c0_22], %25 {strides = array<i32>} : memref<8x458xf32, #tpu.memory_space<vmem>>, vector<8x450xf32>,
    %c0_23 = arith.constant 0 : index
    %c0_24 = arith.constant 0 : index
    %c0_25 = arith.constant 0 : index
    %29 = vector.load %arg3[%c0_23, %c0_24, %c0_25] : memref<25x16x8xf32, #tpu.memory_space<vmem>>, vector<1x16x8xf32>
    %30 = vector.shape_cast %29 : vector<1x16x8xf32> to vector<16x8xf32>
    %c0_26 = arith.constant 0 : index
    %c0_27 = arith.constant 0 : index
    %31 = vector.load %arg13[%c0_26, %c0_27] : memref<8x458xf32, #tpu.memory_space<vmem>>, vector<8x330xf32>
    %cst_28 = arith.constant dense<0.000000e+00> : vector<16x330xf32>
    %32 = tpu.matmul %30, %31, %cst_28 {dimension_numbers = #tpu.dot_dimension_numbers<[1], [0], [0], [1], [0, 0, 1, 1], [], []>} : vector<16x8xf32>, vector<8x330xf32>, vector<16x330xf32> -> vector<16x330xf32>
    %c1 = arith.constant 1 : index
    %c0_29 = arith.constant 0 : index
    %c0_30 = arith.constant 0 : index
    %33 = vector.load %arg3[%c1, %c0_29, %c0_30] : memref<25x16x8xf32, #tpu.memory_space<vmem>>, vector<1x16x8xf32>
    %34 = vector.shape_cast %33 : vector<1x16x8xf32> to vector<16x8xf32>
    %c0_31 = arith.constant 0 : index
    %c2 = arith.constant 2 : index
    %35 = vector.load %arg13[%c0_31, %c2] : memref<8x458xf32, #tpu.memory_space<vmem>>, vector<8x330xf32>
    %cst_32 = arith.constant dense<0.000000e+00> : vector<16x330xf32>
    %36 = tpu.matmul %34, %35, %cst_32 {dimension_numbers = #tpu.dot_dimension_numbers<[1], [0], [0], [1], [0, 0, 1, 1], [], []>} : vector<16x8xf32>, vector<8x330xf32>, vector<16x330xf32> -> vector<16x330xf32>
    %37 = arith.addf %32, %36 : vector<16x330xf32>
    %c2_33 = arith.constant 2 : index
    %c0_34 = arith.constant 0 : index
    %c0_35 = arith.constant 0 : index
    %38 = vector.load %arg3[%c2_33, %c0_34, %c0_35] : memref<25x16x8xf32, #tpu.memory_space<vmem>>, vector<1x16x8xf32>
    %39 = vector.shape_cast %38 : vector<1x16x8xf32> to vector<16x8xf32>
    %c0_36 = arith.constant 0 : index
    %c4 = arith.constant 4 : index
    %40 = vector.load %arg13[%c0_36, %c4] : memref<8x458xf32, #tpu.memory_space<vmem>>, vector<8x330xf32>
    %cst_37 = arith.constant dense<0.000000e+00> : vector<16x330xf32>
    %41 = tpu.matmul %39, %40, %cst_37 {dimension_numbers = #tpu.dot_dimension_numbers<[1], [0], [0], [1], [0, 0, 1, 1], [], []>} : vector<16x8xf32>, vector<8x330xf32>, vector<16x330xf32> -> vector<16x330xf32>
    %42 = arith.addf %37, %41 : vector<16x330xf32>
    %c3 = arith.constant 3 : index
    %c0_38 = arith.constant 0 : index
    %c0_39 = arith.constant 0 : index
    %43 = vector.load %arg3[%c3, %c0_38, %c0_39] : memref<25x16x8xf32, #tpu.memory_space<vmem>>, vector<1x16x8xf32>
    %44 = vector.shape_cast %43 : vector<1x16x8xf32> to vector<16x8xf32>
    %c0_40 = arith.constant 0 : index
    %c6 = arith.constant 6 : index
    %45 = vector.load %arg13[%c0_40, %c6] : memref<8x458xf32, #tpu.memory_space<vmem>>, vector<8x330xf32>
    %cst_41 = arith.constant dense<0.000000e+00> : vector<16x330xf32>
    %46 = tpu.matmul %44, %45, %cst_41 {dimension_numbers = #tpu.dot_dimension_numbers<[1], [0], [0], [1], [0, 0, 1, 1], [], []>} : vector<16x8xf32>, vector<8x330xf32>, vector<16x330xf32> -> vector<16x330xf32>
    %47 = arith.addf %42, %46 : vector<16x330xf32>
    %c4_42 = arith.constant 4 : index
    %c0_43 = arith.constant 0 : index
    %c0_44 = arith.constant 0 : index
    %48 = vector.load %arg3[%c4_42, %c0_43, %c0_44] : memref<25x16x8xf32, #tpu.memory_space<vmem>>, vector<1x16x8xf32>
    %49 = vector.shape_cast %48 : vector<1x16x8xf32> to vector<16x8xf32>
    %c0_45 = arith.constant 0 : index
    %c8 = arith.constant 8 : index
    %50 = vector.load %arg13[%c0_45, %c8] : memref<8x458xf32, #tpu.memory_space<vmem>>, vector<8x330xf32>
    %cst_46 = arith.constant dense<0.000000e+00> : vector<16x330xf32>
    %51 = tpu.matmul %49, %50, %cst_46 {dimension_numbers = #tpu.dot_dimension_numbers<[1], [0], [0], [1], [0, 0, 1, 1], [], []>} : vector<16x8xf32>, vector<8x330xf32>, vector<16x330xf32> -> vector<16x330xf32>
    %52 = arith.addf %47, %51 : vector<16x330xf32>
    %c5 = arith.constant 5 : index
    %c0_47 = arith.constant 0 : index
    %c0_48 = arith.constant 0 : index
    %53 = vector.load %arg3[%c5, %c0_47, %c0_48] : memref<25x16x8xf32, #tpu.memory_space<vmem>>, vector<1x16x8xf32>
    %54 = vector.shape_cast %53 : vector<1x16x8xf32> to vector<16x8xf32>
    %c0_49 = arith.constant 0 : index
    %c30_50 = arith.constant 30 : index
    %55 = vector.load %arg13[%c0_49, %c30_50] : memref<8x458xf32, #tpu.memory_space<vmem>>, vector<8x330xf32>
    %cst_51 = arith.constant dense<0.000000e+00> : vector<16x330xf32>
    %56 = tpu.matmul %54, %55, %cst_51 {dimension_numbers = #tpu.dot_dimension_numbers<[1], [0], [0], [1], [0, 0, 1, 1], [], []>} : vector<16x8xf32>, vector<8x330xf32>, vector<16x330xf32> -> vector<16x330xf32>
    %57 = arith.addf %52, %56 : vector<16x330xf32>
    %c6_52 = arith.constant 6 : index
    %c0_53 = arith.constant 0 : index
    %c0_54 = arith.constant 0 : index
    %58 = vector.load %arg3[%c6_52, %c0_53, %c0_54] : memref<25x16x8xf32, #tpu.memory_space<vmem>>, vector<1x16x8xf32>
    %59 = vector.shape_cast %58 : vector<1x16x8xf32> to vector<16x8xf32>
    %c0_55 = arith.constant 0 : index
    %c32 = arith.constant 32 : index
    %60 = vector.load %arg13[%c0_55, %c32] : memref<8x458xf32, #tpu.memory_space<vmem>>, vector<8x330xf32>
    %cst_56 = arith.constant dense<0.000000e+00> : vector<16x330xf32>
    %61 = tpu.matmul %59, %60, %cst_56 {dimension_numbers = #tpu.dot_dimension_numbers<[1], [0], [0], [1], [0, 0, 1, 1], [], []>} : vector<16x8xf32>, vector<8x330xf32>, vector<16x330xf32> -> vector<16x330xf32>
    %62 = arith.addf %57, %61 : vector<16x330xf32>
    %c7 = arith.constant 7 : index
    %c0_57 = arith.constant 0 : index
    %c0_58 = arith.constant 0 : index
    %63 = vector.load %arg3[%c7, %c0_57, %c0_58] : memref<25x16x8xf32, #tpu.memory_space<vmem>>, vector<1x16x8xf32>
    %64 = vector.shape_cast %63 : vector<1x16x8xf32> to vector<16x8xf32>
    %c0_59 = arith.constant 0 : index
    %c34 = arith.constant 34 : index
    %65 = vector.load %arg13[%c0_59, %c34] : memref<8x458xf32, #tpu.memory_space<vmem>>, vector<8x330xf32>
    %cst_60 = arith.constant dense<0.000000e+00> : vector<16x330xf32>
    %66 = tpu.matmul %64, %65, %cst_60 {dimension_numbers = #tpu.dot_dimension_numbers<[1], [0], [0], [1], [0, 0, 1, 1], [], []>} : vector<16x8xf32>, vector<8x330xf32>, vector<16x330xf32> -> vector<16x330xf32>
    %67 = arith.addf %62, %66 : vector<16x330xf32>
    %c8_61 = arith.constant 8 : index
    %c0_62 = arith.constant 0 : index
    %c0_63 = arith.constant 0 : index
    %68 = vector.load %arg3[%c8_61, %c0_62, %c0_63] : memref<25x16x8xf32, #tpu.memory_space<vmem>>, vector<1x16x8xf32>
    %69 = vector.shape_cast %68 : vector<1x16x8xf32> to vector<16x8xf32>
    %c0_64 = arith.constant 0 : index
    %c36 = arith.constant 36 : index
    %70 = vector.load %arg13[%c0_64, %c36] : memref<8x458xf32, #tpu.memory_space<vmem>>, vector<8x330xf32>
    %cst_65 = arith.constant dense<0.000000e+00> : vector<16x330xf32>
    %71 = tpu.matmul %69, %70, %cst_65 {dimension_numbers = #tpu.dot_dimension_numbers<[1], [0], [0], [1], [0, 0, 1, 1], [], []>} : vector<16x8xf32>, vector<8x330xf32>, vector<16x330xf32> -> vector<16x330xf32>
    %72 = arith.addf %67, %71 : vector<16x330xf32>
    %c9 = arith.constant 9 : index
    %c0_66 = arith.constant 0 : index
    %c0_67 = arith.constant 0 : index
    %73 = vector.load %arg3[%c9, %c0_66, %c0_67] : memref<25x16x8xf32, #tpu.memory_space<vmem>>, vector<1x16x8xf32>
    %74 = vector.shape_cast %73 : vector<1x16x8xf32> to vector<16x8xf32>
    %c0_68 = arith.constant 0 : index
    %c38 = arith.constant 38 : index
    %75 = vector.load %arg13[%c0_68, %c38] : memref<8x458xf32, #tpu.memory_space<vmem>>, vector<8x330xf32>
    %cst_69 = arith.constant dense<0.000000e+00> : vector<16x330xf32>
    %76 = tpu.matmul %74, %75, %cst_69 {dimension_numbers = #tpu.dot_dimension_numbers<[1], [0], [0], [1], [0, 0, 1, 1], [], []>} : vector<16x8xf32>, vector<8x330xf32>, vector<16x330xf32> -> vector<16x330xf32>
    %77 = arith.addf %72, %76 : vector<16x330xf32>
    %c10 = arith.constant 10 : index
    %c0_70 = arith.constant 0 : index
    %c0_71 = arith.constant 0 : index
    %78 = vector.load %arg3[%c10, %c0_70, %c0_71] : memref<25x16x8xf32, #tpu.memory_space<vmem>>, vector<1x16x8xf32>
    %79 = vector.shape_cast %78 : vector<1x16x8xf32> to vector<16x8xf32>
    %c0_72 = arith.constant 0 : index
    %c60 = arith.constant 60 : index
    %80 = vector.load %arg13[%c0_72, %c60] : memref<8x458xf32, #tpu.memory_space<vmem>>, vector<8x330xf32>
    %cst_73 = arith.constant dense<0.000000e+00> : vector<16x330xf32>
    %81 = tpu.matmul %79, %80, %cst_73 {dimension_numbers = #tpu.dot_dimension_numbers<[1], [0], [0], [1], [0, 0, 1, 1], [], []>} : vector<16x8xf32>, vector<8x330xf32>, vector<16x330xf32> -> vector<16x330xf32>
    %82 = arith.addf %77, %81 : vector<16x330xf32>
    %c11 = arith.constant 11 : index
    %c0_74 = arith.constant 0 : index
    %c0_75 = arith.constant 0 : index
    %83 = vector.load %arg3[%c11, %c0_74, %c0_75] : memref<25x16x8xf32, #tpu.memory_space<vmem>>, vector<1x16x8xf32>
    %84 = vector.shape_cast %83 : vector<1x16x8xf32> to vector<16x8xf32>
    %c0_76 = arith.constant 0 : index
    %c62 = arith.constant 62 : index
    %85 = vector.load %arg13[%c0_76, %c62] : memref<8x458xf32, #tpu.memory_space<vmem>>, vector<8x330xf32>
    %cst_77 = arith.constant dense<0.000000e+00> : vector<16x330xf32>
    %86 = tpu.matmul %84, %85, %cst_77 {dimension_numbers = #tpu.dot_dimension_numbers<[1], [0], [0], [1], [0, 0, 1, 1], [], []>} : vector<16x8xf32>, vector<8x330xf32>, vector<16x330xf32> -> vector<16x330xf32>
    %87 = arith.addf %82, %86 : vector<16x330xf32>
    %c12 = arith.constant 12 : index
    %c0_78 = arith.constant 0 : index
    %c0_79 = arith.constant 0 : index
    %88 = vector.load %arg3[%c12, %c0_78, %c0_79] : memref<25x16x8xf32, #tpu.memory_space<vmem>>, vector<1x16x8xf32>
    %89 = vector.shape_cast %88 : vector<1x16x8xf32> to vector<16x8xf32>
    %c0_80 = arith.constant 0 : index
    %c64 = arith.constant 64 : index
    %90 = vector.load %arg13[%c0_80, %c64] : memref<8x458xf32, #tpu.memory_space<vmem>>, vector<8x330xf32>
    %cst_81 = arith.constant dense<0.000000e+00> : vector<16x330xf32>
    %91 = tpu.matmul %89, %90, %cst_81 {dimension_numbers = #tpu.dot_dimension_numbers<[1], [0], [0], [1], [0, 0, 1, 1], [], []>} : vector<16x8xf32>, vector<8x330xf32>, vector<16x330xf32> -> vector<16x330xf32>
    %92 = arith.addf %87, %91 : vector<16x330xf32>
    %c13 = arith.constant 13 : index
    %c0_82 = arith.constant 0 : index
    %c0_83 = arith.constant 0 : index
    %93 = vector.load %arg3[%c13, %c0_82, %c0_83] : memref<25x16x8xf32, #tpu.memory_space<vmem>>, vector<1x16x8xf32>
    %94 = vector.shape_cast %93 : vector<1x16x8xf32> to vector<16x8xf32>
    %c0_84 = arith.constant 0 : index
    %c66 = arith.constant 66 : index
    %95 = vector.load %arg13[%c0_84, %c66] : memref<8x458xf32, #tpu.memory_space<vmem>>, vector<8x330xf32>
    %cst_85 = arith.constant dense<0.000000e+00> : vector<16x330xf32>
    %96 = tpu.matmul %94, %95, %cst_85 {dimension_numbers = #tpu.dot_dimension_numbers<[1], [0], [0], [1], [0, 0, 1, 1], [], []>} : vector<16x8xf32>, vector<8x330xf32>, vector<16x330xf32> -> vector<16x330xf32>
    %97 = arith.addf %92, %96 : vector<16x330xf32>
    %c14 = arith.constant 14 : index
    %c0_86 = arith.constant 0 : index
    %c0_87 = arith.constant 0 : index
    %98 = vector.load %arg3[%c14, %c0_86, %c0_87] : memref<25x16x8xf32, #tpu.memory_space<vmem>>, vector<1x16x8xf32>
    %99 = vector.shape_cast %98 : vector<1x16x8xf32> to vector<16x8xf32>
    %c0_88 = arith.constant 0 : index
    %c68 = arith.constant 68 : index
    %100 = vector.load %arg13[%c0_88, %c68] : memref<8x458xf32, #tpu.memory_space<vmem>>, vector<8x330xf32>
    %cst_89 = arith.constant dense<0.000000e+00> : vector<16x330xf32>
    %101 = tpu.matmul %99, %100, %cst_89 {dimension_numbers = #tpu.dot_dimension_numbers<[1], [0], [0], [1], [0, 0, 1, 1], [], []>} : vector<16x8xf32>, vector<8x330xf32>, vector<16x330xf32> -> vector<16x330xf32>
    %102 = arith.addf %97, %101 : vector<16x330xf32>
    %c15 = arith.constant 15 : index
    %c0_90 = arith.constant 0 : index
    %c0_91 = arith.constant 0 : index
    %103 = vector.load %arg3[%c15, %c0_90, %c0_91] : memref<25x16x8xf32, #tpu.memory_space<vmem>>, vector<1x16x8xf32>
    %104 = vector.shape_cast %103 : vector<1x16x8xf32> to vector<16x8xf32>
    %c0_92 = arith.constant 0 : index
    %c90 = arith.constant 90 : index
    %105 = vector.load %arg13[%c0_92, %c90] : memref<8x458xf32, #tpu.memory_space<vmem>>, vector<8x330xf32>
    %cst_93 = arith.constant dense<0.000000e+00> : vector<16x330xf32>
    %106 = tpu.matmul %104, %105, %cst_93 {dimension_numbers = #tpu.dot_dimension_numbers<[1], [0], [0], [1], [0, 0, 1, 1], [], []>} : vector<16x8xf32>, vector<8x330xf32>, vector<16x330xf32> -> vector<16x330xf32>
    %107 = arith.addf %102, %106 : vector<16x330xf32>
    %c16 = arith.constant 16 : index
    %c0_94 = arith.constant 0 : index
    %c0_95 = arith.constant 0 : index
    %108 = vector.load %arg3[%c16, %c0_94, %c0_95] : memref<25x16x8xf32, #tpu.memory_space<vmem>>, vector<1x16x8xf32>
    %109 = vector.shape_cast %108 : vector<1x16x8xf32> to vector<16x8xf32>
    %c0_96 = arith.constant 0 : index
    %c92 = arith.constant 92 : index
    %110 = vector.load %arg13[%c0_96, %c92] : memref<8x458xf32, #tpu.memory_space<vmem>>, vector<8x330xf32>
    %cst_97 = arith.constant dense<0.000000e+00> : vector<16x330xf32>
    %111 = tpu.matmul %109, %110, %cst_97 {dimension_numbers = #tpu.dot_dimension_numbers<[1], [0], [0], [1], [0, 0, 1, 1], [], []>} : vector<16x8xf32>, vector<8x330xf32>, vector<16x330xf32> -> vector<16x330xf32>
    %112 = arith.addf %107, %111 : vector<16x330xf32>
    %c17 = arith.constant 17 : index
    %c0_98 = arith.constant 0 : index
    %c0_99 = arith.constant 0 : index
    %113 = vector.load %arg3[%c17, %c0_98, %c0_99] : memref<25x16x8xf32, #tpu.memory_space<vmem>>, vector<1x16x8xf32>
    %114 = vector.shape_cast %113 : vector<1x16x8xf32> to vector<16x8xf32>
    %c0_100 = arith.constant 0 : index
    %c94 = arith.constant 94 : index
    %115 = vector.load %arg13[%c0_100, %c94] : memref<8x458xf32, #tpu.memory_space<vmem>>, vector<8x330xf32>
    %cst_101 = arith.constant dense<0.000000e+00> : vector<16x330xf32>
    %116 = tpu.matmul %114, %115, %cst_101 {dimension_numbers = #tpu.dot_dimension_numbers<[1], [0], [0], [1], [0, 0, 1, 1], [], []>} : vector<16x8xf32>, vector<8x330xf32>, vector<16x330xf32> -> vector<16x330xf32>
    %117 = arith.addf %112, %116 : vector<16x330xf32>
    %c18 = arith.constant 18 : index
    %c0_102 = arith.constant 0 : index
    %c0_103 = arith.constant 0 : index
    %118 = vector.load %arg3[%c18, %c0_102, %c0_103] : memref<25x16x8xf32, #tpu.memory_space<vmem>>, vector<1x16x8xf32>
    %119 = vector.shape_cast %118 : vector<1x16x8xf32> to vector<16x8xf32>
    %c0_104 = arith.constant 0 : index
    %c96 = arith.constant 96 : index
    %120 = vector.load %arg13[%c0_104, %c96] : memref<8x458xf32, #tpu.memory_space<vmem>>, vector<8x330xf32>
    %cst_105 = arith.constant dense<0.000000e+00> : vector<16x330xf32>
    %121 = tpu.matmul %119, %120, %cst_105 {dimension_numbers = #tpu.dot_dimension_numbers<[1], [0], [0], [1], [0, 0, 1, 1], [], []>} : vector<16x8xf32>, vector<8x330xf32>, vector<16x330xf32> -> vector<16x330xf32>
    %122 = arith.addf %117, %121 : vector<16x330xf32>
    %c19 = arith.constant 19 : index
    %c0_106 = arith.constant 0 : index
    %c0_107 = arith.constant 0 : index
    %123 = vector.load %arg3[%c19, %c0_106, %c0_107] : memref<25x16x8xf32, #tpu.memory_space<vmem>>, vector<1x16x8xf32>
    %124 = vector.shape_cast %123 : vector<1x16x8xf32> to vector<16x8xf32>
    %c0_108 = arith.constant 0 : index
    %c98 = arith.constant 98 : index
    %125 = vector.load %arg13[%c0_108, %c98] : memref<8x458xf32, #tpu.memory_space<vmem>>, vector<8x330xf32>
    %cst_109 = arith.constant dense<0.000000e+00> : vector<16x330xf32>
    %126 = tpu.matmul %124, %125, %cst_109 {dimension_numbers = #tpu.dot_dimension_numbers<[1], [0], [0], [1], [0, 0, 1, 1], [], []>} : vector<16x8xf32>, vector<8x330xf32>, vector<16x330xf32> -> vector<16x330xf32>
    %127 = arith.addf %122, %126 : vector<16x330xf32>
    %c20 = arith.constant 20 : index
    %c0_110 = arith.constant 0 : index
    %c0_111 = arith.constant 0 : index
    %128 = vector.load %arg3[%c20, %c0_110, %c0_111] : memref<25x16x8xf32, #tpu.memory_space<vmem>>, vector<1x16x8xf32>
    %129 = vector.shape_cast %128 : vector<1x16x8xf32> to vector<16x8xf32>
    %c0_112 = arith.constant 0 : index
    %c120 = arith.constant 120 : index
    %130 = vector.load %arg13[%c0_112, %c120] : memref<8x458xf32, #tpu.memory_space<vmem>>, vector<8x330xf32>
    %cst_113 = arith.constant dense<0.000000e+00> : vector<16x330xf32>
    %131 = tpu.matmul %129, %130, %cst_113 {dimension_numbers = #tpu.dot_dimension_numbers<[1], [0], [0], [1], [0, 0, 1, 1], [], []>} : vector<16x8xf32>, vector<8x330xf32>, vector<16x330xf32> -> vector<16x330xf32>
    %132 = arith.addf %127, %131 : vector<16x330xf32>
    %c21 = arith.constant 21 : index
    %c0_114 = arith.constant 0 : index
    %c0_115 = arith.constant 0 : index
    %133 = vector.load %arg3[%c21, %c0_114, %c0_115] : memref<25x16x8xf32, #tpu.memory_space<vmem>>, vector<1x16x8xf32>
    %134 = vector.shape_cast %133 : vector<1x16x8xf32> to vector<16x8xf32>
    %c0_116 = arith.constant 0 : index
    %c122 = arith.constant 122 : index
    %135 = vector.load %arg13[%c0_116, %c122] : memref<8x458xf32, #tpu.memory_space<vmem>>, vector<8x330xf32>
    %cst_117 = arith.constant dense<0.000000e+00> : vector<16x330xf32>
    %136 = tpu.matmul %134, %135, %cst_117 {dimension_numbers = #tpu.dot_dimension_numbers<[1], [0], [0], [1], [0, 0, 1, 1], [], []>} : vector<16x8xf32>, vector<8x330xf32>, vector<16x330xf32> -> vector<16x330xf32>
    %137 = arith.addf %132, %136 : vector<16x330xf32>
    %c22 = arith.constant 22 : index
    %c0_118 = arith.constant 0 : index
    %c0_119 = arith.constant 0 : index
    %138 = vector.load %arg3[%c22, %c0_118, %c0_119] : memref<25x16x8xf32, #tpu.memory_space<vmem>>, vector<1x16x8xf32>
    %139 = vector.shape_cast %138 : vector<1x16x8xf32> to vector<16x8xf32>
    %c0_120 = arith.constant 0 : index
    %c124 = arith.constant 124 : index
    %140 = vector.load %arg13[%c0_120, %c124] : memref<8x458xf32, #tpu.memory_space<vmem>>, vector<8x330xf32>
    %cst_121 = arith.constant dense<0.000000e+00> : vector<16x330xf32>
    %141 = tpu.matmul %139, %140, %cst_121 {dimension_numbers = #tpu.dot_dimension_numbers<[1], [0], [0], [1], [0, 0, 1, 1], [], []>} : vector<16x8xf32>, vector<8x330xf32>, vector<16x330xf32> -> vector<16x330xf32>
    %142 = arith.addf %137, %141 : vector<16x330xf32>
    %c23 = arith.constant 23 : index
    %c0_122 = arith.constant 0 : index
    %c0_123 = arith.constant 0 : index
    %143 = vector.load %arg3[%c23, %c0_122, %c0_123] : memref<25x16x8xf32, #tpu.memory_space<vmem>>, vector<1x16x8xf32>
    %144 = vector.shape_cast %143 : vector<1x16x8xf32> to vector<16x8xf32>
    %c0_124 = arith.constant 0 : index
    %c126 = arith.constant 126 : index
    %145 = vector.load %arg13[%c0_124, %c126] : memref<8x458xf32, #tpu.memory_space<vmem>>, vector<8x330xf32>
    %cst_125 = arith.constant dense<0.000000e+00> : vector<16x330xf32>
    %146 = tpu.matmul %144, %145, %cst_125 {dimension_numbers = #tpu.dot_dimension_numbers<[1], [0], [0], [1], [0, 0, 1, 1], [], []>} : vector<16x8xf32>, vector<8x330xf32>, vector<16x330xf32> -> vector<16x330xf32>
    %147 = arith.addf %142, %146 : vector<16x330xf32>
    %c24 = arith.constant 24 : index
    %c0_126 = arith.constant 0 : index
    %c0_127 = arith.constant 0 : index
    %148 = vector.load %arg3[%c24, %c0_126, %c0_127] : memref<25x16x8xf32, #tpu.memory_space<vmem>>, vector<1x16x8xf32>
    %149 = vector.shape_cast %148 : vector<1x16x8xf32> to vector<16x8xf32>
    %c0_128 = arith.constant 0 : index
    %c128 = arith.constant 128 : index
    %150 = vector.load %arg13[%c0_128, %c128] : memref<8x458xf32, #tpu.memory_space<vmem>>, vector<8x330xf32>
    %cst_129 = arith.constant dense<0.000000e+00> : vector<16x330xf32>
    %151 = tpu.matmul %149, %150, %cst_129 {dimension_numbers = #tpu.dot_dimension_numbers<[1], [0], [0], [1], [0, 0, 1, 1], [], []>} : vector<16x8xf32>, vector<8x330xf32>, vector<16x330xf32> -> vector<16x330xf32>
    %152 = arith.addf %147, %151 : vector<16x330xf32>
    %c0_130 = arith.constant 0 : index
    %c0_131 = arith.constant 0 : index
    %153 = vector.load %arg4[%c0_130, %c0_131] : memref<16x1xf32, #tpu.memory_space<vmem>>, vector<16x1xf32>
    %154 = vector.broadcast %153 : vector<16x1xf32> to vector<16x330xf32>
    %155 = arith.addf %152, %154 : vector<16x330xf32>
    %cst_132 = arith.constant 0.000000e+00 : f32
    %156 = vector.broadcast %cst_132 : f32 to vector<16x330xf32>
    %157 = arith.maximumf %155, %156 : vector<16x330xf32>
    %c0_133 = arith.constant 0 : index
    %c0_134 = arith.constant 0 : index
    %158 = vector.load %arg14[%c0_133, %c0_134] : memref<16x384xf32, #tpu.memory_space<vmem>>, vector<16x330xf32>
    tpu.vector_store %arg14[%c0_133, %c0_134], %157 {strides = array<i32>} : memref<16x384xf32, #tpu.memory_space<vmem>>, vector<16x330xf32>,
    %c0_135 = arith.constant 0 : index
    %c0_136 = arith.constant 0 : index
    %159 = vector.load %arg14[%c0_135, %c0_136] : memref<16x384xf32, #tpu.memory_space<vmem>>, vector<16x326xf32>
    %c0_137 = arith.constant 0 : index
    %c2_138 = arith.constant 2 : index
    %160 = vector.load %arg14[%c0_137, %c2_138] : memref<16x384xf32, #tpu.memory_space<vmem>>, vector<16x326xf32>
    %161 = arith.maximumf %159, %160 : vector<16x326xf32>
    %c0_139 = arith.constant 0 : index
    %c4_140 = arith.constant 4 : index
    %162 = vector.load %arg14[%c0_139, %c4_140] : memref<16x384xf32, #tpu.memory_space<vmem>>, vector<16x326xf32>
    %163 = arith.maximumf %161, %162 : vector<16x326xf32>
    %c0_141 = arith.constant 0 : index
    %c0_142 = arith.constant 0 : index
    %164 = vector.load %arg14[%c0_141, %c0_142] : memref<16x384xf32, #tpu.memory_space<vmem>>, vector<16x326xf32>
    tpu.vector_store %arg14[%c0_141, %c0_142], %163 {strides = array<i32>} : memref<16x384xf32, #tpu.memory_space<vmem>>, vector<16x326xf32>,
    %c0_143 = arith.constant 0 : index
    %c0_144 = arith.constant 0 : index
    %165 = vector.load %arg14[%c0_143, %c0_144] : memref<16x384xf32, #tpu.memory_space<vmem>>, vector<16x266xf32>
    %c0_145 = arith.constant 0 : index
    %c30_146 = arith.constant 30 : index
    %166 = vector.load %arg14[%c0_145, %c30_146] : memref<16x384xf32, #tpu.memory_space<vmem>>, vector<16x266xf32>
    %167 = arith.maximumf %165, %166 : vector<16x266xf32>
    %c0_147 = arith.constant 0 : index
    %c60_148 = arith.constant 60 : index
    %168 = vector.load %arg14[%c0_147, %c60_148] : memref<16x384xf32, #tpu.memory_space<vmem>>, vector<16x266xf32>
    %169 = arith.maximumf %167, %168 : vector<16x266xf32>
    %cst_149 = arith.constant 0.000000e+00 : f32
    %170 = vector.broadcast %cst_149 : f32 to vector<16x384xf32>
    %c0_150 = arith.constant 0 : index
    %c0_151 = arith.constant 0 : index
    %171 = vector.load %arg14[%c0_150, %c0_151] : memref<16x384xf32, #tpu.memory_space<vmem>>, vector<16x384xf32>
    tpu.vector_store %arg14[%c0_150, %c0_151], %170 {strides = array<i32>} : memref<16x384xf32, #tpu.memory_space<vmem>>, vector<16x384xf32>,
    %c0_152 = arith.constant 0 : index
    %c0_153 = arith.constant 0 : index
    %172 = vector.load %arg14[%c0_152, %c0_153] : memref<16x384xf32, #tpu.memory_space<vmem>>, vector<16x266xf32>
    tpu.vector_store %arg14[%c0_152, %c0_153], %169 {strides = array<i32>} : memref<16x384xf32, #tpu.memory_space<vmem>>, vector<16x266xf32>,
    %c0_154 = arith.constant 0 : index
    %c0_155 = arith.constant 0 : index
    %173 = vector.load %arg14[%c0_154, %c0_155] : memref<16x384xf32, #tpu.memory_space<vmem>>, vector<16x384xf32>
    %174 = tpu.transpose %173, [1, 0] : vector<16x384xf32> -> vector<384x16xf32>
    %c0_156 = arith.constant 0 : index
    %c0_157 = arith.constant 0 : index
    %175 = vector.load %arg15[%c0_156, %c0_157] : memref<384x16xf32, #tpu.memory_space<vmem>>, vector<384x16xf32>
    tpu.vector_store %arg15[%c0_156, %c0_157], %174 {strides = array<i32>} : memref<384x16xf32, #tpu.memory_space<vmem>>, vector<384x16xf32>,
    %c0_158 = arith.constant 0 : index
    %c0_159 = arith.constant 0 : index
    %176 = vector.load %arg15[%c0_158, %c0_159] : memref<384x16xf32, #tpu.memory_space<vmem>>, vector<2x16xf32>
    %c0_160 = arith.constant 0 : index
    %c0_161 = arith.constant 0 : index
    %177 = vector.load %arg16[%c0_160, %c0_161] : memref<2x400xf32, #tpu.memory_space<vmem>>, vector<2x16xf32>
    tpu.vector_store %arg16[%c0_160, %c0_161], %176 {strides = array<i32>} : memref<2x400xf32, #tpu.memory_space<vmem>>, vector<2x16xf32>,
    %c4_162 = arith.constant 4 : index
    %c0_163 = arith.constant 0 : index
    %178 = vector.load %arg15[%c4_162, %c0_163] : memref<384x16xf32, #tpu.memory_space<vmem>>, vector<2x16xf32>
    %c0_164 = arith.constant 0 : index
    %c16_165 = arith.constant 16 : index
    %179 = vector.load %arg16[%c0_164, %c16_165] : memref<2x400xf32, #tpu.memory_space<vmem>>, vector<2x16xf32>
    tpu.vector_store %arg16[%c0_164, %c16_165], %178 {strides = array<i32>} : memref<2x400xf32, #tpu.memory_space<vmem>>, vector<2x16xf32>,
    %c8_166 = arith.constant 8 : index
    %c0_167 = arith.constant 0 : index
    %180 = vector.load %arg15[%c8_166, %c0_167] : memref<384x16xf32, #tpu.memory_space<vmem>>, vector<2x16xf32>
    %c0_168 = arith.constant 0 : index
    %c32_169 = arith.constant 32 : index
    %181 = vector.load %arg16[%c0_168, %c32_169] : memref<2x400xf32, #tpu.memory_space<vmem>>, vector<2x16xf32>
    tpu.vector_store %arg16[%c0_168, %c32_169], %180 {strides = array<i32>} : memref<2x400xf32, #tpu.memory_space<vmem>>, vector<2x16xf32>,
    %c12_170 = arith.constant 12 : index
    %c0_171 = arith.constant 0 : index
    %182 = vector.load %arg15[%c12_170, %c0_171] : memref<384x16xf32, #tpu.memory_space<vmem>>, vector<2x16xf32>
    %c0_172 = arith.constant 0 : index
    %c48 = arith.constant 48 : index
    %183 = vector.load %arg16[%c0_172, %c48] : memref<2x400xf32, #tpu.memory_space<vmem>>, vector<2x16xf32>
    tpu.vector_store %arg16[%c0_172, %c48], %182 {strides = array<i32>} : memref<2x400xf32, #tpu.memory_space<vmem>>, vector<2x16xf32>,
    %c16_173 = arith.constant 16 : index
    %c0_174 = arith.constant 0 : index
    %184 = vector.load %arg15[%c16_173, %c0_174] : memref<384x16xf32, #tpu.memory_space<vmem>>, vector<2x16xf32>
    %c0_175 = arith.constant 0 : index
    %c64_176 = arith.constant 64 : index
    %185 = vector.load %arg16[%c0_175, %c64_176] : memref<2x400xf32, #tpu.memory_space<vmem>>, vector<2x16xf32>
    tpu.vector_store %arg16[%c0_175, %c64_176], %184 {strides = array<i32>} : memref<2x400xf32, #tpu.memory_space<vmem>>, vector<2x16xf32>,
    %c60_177 = arith.constant 60 : index
    %c0_178 = arith.constant 0 : index
    %186 = vector.load %arg15[%c60_177, %c0_178] : memref<384x16xf32, #tpu.memory_space<vmem>>, vector<2x16xf32>
    %c0_179 = arith.constant 0 : index
    %c80 = arith.constant 80 : index
    %187 = vector.load %arg16[%c0_179, %c80] : memref<2x400xf32, #tpu.memory_space<vmem>>, vector<2x16xf32>
    tpu.vector_store %arg16[%c0_179, %c80], %186 {strides = array<i32>} : memref<2x400xf32, #tpu.memory_space<vmem>>, vector<2x16xf32>,
    %c64_180 = arith.constant 64 : index
    %c0_181 = arith.constant 0 : index
    %188 = vector.load %arg15[%c64_180, %c0_181] : memref<384x16xf32, #tpu.memory_space<vmem>>, vector<2x16xf32>
    %c0_182 = arith.constant 0 : index
    %c96_183 = arith.constant 96 : index
    %189 = vector.load %arg16[%c0_182, %c96_183] : memref<2x400xf32, #tpu.memory_space<vmem>>, vector<2x16xf32>
    tpu.vector_store %arg16[%c0_182, %c96_183], %188 {strides = array<i32>} : memref<2x400xf32, #tpu.memory_space<vmem>>, vector<2x16xf32>,
    %c68_184 = arith.constant 68 : index
    %c0_185 = arith.constant 0 : index
    %190 = vector.load %arg15[%c68_184, %c0_185] : memref<384x16xf32, #tpu.memory_space<vmem>>, vector<2x16xf32>
    %c0_186 = arith.constant 0 : index
    %c112 = arith.constant 112 : index
    %191 = vector.load %arg16[%c0_186, %c112] : memref<2x400xf32, #tpu.memory_space<vmem>>, vector<2x16xf32>
    tpu.vector_store %arg16[%c0_186, %c112], %190 {strides = array<i32>} : memref<2x400xf32, #tpu.memory_space<vmem>>, vector<2x16xf32>,
    %c72 = arith.constant 72 : index
    %c0_187 = arith.constant 0 : index
    %192 = vector.load %arg15[%c72, %c0_187] : memref<384x16xf32, #tpu.memory_space<vmem>>, vector<2x16xf32>
    %c0_188 = arith.constant 0 : index
    %c128_189 = arith.constant 128 : index
    %193 = vector.load %arg16[%c0_188, %c128_189] : memref<2x400xf32, #tpu.memory_space<vmem>>, vector<2x16xf32>
    tpu.vector_store %arg16[%c0_188, %c128_189], %192 {strides = array<i32>} : memref<2x400xf32, #tpu.memory_space<vmem>>, vector<2x16xf32>,
    %c76 = arith.constant 76 : index
    %c0_190 = arith.constant 0 : index
    %194 = vector.load %arg15[%c76, %c0_190] : memref<384x16xf32, #tpu.memory_space<vmem>>, vector<2x16xf32>
    %c0_191 = arith.constant 0 : index
    %c144 = arith.constant 144 : index
    %195 = vector.load %arg16[%c0_191, %c144] : memref<2x400xf32, #tpu.memory_space<vmem>>, vector<2x16xf32>
    tpu.vector_store %arg16[%c0_191, %c144], %194 {strides = array<i32>} : memref<2x400xf32, #tpu.memory_space<vmem>>, vector<2x16xf32>,
    %c120_192 = arith.constant 120 : index
    %c0_193 = arith.constant 0 : index
    %196 = vector.load %arg15[%c120_192, %c0_193] : memref<384x16xf32, #tpu.memory_space<vmem>>, vector<2x16xf32>
    %c0_194 = arith.constant 0 : index
    %c160 = arith.constant 160 : index
    %197 = vector.load %arg16[%c0_194, %c160] : memref<2x400xf32, #tpu.memory_space<vmem>>, vector<2x16xf32>
    tpu.vector_store %arg16[%c0_194, %c160], %196 {strides = array<i32>} : memref<2x400xf32, #tpu.memory_space<vmem>>, vector<2x16xf32>,
    %c124_195 = arith.constant 124 : index
    %c0_196 = arith.constant 0 : index
    %198 = vector.load %arg15[%c124_195, %c0_196] : memref<384x16xf32, #tpu.memory_space<vmem>>, vector<2x16xf32>
    %c0_197 = arith.constant 0 : index
    %c176 = arith.constant 176 : index
    %199 = vector.load %arg16[%c0_197, %c176] : memref<2x400xf32, #tpu.memory_space<vmem>>, vector<2x16xf32>
    tpu.vector_store %arg16[%c0_197, %c176], %198 {strides = array<i32>} : memref<2x400xf32, #tpu.memory_space<vmem>>, vector<2x16xf32>,
    %c128_198 = arith.constant 128 : index
    %c0_199 = arith.constant 0 : index
    %200 = vector.load %arg15[%c128_198, %c0_199] : memref<384x16xf32, #tpu.memory_space<vmem>>, vector<2x16xf32>
    %c0_200 = arith.constant 0 : index
    %c192 = arith.constant 192 : index
    %201 = vector.load %arg16[%c0_200, %c192] : memref<2x400xf32, #tpu.memory_space<vmem>>, vector<2x16xf32>
    tpu.vector_store %arg16[%c0_200, %c192], %200 {strides = array<i32>} : memref<2x400xf32, #tpu.memory_space<vmem>>, vector<2x16xf32>,
    %c132 = arith.constant 132 : index
    %c0_201 = arith.constant 0 : index
    %202 = vector.load %arg15[%c132, %c0_201] : memref<384x16xf32, #tpu.memory_space<vmem>>, vector<2x16xf32>
    %c0_202 = arith.constant 0 : index
    %c208 = arith.constant 208 : index
    %203 = vector.load %arg16[%c0_202, %c208] : memref<2x400xf32, #tpu.memory_space<vmem>>, vector<2x16xf32>
    tpu.vector_store %arg16[%c0_202, %c208], %202 {strides = array<i32>} : memref<2x400xf32, #tpu.memory_space<vmem>>, vector<2x16xf32>,
    %c136 = arith.constant 136 : index
    %c0_203 = arith.constant 0 : index
    %204 = vector.load %arg15[%c136, %c0_203] : memref<384x16xf32, #tpu.memory_space<vmem>>, vector<2x16xf32>
    %c0_204 = arith.constant 0 : index
    %c224 = arith.constant 224 : index
    %205 = vector.load %arg16[%c0_204, %c224] : memref<2x400xf32, #tpu.memory_space<vmem>>, vector<2x16xf32>
    tpu.vector_store %arg16[%c0_204, %c224], %204 {strides = array<i32>} : memref<2x400xf32, #tpu.memory_space<vmem>>, vector<2x16xf32>,
    %c180 = arith.constant 180 : index
    %c0_205 = arith.constant 0 : index
    %206 = vector.load %arg15[%c180, %c0_205] : memref<384x16xf32, #tpu.memory_space<vmem>>, vector<2x16xf32>
    %c0_206 = arith.constant 0 : index
    %c240 = arith.constant 240 : index
    %207 = vector.load %arg16[%c0_206, %c240] : memref<2x400xf32, #tpu.memory_space<vmem>>, vector<2x16xf32>
    tpu.vector_store %arg16[%c0_206, %c240], %206 {strides = array<i32>} : memref<2x400xf32, #tpu.memory_space<vmem>>, vector<2x16xf32>,
    %c184 = arith.constant 184 : index
    %c0_207 = arith.constant 0 : index
    %208 = vector.load %arg15[%c184, %c0_207] : memref<384x16xf32, #tpu.memory_space<vmem>>, vector<2x16xf32>
    %c0_208 = arith.constant 0 : index
    %c256 = arith.constant 256 : index
    %209 = vector.load %arg16[%c0_208, %c256] : memref<2x400xf32, #tpu.memory_space<vmem>>, vector<2x16xf32>
    tpu.vector_store %arg16[%c0_208, %c256], %208 {strides = array<i32>} : memref<2x400xf32, #tpu.memory_space<vmem>>, vector<2x16xf32>,
    %c188 = arith.constant 188 : index
    %c0_209 = arith.constant 0 : index
    %210 = vector.load %arg15[%c188, %c0_209] : memref<384x16xf32, #tpu.memory_space<vmem>>, vector<2x16xf32>
    %c0_210 = arith.constant 0 : index
    %c272 = arith.constant 272 : index
    %211 = vector.load %arg16[%c0_210, %c272] : memref<2x400xf32, #tpu.memory_space<vmem>>, vector<2x16xf32>
    tpu.vector_store %arg16[%c0_210, %c272], %210 {strides = array<i32>} : memref<2x400xf32, #tpu.memory_space<vmem>>, vector<2x16xf32>,
    %c192_211 = arith.constant 192 : index
    %c0_212 = arith.constant 0 : index
    %212 = vector.load %arg15[%c192_211, %c0_212] : memref<384x16xf32, #tpu.memory_space<vmem>>, vector<2x16xf32>
    %c0_213 = arith.constant 0 : index
    %c288 = arith.constant 288 : index
    %213 = vector.load %arg16[%c0_213, %c288] : memref<2x400xf32, #tpu.memory_space<vmem>>, vector<2x16xf32>
    tpu.vector_store %arg16[%c0_213, %c288], %212 {strides = array<i32>} : memref<2x400xf32, #tpu.memory_space<vmem>>, vector<2x16xf32>,
    %c196 = arith.constant 196 : index
    %c0_214 = arith.constant 0 : index
    %214 = vector.load %arg15[%c196, %c0_214] : memref<384x16xf32, #tpu.memory_space<vmem>>, vector<2x16xf32>
    %c0_215 = arith.constant 0 : index
    %c304 = arith.constant 304 : index
    %215 = vector.load %arg16[%c0_215, %c304] : memref<2x400xf32, #tpu.memory_space<vmem>>, vector<2x16xf32>
    tpu.vector_store %arg16[%c0_215, %c304], %214 {strides = array<i32>} : memref<2x400xf32, #tpu.memory_space<vmem>>, vector<2x16xf32>,
    %c240_216 = arith.constant 240 : index
    %c0_217 = arith.constant 0 : index
    %216 = vector.load %arg15[%c240_216, %c0_217] : memref<384x16xf32, #tpu.memory_space<vmem>>, vector<2x16xf32>
    %c0_218 = arith.constant 0 : index
    %c320 = arith.constant 320 : index
    %217 = vector.load %arg16[%c0_218, %c320] : memref<2x400xf32, #tpu.memory_space<vmem>>, vector<2x16xf32>
    tpu.vector_store %arg16[%c0_218, %c320], %216 {strides = array<i32>} : memref<2x400xf32, #tpu.memory_space<vmem>>, vector<2x16xf32>,
    %c244 = arith.constant 244 : index
    %c0_219 = arith.constant 0 : index
    %218 = vector.load %arg15[%c244, %c0_219] : memref<384x16xf32, #tpu.memory_space<vmem>>, vector<2x16xf32>
    %c0_220 = arith.constant 0 : index
    %c336 = arith.constant 336 : index
    %219 = vector.load %arg16[%c0_220, %c336] : memref<2x400xf32, #tpu.memory_space<vmem>>, vector<2x16xf32>
    tpu.vector_store %arg16[%c0_220, %c336], %218 {strides = array<i32>} : memref<2x400xf32, #tpu.memory_space<vmem>>, vector<2x16xf32>,
    %c248 = arith.constant 248 : index
    %c0_221 = arith.constant 0 : index
    %220 = vector.load %arg15[%c248, %c0_221] : memref<384x16xf32, #tpu.memory_space<vmem>>, vector<2x16xf32>
    %c0_222 = arith.constant 0 : index
    %c352 = arith.constant 352 : index
    %221 = vector.load %arg16[%c0_222, %c352] : memref<2x400xf32, #tpu.memory_space<vmem>>, vector<2x16xf32>
    tpu.vector_store %arg16[%c0_222, %c352], %220 {strides = array<i32>} : memref<2x400xf32, #tpu.memory_space<vmem>>, vector<2x16xf32>,
    %c252 = arith.constant 252 : index
    %c0_223 = arith.constant 0 : index
    %222 = vector.load %arg15[%c252, %c0_223] : memref<384x16xf32, #tpu.memory_space<vmem>>, vector<2x16xf32>
    %c0_224 = arith.constant 0 : index
    %c368 = arith.constant 368 : index
    %223 = vector.load %arg16[%c0_224, %c368] : memref<2x400xf32, #tpu.memory_space<vmem>>, vector<2x16xf32>
    tpu.vector_store %arg16[%c0_224, %c368], %222 {strides = array<i32>} : memref<2x400xf32, #tpu.memory_space<vmem>>, vector<2x16xf32>,
    %c256_225 = arith.constant 256 : index
    %c0_226 = arith.constant 0 : index
    %224 = vector.load %arg15[%c256_225, %c0_226] : memref<384x16xf32, #tpu.memory_space<vmem>>, vector<2x16xf32>
    %c0_227 = arith.constant 0 : index
    %c384 = arith.constant 384 : index
    %225 = vector.load %arg16[%c0_227, %c384] : memref<2x400xf32, #tpu.memory_space<vmem>>, vector<2x16xf32>
    tpu.vector_store %arg16[%c0_227, %c384], %224 {strides = array<i32>} : memref<2x400xf32, #tpu.memory_space<vmem>>, vector<2x16xf32>,
    %c0_228 = arith.constant 0 : index
    %c0_229 = arith.constant 0 : index
    %226 = vector.load %arg16[%c0_228, %c0_229] : memref<2x400xf32, #tpu.memory_space<vmem>>, vector<2x400xf32>
    %c0_230 = arith.constant 0 : index
    %c0_231 = arith.constant 0 : index
    %227 = vector.load %arg5[%c0_230, %c0_231] : memref<400x120xf32, #tpu.memory_space<vmem>>, vector<400x120xf32>
    %cst_232 = arith.constant dense<0.000000e+00> : vector<2x120xf32>
    %228 = tpu.matmul %226, %227, %cst_232 {dimension_numbers = #tpu.dot_dimension_numbers<[1], [0], [0], [1], [0, 0, 1, 1], [], []>} : vector<2x400xf32>, vector<400x120xf32>, vector<2x120xf32> -> vector<2x120xf32>
    %c0_233 = arith.constant 0 : index
    %c0_234 = arith.constant 0 : index
    %229 = vector.load %arg6[%c0_233, %c0_234] : memref<1x120xf32, #tpu.memory_space<vmem>>, vector<1x120xf32>
    %230 = vector.broadcast %229 : vector<1x120xf32> to vector<2x120xf32>
    %231 = arith.addf %228, %230 : vector<2x120xf32>
    %cst_235 = arith.constant 0.000000e+00 : f32
    %232 = vector.broadcast %cst_235 : f32 to vector<2x120xf32>
    %233 = arith.maximumf %231, %232 : vector<2x120xf32>
    %c0_236 = arith.constant 0 : index
    %c0_237 = arith.constant 0 : index
    %234 = vector.load %arg7[%c0_236, %c0_237] : memref<120x84xf32, #tpu.memory_space<vmem>>, vector<120x84xf32>
    %cst_238 = arith.constant dense<0.000000e+00> : vector<2x84xf32>
    %235 = tpu.matmul %233, %234, %cst_238 {dimension_numbers = #tpu.dot_dimension_numbers<[1], [0], [0], [1], [0, 0, 1, 1], [], []>} : vector<2x120xf32>, vector<120x84xf32>, vector<2x84xf32> -> vector<2x84xf32>
    %c0_239 = arith.constant 0 : index
    %c0_240 = arith.constant 0 : index
    %236 = vector.load %arg8[%c0_239, %c0_240] : memref<1x84xf32, #tpu.memory_space<vmem>>, vector<1x84xf32>
    %237 = vector.broadcast %236 : vector<1x84xf32> to vector<2x84xf32>
    %238 = arith.addf %235, %237 : vector<2x84xf32>
    %cst_241 = arith.constant 0.000000e+00 : f32
    %239 = vector.broadcast %cst_241 : f32 to vector<2x84xf32>
    %240 = arith.maximumf %238, %239 : vector<2x84xf32>
    %c0_242 = arith.constant 0 : index
    %c0_243 = arith.constant 0 : index
    %241 = vector.load %arg9[%c0_242, %c0_243] : memref<84x6xf32, #tpu.memory_space<vmem>>, vector<84x6xf32>
    %cst_244 = arith.constant dense<0.000000e+00> : vector<2x6xf32>
    %242 = tpu.matmul %240, %241, %cst_244 {dimension_numbers = #tpu.dot_dimension_numbers<[1], [0], [0], [1], [0, 0, 1, 1], [], []>} : vector<2x84xf32>, vector<84x6xf32>, vector<2x6xf32> -> vector<2x6xf32>
    %c0_245 = arith.constant 0 : index
    %c0_246 = arith.constant 0 : index
    %243 = vector.load %arg10[%c0_245, %c0_246] : memref<1x6xf32, #tpu.memory_space<vmem>>, vector<1x6xf32>
    %244 = vector.broadcast %243 : vector<1x6xf32> to vector<2x6xf32>
    %245 = arith.addf %242, %244 : vector<2x6xf32>
    %c0_247 = arith.constant 0 : index
    %c0_248 = arith.constant 0 : index
    %246 = vector.load %arg11[%c0_247, %c0_248] : memref<2x6xf32, #tpu.memory_space<vmem>>, vector<2x6xf32>
    tpu.vector_store %arg11[%c0_247, %c0_248], %245 {strides = array<i32>} : memref<2x6xf32, #tpu.memory_space<vmem>>, vector<2x6xf32>,
    return
  }
}

</mosaic_0001>

<bundles_post_ra>
// kernel: net_forward.1
= control target key start
LH: loop header
LB: loop body
LE: loop exit
PB: predicated region body
PF: predicated region fallthrough
CT: control target
= control target key end

     0   :  { %v8157_v7 = vmov 0.0   ;;  %v8158_v13 = vmov 0   ;;  %s10588_s0 = inlined_call_operand.vmem [shape: f32[128,2816], index: 0, kind: input, shape index: {}]   ;;  %s10589_s1 = inlined_call_operand.vmem [shape: f32[8,128], index: 1, kind: input, shape index: {}]   ;;  %s10590_s2 = inlined_call_operand.vmem [shape: f32[8,1], index: 2, kind: input, shape index: {}]   ;;  %s10591_s3 = inlined_call_operand.vmem [shape: f32[25,16,8], index: 3, kind: input, shape index: {}]   ;;  %s10592_s4 = inlined_call_operand.vmem [shape: f32[16,1], index: 4, kind: input, shape index: {}]   ;;  %s10593_s5 = inlined_call_operand.vmem [shape: f32[400,120], index: 5, kind: input, shape index: {}]   ;;  %s10594_s6 = inlined_call_operand.vmem [shape: f32[1,120], index: 6, kind: input, shape index: {}]   ;;  %s10595_s7 = inlined_call_operand.vmem [shape: f32[120,84], index: 7, kind: input, shape index: {}]   ;;  %s10596_s8 = inlined_call_operand.vmem [shape: f32[1,84], index: 8, kind: input, shape index: {}]   ;;  %s10597_s9 = inlined_call_operand.vmem [shape: f32[84,6], index: 9, kind: input, shape index: {}]   ;;  %s10598_s10 = inlined_call_operand.vmem [shape: f32[1,6], index: 10, kind: input, shape index: {}]   ;;  %s10599_s11 = inlined_call_operand.hbm [shape: f32[2,6], index: 11, kind: output, shape index: {}]  }
   0x1   :  { %v41_v0 = vld [vmem:[%s10588_s0 + $0x8] sm:$0xff]  ;;  %v63_v1 = vld [vmem:[%s10588_s0 + $0xb8] sm:$0xff]  ;;  %v40_v2 = vld [vmem:[%s10588_s0] sm:$0xff]  ;;  %462 = vmatprep.mubr.f32.mxu0 %v8157_v7  ;;  %817 = vmatprep.mubr.f32.mxu1 %v8157_v7 }
   0x2   :  { %v7502_v3 = vpack.c.bf16 %v63_v1, %v41_v0  ;;  %v62_v4 = vld [vmem:[%s10588_s0 + $0xb0] sm:$0xff]  ;;  %v85_v5 = vld [vmem:[%s10588_s0 + $0x168] sm:$0xff]  ;;  %v107_v6 = vld [vmem:[%s10588_s0 + $0x218] sm:$0xff]  ;;  %8126 = vset.pattern.permute.xlu0 %v8158_v13  ;;  %8127 = vset.pattern.permute.xlu1 %v8158_v13 }
   0x3   :  { %v7504_v8 = vpack.c.bf16 %v62_v4, %v40_v2  ;;  %v7506_v9 = vpack.c.bf16 %v107_v6, %v85_v5  ;;  %v84_v10 = vld [vmem:[%s10588_s0 + $0x160] sm:$0xff]  ;;  %v106_v11 = vld [vmem:[%s10588_s0 + $0x210] sm:$0xff]  ;;  %v129_v12 = vld [vmem:[%s10588_s0 + $0x2c8] sm:$0xff] }
   0x4   :  { %7503 = vmatprep.subr.bf16.mxu0 %v7502_v3  ;;  %v151_v14 = vld [vmem:[%s10588_s0 + $0x378] sm:$0xff]  ;;  %v7508_v15 = vpack.c.bf16 %v106_v11, %v84_v10  ;;  %v128_v17 = vld [vmem:[%s10588_s0 + $0x2c0] sm:$0xff]  ;;  %v150_v18 = vld [vmem:[%s10588_s0 + $0x370] sm:$0xff] }
   0x5   :  { %7505 = vmatpush1.bf16.msra.mxu0 %v7504_v8  ;;  %v7510_v16 = vpack.c.bf16 %v151_v14, %v129_v12  ;;  %v173_v19 = vld [vmem:[%s10588_s0 + $0x428] sm:$0xff]  ;;  %v195_v20 = vld [vmem:[%s10588_s0 + $0x4d8] sm:$0xff]  ;;  %v7512_v21 = vpack.c.bf16 %v150_v18, %v128_v17  ;;  %v172_v22 = vld [vmem:[%s10588_s0 + $0x420] sm:$0xff] }
   0x6   :  { %7507 = vmatprep.subr.bf16.mxu0 %v7506_v9  ;;  %v194_v23 = vld [vmem:[%s10588_s0 + $0x4d0] sm:$0xff]  ;;  %v7514_v24 = vpack.c.bf16 %v195_v20, %v173_v19  ;;  %v217_v25 = vld [vmem:[%s10588_s0 + $0x588] sm:$0xff]  ;;  %v51_v26 = vld [vmem:[%s10588_s0 + $0x58] sm:$0xff] }
   0x7   :  { %v73_v27 = vld [vmem:[%s10588_s0 + $0x108] sm:$0xff]  ;;  %v239_v28 = vld [vmem:[%s10588_s0 + $0x638] sm:$0xff]  ;;  %v50_v30 = vld [vmem:[%s10588_s0 + $0x50] sm:$0xff]  ;;  %v7516_v33 = vpack.c.bf16 %v194_v23, %v172_v22 }
   0x8   :  { %v7662_v29 = vpack.c.bf16 %v73_v27, %v51_v26  ;;  %v72_v31 = vld [vmem:[%s10588_s0 + $0x100] sm:$0xff]  ;;  %v95_v34 = vld [vmem:[%s10588_s0 + $0x1b8] sm:$0xff]  ;;  %v117_v35 = vld [vmem:[%s10588_s0 + $0x268] sm:$0xff]  ;;  %v7518_v37 = vpack.c.bf16 %v239_v28, %v217_v25 }
   0x9   :  { %7509 = vmatpush1.bf16.msra.mxu0 %v7508_v15  ;;  %v7664_v32 = vpack.c.bf16 %v72_v31, %v50_v30  ;;  %v94_v36 = vld [vmem:[%s10588_s0 + $0x1b0] sm:$0xff]  ;;  %v216_v38 = vld [vmem:[%s10588_s0 + $0x580] sm:$0xff]  ;;  %v7666_v40 = vpack.c.bf16 %v117_v35, %v95_v34  ;;  %v261_v42 = vld [vmem:[%s10588_s0 + $0x6e8] sm:$0xff] }
   0xa   :  { %7511 = vmatprep.subr.bf16.mxu0 %v7510_v16  ;;  %7663 = vmatprep.subr.bf16.mxu1 %v7662_v29  ;;  %v238_v39 = vld [vmem:[%s10588_s0 + $0x630] sm:$0xff]  ;;  %v116_v41 = vld [vmem:[%s10588_s0 + $0x260] sm:$0xff]  ;;  %v283_v43 = vld [vmem:[%s10588_s0 + $0x798] sm:$0xff] }
   0xb   :  { %7665 = vmatpush1.bf16.msra.mxu1 %v7664_v32  ;;  %v7668_v44 = vpack.c.bf16 %v116_v41, %v94_v36  ;;  %v139_v45 = vld [vmem:[%s10588_s0 + $0x318] sm:$0xff]  ;;  %v161_v46 = vld [vmem:[%s10588_s0 + $0x3c8] sm:$0xff]  ;;  %v138_v47 = vld [vmem:[%s10588_s0 + $0x310] sm:$0xff]  ;;  %v7520_v48 = vpack.c.bf16 %v238_v39, %v216_v38  ;;  %v7522_v53 = vpack.c.bf16 %v283_v43, %v261_v42 }
   0xc   :  { %7667 = vmatprep.subr.bf16.mxu1 %v7666_v40  ;;  %v260_v49 = vld [vmem:[%s10588_s0 + $0x6e0] sm:$0xff]  ;;  %v282_v50 = vld [vmem:[%s10588_s0 + $0x790] sm:$0xff]  ;;  %v7670_v51 = vpack.c.bf16 %v161_v46, %v139_v45  ;;  %v305_v54 = vld [vmem:[%s10588_s0 + $0x848] sm:$0xff] }
   0xd   :  { %7513 = vmatpush1.bf16.msra.mxu0 %v7512_v21  ;;  %v160_v52 = vld [vmem:[%s10588_s0 + $0x3c0] sm:$0xff]  ;;  %v327_v55 = vld [vmem:[%s10588_s0 + $0x8f8] sm:$0xff]  ;;  %v205_v58 = vld [vmem:[%s10588_s0 + $0x528] sm:$0xff]  ;;  %v7524_v62 = vpack.c.bf16 %v282_v50, %v260_v49 }
   0xe   :  { %7515 = vmatprep.subr.bf16.mxu0 %v7514_v24  ;;  %v7672_v56 = vpack.c.bf16 %v160_v52, %v138_v47  ;;  %v183_v57 = vld [vmem:[%s10588_s0 + $0x478] sm:$0xff]  ;;  %v182_v59 = vld [vmem:[%s10588_s0 + $0x470] sm:$0xff]  ;;  %v204_v60 = vld [vmem:[%s10588_s0 + $0x520] sm:$0xff]  ;;  %v7526_v1 = vpack.c.bf16 %v327_v55, %v305_v54 }
   0xf   :  { %7669 = vmatpush1.bf16.msra.mxu1 %v7668_v44  ;;  %v7674_v61 = vpack.c.bf16 %v205_v58, %v183_v57  ;;  %v227_v63 = vld [vmem:[%s10588_s0 + $0x5d8] sm:$0xff]  ;;  %v249_v0 = vld [vmem:[%s10588_s0 + $0x688] sm:$0xff]  ;;  %v304_v2 = vld [vmem:[%s10588_s0 + $0x840] sm:$0xff]  ;;  %v7676_v5 = vpack.c.bf16 %v204_v60, %v182_v59 }
  0x10   :  { %7671 = vmatprep.subr.bf16.mxu1 %v7670_v51  ;;  %v326_v3 = vld [vmem:[%s10588_s0 + $0x8f0] sm:$0xff]  ;;  %v349_v4 = vld [vmem:[%s10588_s0 + $0x9a8] sm:$0xff]  ;;  %v371_v6 = vld [vmem:[%s10588_s0 + $0xa58] sm:$0xff]  ;;  %v7678_v8 = vpack.c.bf16 %v249_v0, %v227_v63 }
  0x11   :  { %7517 = vmatpush1.bf16.msra.mxu0 %v7516_v33  ;;  %v226_v9 = vld [vmem:[%s10588_s0 + $0x5d0] sm:$0xff]  ;;  %v248_v10 = vld [vmem:[%s10588_s0 + $0x680] sm:$0xff]  ;;  %v271_v11 = vld [vmem:[%s10588_s0 + $0x738] sm:$0xff]  ;;  %v7528_v13 = vpack.c.bf16 %v326_v3, %v304_v2  ;;  %v7530_v14 = vpack.c.bf16 %v371_v6, %v349_v4 }
  0x12   :  { %7519 = vmatprep.subr.bf16.mxu0 %v7518_v37  ;;  %v293_v12 = vld [vmem:[%s10588_s0 + $0x7e8] sm:$0xff]  ;;  %v348_v15 = vld [vmem:[%s10588_s0 + $0x9a0] sm:$0xff]  ;;  %v370_v16 = vld [vmem:[%s10588_s0 + $0xa50] sm:$0xff]  ;;  %v7680_v18 = vpack.c.bf16 %v248_v10, %v226_v9 }
  0x13   :  { %7673 = vmatpush1.bf16.msra.mxu1 %v7672_v56  ;;  %v43_v17 = vld [vmem:[%s10588_s0 + $0x18] sm:$0xff]  ;;  %v65_v19 = vld [vmem:[%s10588_s0 + $0xc8] sm:$0xff]  ;;  %v7682_v20 = vpack.c.bf16 %v293_v12, %v271_v11  ;;  %v270_v21 = vld [vmem:[%s10588_s0 + $0x730] sm:$0xff]  ;;  %v7532_v25 = vpack.c.bf16 %v370_v16, %v348_v15 }
  0x14   :  { %7675 = vmatprep.subr.bf16.mxu1 %v7674_v61  ;;  %v292_v22 = vld [vmem:[%s10588_s0 + $0x7e0] sm:$0xff]  ;;  %v315_v23 = vld [vmem:[%s10588_s0 + $0x898] sm:$0xff]  ;;  %v337_v24 = vld [vmem:[%s10588_s0 + $0x948] sm:$0xff]  ;;  %v7534_v26 = vpack.c.bf16 %v65_v19, %v43_v17 }
  0x15   :  { %7521 = vmatpush1.bf16.msra.mxu0 %v7520_v48  ;;  %v42_v27 = vld [vmem:[%s10588_s0 + $0x10] sm:$0xff]  ;;  %v64_v28 = vld [vmem:[%s10588_s0 + $0xc0] sm:$0xff]  ;;  %v87_v29 = vld [vmem:[%s10588_s0 + $0x178] sm:$0xff]  ;;  %v7684_v30 = vpack.c.bf16 %v292_v22, %v270_v21  ;;  %v7686_v32 = vpack.c.bf16 %v337_v24, %v315_v23 }
  0x16   :  { %7523 = vmatprep.subr.bf16.mxu0 %v7522_v53  ;;  %v109_v31 = vld [vmem:[%s10588_s0 + $0x228] sm:$0xff]  ;;  %v314_v33 = vld [vmem:[%s10588_s0 + $0x890] sm:$0xff]  ;;  %v336_v34 = vld [vmem:[%s10588_s0 + $0x940] sm:$0xff]  ;;  %v7536_v38 = vpack.c.bf16 %v64_v28, %v42_v27 }
  0x17   :  { %7677 = vmatpush1.bf16.msra.mxu1 %v7676_v5  ;;  %v359_v35 = vld [vmem:[%s10588_s0 + $0x9f8] sm:$0xff]  ;;  %v381_v36 = vld [vmem:[%s10588_s0 + $0xaa8] sm:$0xff]  ;;  %v8459_v37 = vld [vmem:[%s10589_s1] sm:$0xff]  ;;  %v7538_v39 = vpack.c.bf16 %v109_v31, %v87_v29  ;;  %v7688_v43 = vpack.c.bf16 %v336_v34, %v314_v33 }
  0x18   :  { %7679 = vmatprep.subr.bf16.mxu1 %v7678_v8  ;;  %v86_v40 = vld [vmem:[%s10588_s0 + $0x170] sm:$0xff]  ;;  %v108_v41 = vld [vmem:[%s10588_s0 + $0x220] sm:$0xff]  ;;  %v131_v42 = vld [vmem:[%s10588_s0 + $0x2d8] sm:$0xff]  ;;  %v7690_v45 = vpack.c.bf16 %v381_v36, %v359_v35 }
  0x19   :  { %7525 = vmatpush1.bf16.msra.mxu0 %v7524_v62  ;;  %v153_v44 = vld [vmem:[%s10588_s0 + $0x388] sm:$0xff]  ;;  %v358_v46 = vld [vmem:[%s10588_s0 + $0x9f0] sm:$0xff]  ;;  %v380_v47 = vld [vmem:[%s10588_s0 + $0xaa0] sm:$0xff]  ;;  %v7540_v50 = vpack.c.bf16 %v108_v41, %v86_v40 }
  0x1a   :  { %7527 = vmatprep.subr.bf16.mxu0 %v7526_v1  ;;  %v55_v48 = vld [vmem:[%s10588_s0 + $0x78] sm:$0xff]  ;;  %v77_v49 = vld [vmem:[%s10588_s0 + $0x128] sm:$0xff]  ;;  %v7542_v51 = vpack.c.bf16 %v153_v44, %v131_v42  ;;  %v130_v52 = vld [vmem:[%s10588_s0 + $0x2d0] sm:$0xff]  ;;  %v7692_v55 = vpack.c.bf16 %v380_v47, %v358_v46 }
  0x1b   :  { %7681 = vmatpush1.bf16.msra.mxu1 %v7680_v18  ;;  %v152_v53 = vld [vmem:[%s10588_s0 + $0x380] sm:$0xff]  ;;  %v175_v54 = vld [vmem:[%s10588_s0 + $0x438] sm:$0xff]  ;;  %v197_v56 = vld [vmem:[%s10588_s0 + $0x4e8] sm:$0xff]  ;;  %v7726_v57 = vpack.c.bf16 %v77_v49, %v55_v48 }
  0x1c   :  { %7683 = vmatprep.subr.bf16.mxu1 %v7682_v20  ;;  %v54_v58 = vld [vmem:[%s10588_s0 + $0x70] sm:$0xff]  ;;  %v76_v59 = vld [vmem:[%s10588_s0 + $0x120] sm:$0xff]  ;;  %v99_v60 = vld [vmem:[%s10588_s0 + $0x1d8] sm:$0xff]  ;;  %v7544_v62 = vpack.c.bf16 %v152_v53, %v130_v52  ;;  %v7546_v63 = vpack.c.bf16 %v197_v56, %v175_v54 }
  0x1d   :  { %7529 = vmatpush1.bf16.msra.mxu0 %v7528_v13  ;;  %v121_v61 = vld [vmem:[%s10588_s0 + $0x288] sm:$0xff]  ;;  %v174_v0 = vld [vmem:[%s10588_s0 + $0x430] sm:$0xff]  ;;  %v196_v1 = vld [vmem:[%s10588_s0 + $0x4e0] sm:$0xff]  ;;  %v7728_v3 = vpack.c.bf16 %v76_v59, %v54_v58 }
  0x1e   :  { %7531 = vmatprep.subr.bf16.mxu0 %v7530_v14  ;;  %v219_v2 = vld [vmem:[%s10588_s0 + $0x598] sm:$0xff]  ;;  %v241_v4 = vld [vmem:[%s10588_s0 + $0x648] sm:$0xff]  ;;  %v7730_v5 = vpack.c.bf16 %v121_v61, %v99_v60  ;;  %v98_v6 = vld [vmem:[%s10588_s0 + $0x1d0] sm:$0xff]  ;;  %v7548_v11 = vpack.c.bf16 %v196_v1, %v174_v0 }
  0x1f   :  { %7685 = vmatpush1.bf16.msra.mxu1 %v7684_v30  ;;  %v120_v8 = vld [vmem:[%s10588_s0 + $0x280] sm:$0xff]  ;;  %v143_v9 = vld [vmem:[%s10588_s0 + $0x338] sm:$0xff]  ;;  %v165_v10 = vld [vmem:[%s10588_s0 + $0x3e8] sm:$0xff]  ;;  %v7550_v12 = vpack.c.bf16 %v241_v4, %v219_v2 }
  0x20   :  { %7687 = vmatprep.subr.bf16.mxu1 %v7686_v32  ;;  %v218_v13 = vld [vmem:[%s10588_s0 + $0x590] sm:$0xff]  ;;  %v240_v14 = vld [vmem:[%s10588_s0 + $0x640] sm:$0xff]  ;;  %v263_v15 = vld [vmem:[%s10588_s0 + $0x6f8] sm:$0xff]  ;;  %v7732_v16 = vpack.c.bf16 %v120_v8, %v98_v6  ;;  %v7734_v18 = vpack.c.bf16 %v165_v10, %v143_v9 }
  0x21   :  { %7533 = vmatpush1.bf16.msra.mxu0 %v7532_v25  ;;  %v285_v17 = vld [vmem:[%s10588_s0 + $0x7a8] sm:$0xff]  ;;  %v142_v19 = vld [vmem:[%s10588_s0 + $0x330] sm:$0xff]  ;;  %v164_v20 = vld [vmem:[%s10588_s0 + $0x3e0] sm:$0xff]  ;;  %v7552_v23 = vpack.c.bf16 %v240_v14, %v218_v13 }
  0x22   :  { %7535 = vmatprep.subr.bf16.mxu0 %v7534_v26  ;;  %v187_v21 = vld [vmem:[%s10588_s0 + $0x498] sm:$0xff]  ;;  %v209_v22 = vld [vmem:[%s10588_s0 + $0x548] sm:$0xff]  ;;  %v7554_v24 = vpack.c.bf16 %v285_v17, %v263_v15  ;;  %v262_v25 = vld [vmem:[%s10588_s0 + $0x6f0] sm:$0xff]  ;;  %v7736_v28 = vpack.c.bf16 %v164_v20, %v142_v19 }
  0x23   :  { %7689 = vmatpush1.bf16.msra.mxu1 %v7688_v43  ;;  %v284_v26 = vld [vmem:[%s10588_s0 + $0x7a0] sm:$0xff]  ;;  %v307_v27 = vld [vmem:[%s10588_s0 + $0x858] sm:$0xff]  ;;  %v329_v29 = vld [vmem:[%s10588_s0 + $0x908] sm:$0xff]  ;;  %v7738_v30 = vpack.c.bf16 %v209_v22, %v187_v21 }
  0x24   :  { %463 = vmatmul.mubr.f32.vlgmr.msra.gmra.mrb[0].mxu0 %v8459_v37  ;;  %7691 = vmatprep.subr.bf16.mxu1 %v7690_v45  ;;  %v186_v31 = vld [vmem:[%s10588_s0 + $0x490] sm:$0xff]  ;;  %v208_v32 = vld [vmem:[%s10588_s0 + $0x540] sm:$0xff]  ;;  %v231_v33 = vld [vmem:[%s10588_s0 + $0x5f8] sm:$0xff]  ;;  %v7556_v35 = vpack.c.bf16 %v284_v26, %v262_v25  ;;  %v7558_v36 = vpack.c.bf16 %v329_v29, %v307_v27 }
  0x25   :  { %7537 = vmatpush1.bf16.msra.mxu0 %v7536_v38  ;;  %533 = vmatprep.mubr.f32.mxu0 %v8157_v7  ;;  %v253_v34 = vld [vmem:[%s10588_s0 + $0x6a8] sm:$0xff]  ;;  %v306_v38 = vld [vmem:[%s10588_s0 + $0x850] sm:$0xff]  ;;  %v351_v40 = vld [vmem:[%s10588_s0 + $0x9b8] sm:$0xff]  ;;  %v7740_v41 = vpack.c.bf16 %v208_v32, %v186_v31 }
  0x26   :  { %7539 = vmatprep.subr.bf16.mxu0 %v7538_v39  ;;  %v328_v39 = vld [vmem:[%s10588_s0 + $0x900] sm:$0xff]  ;;  %v373_v42 = vld [vmem:[%s10588_s0 + $0xa68] sm:$0xff]  ;;  %v7742_v43 = vpack.c.bf16 %v253_v34, %v231_v33  ;;  %v230_v44 = vld [vmem:[%s10588_s0 + $0x5f0] sm:$0xff] }
  0x27   :  { %7693 = vmatpush1.bf16.msra.mxu1 %v7692_v55  ;;  %v252_v45 = vld [vmem:[%s10588_s0 + $0x6a0] sm:$0xff]  ;;  %v275_v46 = vld [vmem:[%s10588_s0 + $0x758] sm:$0xff]  ;;  %v297_v47 = vld [vmem:[%s10588_s0 + $0x808] sm:$0xff]  ;;  %v7560_v48 = vpack.c.bf16 %v328_v39, %v306_v38  ;;  %v7562_v49 = vpack.c.bf16 %v373_v42, %v351_v40 }
  0x28   :  { %7727 = vmatprep.subr.bf16.mxu1 %v7726_v57  ;;  %v45_v52 = vld [vmem:[%s10588_s0 + $0x28] sm:$0xff]  ;;  %v7744_v53 = vpack.c.bf16 %v252_v45, %v230_v44  ;;  %v67_v54 = vld [vmem:[%s10588_s0 + $0xd8] sm:$0xff]  ;;  %v7746_v55 = vpack.c.bf16 %v297_v47, %v275_v46  ;;  %v274_v56 = vld [vmem:[%s10588_s0 + $0x750] sm:$0xff] }
  0x29   :  { %7541 = vmatpush1.bf16.msra.mxu0 %v7540_v50  ;;  %v350_v50 = vld [vmem:[%s10588_s0 + $0x9b0] sm:$0xff]  ;;  %v296_v57 = vld [vmem:[%s10588_s0 + $0x800] sm:$0xff]  ;;  %v319_v58 = vld [vmem:[%s10588_s0 + $0x8b8] sm:$0xff]  ;;  %v7566_v61 = vpack.c.bf16 %v67_v54, %v45_v52 }
  0x2a   :  { %7543 = vmatprep.subr.bf16.mxu0 %v7542_v51  ;;  %818 = vmatmul.mubr.f32.vlgmr.msra.gmra.mrb[0].mxu1 %v8459_v37  ;;  %v372_v51 = vld [vmem:[%s10588_s0 + $0xa60] sm:$0xff]  ;;  %v341_v59 = vld [vmem:[%s10588_s0 + $0x968] sm:$0xff]  ;;  %v7748_v1 = vpack.c.bf16 %v296_v57, %v274_v56  ;;  %v111_v2 = vld [vmem:[%s10588_s0 + $0x238] sm:$0xff] }
  0x2b   :  { %7729 = vmatpush1.bf16.msra.mxu1 %v7728_v3  ;;  %959 = vmatprep.mubr.f32.mxu1 %v8157_v7  ;;  %v7564_v60 = vpack.c.bf16 %v372_v51, %v350_v50  ;;  %v89_v0 = vld [vmem:[%s10588_s0 + $0x188] sm:$0xff]  ;;  %v7750_v3 = vpack.c.bf16 %v341_v59, %v319_v58  ;;  %v318_v4 = vld [vmem:[%s10588_s0 + $0x8b0] sm:$0xff]  ;;  %v363_v6 = vld [vmem:[%s10588_s0 + $0xa18] sm:$0xff] }
  0x2c   :  { %7731 = vmatprep.subr.bf16.mxu1 %v7730_v5  ;;  %v340_v5 = vld [vmem:[%s10588_s0 + $0x960] sm:$0xff]  ;;  %v385_v8 = vld [vmem:[%s10588_s0 + $0xac8] sm:$0xff]  ;;  %v7570_v10 = vpack.c.bf16 %v111_v2, %v89_v0  ;;  %v155_v15 = vld [vmem:[%s10588_s0 + $0x398] sm:$0xff] }
  0x2d   :  { %7545 = vmatpush1.bf16.msra.mxu0 %v7544_v62  ;;  %v44_v62 = vld [vmem:[%s10588_s0 + $0x20] sm:$0xff]  ;;  %v133_v13 = vld [vmem:[%s10588_s0 + $0x2e8] sm:$0xff]  ;;  %v7752_v14 = vpack.c.bf16 %v340_v5, %v318_v4  ;;  %v362_v17 = vld [vmem:[%s10588_s0 + $0xa10] sm:$0xff] }
  0x2e   :  { %7547 = vmatprep.subr.bf16.mxu0 %v7546_v63  ;;  %v66_v63 = vld [vmem:[%s10588_s0 + $0xd0] sm:$0xff]  ;;  %v59_v19 = vld [vmem:[%s10588_s0 + $0x98] sm:$0xff]  ;;  %v81_v20 = vld [vmem:[%s10588_s0 + $0x148] sm:$0xff] }
  0x2f   :  { %7733 = vmatpush1.bf16.msra.mxu1 %v7732_v16  ;;  %v7568_v9 = vpack.c.bf16 %v66_v63, %v44_v62  ;;  %v7754_v16 = vpack.c.bf16 %v385_v8, %v363_v6  ;;  %v132_v22 = vld [vmem:[%s10588_s0 + $0x2e0] sm:$0xff]  ;;  %v177_v25 = vld [vmem:[%s10588_s0 + $0x448] sm:$0xff]  ;;  %v199_v26 = vld [vmem:[%s10588_s0 + $0x4f8] sm:$0xff] }
  0x30   :  { %7735 = vmatprep.subr.bf16.mxu1 %v7734_v18  ;;  %v384_v18 = vld [vmem:[%s10588_s0 + $0xac0] sm:$0xff]  ;;  %v58_v29 = vld [vmem:[%s10588_s0 + $0x90] sm:$0xff]  ;;  %v103_v32 = vld [vmem:[%s10588_s0 + $0x1f8] sm:$0xff] }
  0x31   :  { %7549 = vmatpush1.bf16.msra.mxu0 %v7548_v11  ;;  %v88_v11 = vld [vmem:[%s10588_s0 + $0x180] sm:$0xff]  ;;  %v7756_v27 = vpack.c.bf16 %v384_v18, %v362_v17  ;;  %v125_v33 = vld [vmem:[%s10588_s0 + $0x2a8] sm:$0xff]  ;;  %v198_v38 = vld [vmem:[%s10588_s0 + $0x4f0] sm:$0xff] }
  0x32   :  { %7551 = vmatprep.subr.bf16.mxu0 %v7550_v12  ;;  %v110_v12 = vld [vmem:[%s10588_s0 + $0x230] sm:$0xff]  ;;  %v392_v31 = vld [vmem:[%s10590_s2] sm:$0xff]  ;;  %v221_v39 = vld [vmem:[%s10588_s0 + $0x5a8] sm:$0xff]  ;;  %v7794_v42 = vpack.c.bf16 %v125_v33, %v103_v32 }
  0x33   :  { %7737 = vmatpush1.bf16.msra.mxu1 %v7736_v28  ;;  %v7572_v21 = vpack.c.bf16 %v110_v12, %v88_v11  ;;  %v7790_v28 = vpack.c.bf16 %v81_v20, %v59_v19  ;;  %395 = vperm.xlu0 %8126, %v392_v31   ;;  %v124_v44 = vld [vmem:[%s10588_s0 + $0x2a0] sm:$0xff]  ;;  %v147_v45 = vld [vmem:[%s10588_s0 + $0x358] sm:$0xff]  ;;  %v169_v46 = vld [vmem:[%s10588_s0 + $0x408] sm:$0xff] }
  0x34   :  { %7739 = vmatprep.subr.bf16.mxu1 %v7738_v30  ;;  %v80_v30 = vld [vmem:[%s10588_s0 + $0x140] sm:$0xff]  ;;  %v242_v50 = vld [vmem:[%s10588_s0 + $0x650] sm:$0xff]  ;;  %v265_v51 = vld [vmem:[%s10588_s0 + $0x708] sm:$0xff]  ;;  %v7798_v54 = vpack.c.bf16 %v169_v46, %v147_v45 }
  0x35   :  { %7553 = vmatpush1.bf16.msra.mxu0 %v7552_v23  ;;  %v7574_v23 = vpack.c.bf16 %v155_v15, %v133_v13  ;;  %v7792_v40 = vpack.c.bf16 %v80_v30, %v58_v29  ;;  %v168_v56 = vld [vmem:[%s10588_s0 + $0x400] sm:$0xff]  ;;  %v191_v57 = vld [vmem:[%s10588_s0 + $0x4b8] sm:$0xff]  ;;  %v213_v58 = vld [vmem:[%s10588_s0 + $0x568] sm:$0xff] }
  0x36   :  { %7555 = vmatprep.subr.bf16.mxu0 %v7554_v24  ;;  %v154_v24 = vld [vmem:[%s10588_s0 + $0x390] sm:$0xff]  ;;  %v309_v63 = vld [vmem:[%s10588_s0 + $0x868] sm:$0xff]  ;;  %v7802_v2 = vpack.c.bf16 %v213_v58, %v191_v57  ;;  %v212_v4 = vld [vmem:[%s10588_s0 + $0x560] sm:$0xff] }
  0x37   :  { %7741 = vmatpush1.bf16.msra.mxu1 %v7740_v41  ;;  %v7576_v34 = vpack.c.bf16 %v154_v24, %v132_v22  ;;  %v243_v41 = vld [vmem:[%s10588_s0 + $0x658] sm:$0xff]  ;;  %v286_v62 = vld [vmem:[%s10588_s0 + $0x7b0] sm:$0xff]  ;;  %v257_v6 = vld [vmem:[%s10588_s0 + $0x6c8] sm:$0xff] }
  0x38   :  { %7743 = vmatprep.subr.bf16.mxu1 %v7742_v43  ;;  %v102_v43 = vld [vmem:[%s10588_s0 + $0x1f0] sm:$0xff]  ;;  %v235_v5 = vld [vmem:[%s10588_s0 + $0x618] sm:$0xff]  ;;  %v353_v12 = vld [vmem:[%s10588_s0 + $0x9c8] sm:$0xff] }
  0x39   :  { %7557 = vmatpush1.bf16.msra.mxu0 %v7556_v35  ;;  %v7578_v35 = vpack.c.bf16 %v199_v26, %v177_v25  ;;  %v7796_v52 = vpack.c.bf16 %v124_v44, %v102_v43  ;;  %v330_v11 = vld [vmem:[%s10588_s0 + $0x910] sm:$0xff]  ;;  %v7806_v15 = vpack.c.bf16 %v257_v6, %v235_v5  ;;  %v256_v17 = vld [vmem:[%s10588_s0 + $0x6c0] sm:$0xff]  ;;  %v279_v18 = vld [vmem:[%s10588_s0 + $0x778] sm:$0xff] }
  0x3a   :  { %7559 = vmatprep.subr.bf16.mxu0 %v7558_v36  ;;  %v176_v36 = vld [vmem:[%s10588_s0 + $0x440] sm:$0xff]  ;;  %v301_v19 = vld [vmem:[%s10588_s0 + $0x828] sm:$0xff]  ;;  %v47_v24 = vld [vmem:[%s10588_s0 + $0x38] sm:$0xff] }
  0x3b   :  { %7745 = vmatpush1.bf16.msra.mxu1 %v7744_v53  ;;  %v7580_v47 = vpack.c.bf16 %v198_v38, %v176_v36  ;;  %v287_v53 = vld [vmem:[%s10588_s0 + $0x7b8] sm:$0xff]  ;;  %v352_v22 = vld [vmem:[%s10588_s0 + $0x9c0] sm:$0xff]  ;;  %v69_v26 = vld [vmem:[%s10588_s0 + $0xe8] sm:$0xff] }
  0x3c   :  { %7747 = vmatprep.subr.bf16.mxu1 %v7746_v55  ;;  %v146_v55 = vld [vmem:[%s10588_s0 + $0x350] sm:$0xff]  ;;  %v300_v29 = vld [vmem:[%s10588_s0 + $0x820] sm:$0xff]  ;;  %v323_v30 = vld [vmem:[%s10588_s0 + $0x8d8] sm:$0xff]  ;;  %v7598_v33 = vpack.c.bf16 %v69_v26, %v47_v24 }
  0x3d   :  { %7561 = vmatpush1.bf16.msra.mxu0 %v7560_v48  ;;  %v7582_v48 = vpack.c.bf16 %v243_v41, %v221_v39  ;;  %v7800_v0 = vpack.c.bf16 %v168_v56, %v146_v55  ;;  %v345_v31 = vld [vmem:[%s10588_s0 + $0x988] sm:$0xff]  ;;  %v91_v36 = vld [vmem:[%s10588_s0 + $0x198] sm:$0xff]  ;;  %v322_v41 = vld [vmem:[%s10588_s0 + $0x8d0] sm:$0xff] }
  0x3e   :  { %7563 = vmatprep.subr.bf16.mxu0 %v7562_v49  ;;  %v220_v49 = vld [vmem:[%s10588_s0 + $0x5a0] sm:$0xff]  ;;  %v113_v39 = vld [vmem:[%s10588_s0 + $0x248] sm:$0xff]  ;;  %v367_v43 = vld [vmem:[%s10588_s0 + $0xa38] sm:$0xff] }
  0x3f   :  { %7749 = vmatpush1.bf16.msra.mxu1 %v7748_v1  ;;  %v7584_v59 = vpack.c.bf16 %v242_v50, %v220_v49  ;;  %v331_v1 = vld [vmem:[%s10588_s0 + $0x918] sm:$0xff]  ;;  %v389_v44 = vld [vmem:[%s10588_s0 + $0xae8] sm:$0xff]  ;;  %v7602_v46 = vpack.c.bf16 %v113_v39, %v91_v36  ;;  %v134_v57 = vld [vmem:[%s10588_s0 + $0x2f0] sm:$0xff] }
  0x40   :  { %7751 = vmatprep.subr.bf16.mxu1 %v7750_v3  ;;  %v190_v3 = vld [vmem:[%s10588_s0 + $0x4b0] sm:$0xff]  ;;  %v135_v49 = vld [vmem:[%s10588_s0 + $0x2f8] sm:$0xff]  ;;  %v156_v58 = vld [vmem:[%s10588_s0 + $0x3a0] sm:$0xff] }
  0x41   :  { %7565 = vmatpush1.bf16.msra.mxu0 %v7564_v60  ;;  %v7586_v60 = vpack.c.bf16 %v287_v53, %v265_v51  ;;  %v7804_v13 = vpack.c.bf16 %v212_v4, %v190_v3  ;;  %v157_v51 = vld [vmem:[%s10588_s0 + $0x3a8] sm:$0xff]  ;;  %v366_v53 = vld [vmem:[%s10588_s0 + $0xa30] sm:$0xff] }
  0x42   :  { %7567 = vmatprep.subr.bf16.mxu0 %v7566_v61  ;;  %v264_v61 = vld [vmem:[%s10588_s0 + $0x700] sm:$0xff]  ;;  %v7606_v56 = vpack.c.bf16 %v157_v51, %v135_v49  ;;  %v245_v3 = vld [vmem:[%s10588_s0 + $0x668] sm:$0xff]  ;;  %v222_v6 = vld [vmem:[%s10588_s0 + $0x5b0] sm:$0xff] }
  0x43   :  { %7753 = vmatpush1.bf16.msra.mxu1 %v7752_v14  ;;  %v7588_v8 = vpack.c.bf16 %v286_v62, %v264_v61  ;;  %v375_v14 = vld [vmem:[%s10588_s0 + $0xa78] sm:$0xff]  ;;  %v201_v61 = vld [vmem:[%s10588_s0 + $0x508] sm:$0xff]  ;;  %v7608_v62 = vpack.c.bf16 %v156_v58, %v134_v57 }
  0x44   :  { %534 = vmatmul.mubr.f32.vlgmr.msra.gmra.mrb[2].mxu0 %v8459_v37  ;;  %7755 = vmatprep.subr.bf16.mxu1 %v7754_v16  ;;  %v234_v16 = vld [vmem:[%s10588_s0 + $0x610] sm:$0xff] }
  0x45   :  { %7569 = vmatpush1.bf16.msra.mxu0 %v7568_v9  ;;  %604 = vmatprep.mubr.f32.mxu0 %v8157_v7  ;;  %v7590_v9 = vpack.c.bf16 %v331_v1, %v309_v63  ;;  %v7808_v25 = vpack.c.bf16 %v256_v17, %v234_v16  ;;  %v200_v1 = vld [vmem:[%s10588_s0 + $0x500] sm:$0xff]  ;;  %v333_v16 = vld [vmem:[%s10588_s0 + $0x928] sm:$0xff] }
  0x46   :  { %7571 = vmatprep.subr.bf16.mxu0 %v7570_v10  ;;  %v308_v10 = vld [vmem:[%s10588_s0 + $0x860] sm:$0xff] }
  0x47   :  { %7757 = vmatpush1.bf16.msra.mxu1 %v7756_v27  ;;  %v7592_v20 = vpack.c.bf16 %v330_v11, %v308_v10  ;;  %v7810_v27 = vpack.c.bf16 %v301_v19, %v279_v18  ;;  %v289_v10 = vld [vmem:[%s10588_s0 + $0x7c8] sm:$0xff] }
  0x48   :  { %7791 = vmatprep.subr.bf16.mxu1 %v7790_v28  ;;  %v278_v28 = vld [vmem:[%s10588_s0 + $0x770] sm:$0xff] }
  0x49   :  { %7573 = vmatpush1.bf16.msra.mxu0 %v7572_v21  ;;  %v7594_v21 = vpack.c.bf16 %v375_v14, %v353_v12  ;;  %v7812_v38 = vpack.c.bf16 %v300_v29, %v278_v28  ;;  %v288_v14 = vld [vmem:[%s10588_s0 + $0x7c0] sm:$0xff] }
  0x4a   :  { %7575 = vmatprep.subr.bf16.mxu0 %v7574_v23  ;;  %960 = vmatmul.mubr.f32.vlgmr.msra.gmra.mrb[2].mxu1 %v8459_v37  ;;  %v374_v23 = vld [vmem:[%s10588_s0 + $0xa70] sm:$0xff] }
  0x4b   :  { %7793 = vmatpush1.bf16.msra.mxu1 %v7792_v40  ;;  %1101 = vmatprep.mubr.f32.mxu1 %v8157_v7  ;;  %v7596_v32 = vpack.c.bf16 %v374_v23, %v352_v22  ;;  %v7814_v40 = vpack.c.bf16 %v345_v31, %v323_v30 }
  0x4c   :  { %7795 = vmatprep.subr.bf16.mxu1 %v7794_v42  ;;  %v344_v42 = vld [vmem:[%s10588_s0 + $0x980] sm:$0xff] }
  0x4d   :  { %7577 = vmatpush1.bf16.msra.mxu0 %v7576_v34  ;;  %v46_v34 = vld [vmem:[%s10588_s0 + $0x30] sm:$0xff]  ;;  %v7816_v50 = vpack.c.bf16 %v344_v42, %v322_v41 }
  0x4e   :  { %7579 = vmatprep.subr.bf16.mxu0 %v7578_v35  ;;  %v68_v35 = vld [vmem:[%s10588_s0 + $0xe0] sm:$0xff] }
  0x4f   :  { %7797 = vmatpush1.bf16.msra.mxu1 %v7796_v52  ;;  %v7600_v45 = vpack.c.bf16 %v68_v35, %v46_v34  ;;  %v7818_v52 = vpack.c.bf16 %v389_v44, %v367_v43 }
  0x50   :  { %7799 = vmatprep.subr.bf16.mxu1 %v7798_v54  ;;  %v388_v54 = vld [vmem:[%s10588_s0 + $0xae0] sm:$0xff] }
  0x51   :  { %7581 = vmatpush1.bf16.msra.mxu0 %v7580_v47  ;;  %v90_v47 = vld [vmem:[%s10588_s0 + $0x190] sm:$0xff] }
  0x52   :  { %7583 = vmatprep.subr.bf16.mxu0 %v7582_v48  ;;  %v112_v48 = vld [vmem:[%s10588_s0 + $0x240] sm:$0xff] }
  0x53   :  { %7801 = vmatpush1.bf16.msra.mxu1 %v7800_v0  ;;  %v7604_v55 = vpack.c.bf16 %v112_v48, %v90_v47  ;;  %v178_v0 = vld [vmem:[%s10588_s0 + $0x450] sm:$0xff] }
  0x54   :  { %7803 = vmatprep.subr.bf16.mxu1 %v7802_v2  ;;  %v223_v2 = vld [vmem:[%s10588_s0 + $0x5b8] sm:$0xff]  ;;  %v7612_v4 = vpack.c.bf16 %v200_v1, %v178_v0 }
  0x55   :  { %7585 = vmatpush1.bf16.msra.mxu0 %v7584_v59  ;;  %v7820_v59 = vpack.c.bf16 %v388_v54, %v366_v53  ;;  %v7614_v5 = vpack.c.bf16 %v245_v3, %v223_v2 }
  0x56   :  { %7587 = vmatprep.subr.bf16.mxu0 %v7586_v60  ;;  %v179_v60 = vld [vmem:[%s10588_s0 + $0x458] sm:$0xff] }
  0x57   :  { %7805 = vmatpush1.bf16.msra.mxu1 %v7804_v13  ;;  %v7610_v63 = vpack.c.bf16 %v201_v61, %v179_v60  ;;  %v266_v13 = vld [vmem:[%s10588_s0 + $0x710] sm:$0xff] }
  0x58   :  { %7807 = vmatprep.subr.bf16.mxu1 %v7806_v15  ;;  %v311_v15 = vld [vmem:[%s10588_s0 + $0x878] sm:$0xff] }
  0x59   :  { %7589 = vmatpush1.bf16.msra.mxu0 %v7588_v8  ;;  %v244_v8 = vld [vmem:[%s10588_s0 + $0x660] sm:$0xff] }
  0x5a   :  { %7591 = vmatprep.subr.bf16.mxu0 %v7590_v9  ;;  %v267_v9 = vld [vmem:[%s10588_s0 + $0x718] sm:$0xff]  ;;  %v7616_v11 = vpack.c.bf16 %v244_v8, %v222_v6 }
  0x5b   :  { %7809 = vmatpush1.bf16.msra.mxu1 %v7808_v25  ;;  %v7618_v12 = vpack.c.bf16 %v289_v10, %v267_v9 }
  0x5c   :  { %7811 = vmatprep.subr.bf16.mxu1 %v7810_v27 }
  0x5d   :  { %7593 = vmatpush1.bf16.msra.mxu0 %v7592_v20 }
  0x5e   :  { %7595 = vmatprep.subr.bf16.mxu0 %v7594_v21 }
  0x5f   :  { %7813 = vmatpush1.bf16.msra.mxu1 %v7812_v38 }
  0x60   :  { %7815 = vmatprep.subr.bf16.mxu1 %v7814_v40 }
  0x61   :  { %7597 = vmatpush1.bf16.msra.mxu0 %v7596_v32 }
  0x62   :  { %7599 = vmatprep.subr.bf16.mxu0 %v7598_v33 }
  0x63   :  { %7817 = vmatpush1.bf16.msra.mxu1 %v7816_v50 }
  0x64   :  { %605 = vmatmul.mubr.f32.vlgmr.msra.gmra.mrb[4].mxu0 %v8459_v37  ;;  %7819 = vmatprep.subr.bf16.mxu1 %v7818_v52 }
  0x65   :  { %7601 = vmatpush1.bf16.msra.mxu0 %v7600_v45  ;;  %675 = vmatprep.mubr.f32.mxu0 %v8157_v7 }
  0x66   :  { %7603 = vmatprep.subr.bf16.mxu0 %v7602_v46 }
  0x67   :  { %7821 = vmatpush1.bf16.msra.mxu1 %v7820_v59 }
  0x69   :  { %7605 = vmatpush1.bf16.msra.mxu0 %v7604_v55 }
  0x6a   :  { %7607 = vmatprep.subr.bf16.mxu0 %v7606_v56  ;;  %1102 = vmatmul.mubr.f32.vlgmr.msra.gmra.mrb[4].mxu1 %v8459_v37 }
  0x6d   :  { %7609 = vmatpush1.bf16.msra.mxu0 %v7608_v62 }
  0x6e   :  { %7611 = vmatprep.subr.bf16.mxu0 %v7610_v63 }
  0x71   :  { %7613 = vmatpush1.bf16.msra.mxu0 %v7612_v4 }
  0x72   :  { %7615 = vmatprep.subr.bf16.mxu0 %v7614_v5 }
  0x73   :  { %16 = vsyncpa [#allocation8], 0  ;;  %v7620_v17 = vpack.c.bf16 %v288_v14, %v266_v13  ;;  %v7622_v18 = vpack.c.bf16 %v333_v16, %v311_v15  ;;  %v310_v19 = vld [vmem:[%s10588_s0 + $0x870] sm:$0xff]  ;;  %v332_v20 = vld [vmem:[%s10588_s0 + $0x920] sm:$0xff]  ;;  %s8160_s20 = smov 32   ;;  %vm1239_vm0 = vcmask 801792  }
  0x74   :  { %v355_v21 = vld [vmem:[%s10588_s0 + $0x9d8] sm:$0xff]  ;;  %v377_v22 = vld [vmem:[%s10588_s0 + $0xa88] sm:$0xff]  ;;  %v7624_v23 = vpack.c.bf16 %v332_v20, %v310_v19  ;;  %v354_v25 = vld [vmem:[%s10588_s0 + $0x9d0] sm:$0xff]  ;;  %vm1269_vm1 = vcmask 261120   ;;  %s8161_s21 = smov 94   ;;  %s8162_s22 = smov 60  }
  0x75   :  { %7617 = vmatpush1.bf16.msra.mxu0 %v7616_v11  ;;  %v7626_v24 = vpack.c.bf16 %v377_v22, %v355_v21  ;;  %v376_v26 = vld [vmem:[%s10588_s0 + $0xa80] sm:$0xff]  ;;  %v49_v27 = vld [vmem:[%s10588_s0 + $0x48] sm:$0xff]  ;;  %v71_v28 = vld [vmem:[%s10588_s0 + $0xf8] sm:$0xff]  ;;  %vm1483_vm2 = vcmask 64512   ;;  %vm1349_vm3 = vcmask 769024   ;;  %vm1437_vm4 = vcmask 490496  }
  0x76   :  { %7619 = vmatprep.subr.bf16.mxu0 %v7618_v12  ;;  %v7628_v29 = vpack.c.bf16 %v376_v26, %v354_v25  ;;  %v7630_v30 = vpack.c.bf16 %v71_v28, %v49_v27  ;;  %v48_v31 = vld [vmem:[%s10588_s0 + $0x40] sm:$0xff]  ;;  %v70_v32 = vld [vmem:[%s10588_s0 + $0xf0] sm:$0xff]  ;;  %v93_v33 = vld [vmem:[%s10588_s0 + $0x1a8] sm:$0xff]  ;;  %s8163_s24 = smov 126   ;;  %s8164_s25 = smov 124   ;;  %vm1453_vm5 = vcmask 605184  }
  0x77   :  { %v115_v34 = vld [vmem:[%s10588_s0 + $0x258] sm:$0xff]  ;;  %v7632_v35 = vpack.c.bf16 %v70_v32, %v48_v31  ;;  %v92_v38 = vld [vmem:[%s10588_s0 + $0x1a0] sm:$0xff]  ;;  %v114_v39 = vld [vmem:[%s10588_s0 + $0x250] sm:$0xff]  ;;  %s8165_s26 = smov 122   ;;  %s8166_s27 = smov 120   ;;  %1454 = vst.msk [vmem:[#allocation3 + $0x18] sm:$0xff] %vm1453_vm5, %v8157_v7 }
  0x78   :  { %v7634_v36 = vpack.c.bf16 %v115_v34, %v93_v33  ;;  %v137_v40 = vld [vmem:[%s10588_s0 + $0x308] sm:$0xff]  ;;  %v159_v41 = vld [vmem:[%s10588_s0 + $0x3b8] sm:$0xff]  ;;  %v7636_v42 = vpack.c.bf16 %v114_v39, %v92_v38  ;;  %v136_v44 = vld [vmem:[%s10588_s0 + $0x300] sm:$0xff]  ;;  %s8167_s28 = smov 96   ;;  %s8168_s29 = smov 92   ;;  %vm1809_vm6 = vcmask 1014784  }
  0x79   :  { %7621 = vmatpush1.bf16.msra.mxu0 %v7620_v17  ;;  %v7638_v43 = vpack.c.bf16 %v159_v41, %v137_v40  ;;  %v158_v45 = vld [vmem:[%s10588_s0 + $0x3b0] sm:$0xff]  ;;  %v181_v46 = vld [vmem:[%s10588_s0 + $0x468] sm:$0xff]  ;;  %v203_v47 = vld [vmem:[%s10588_s0 + $0x518] sm:$0xff]  ;;  %s8169_s30 = smov 90   ;;  %s8170_s12 = smov 68   ;;  %vm1988_vm7 = vcmask 998400  }
  0x7a   :  { %7623 = vmatprep.subr.bf16.mxu0 %v7622_v18  ;;  %v7640_v48 = vpack.c.bf16 %v158_v45, %v136_v44  ;;  %v7642_v49 = vpack.c.bf16 %v203_v47, %v181_v46  ;;  %v180_v50 = vld [vmem:[%s10588_s0 + $0x460] sm:$0xff]  ;;  %v202_v51 = vld [vmem:[%s10588_s0 + $0x510] sm:$0xff]  ;;  %v225_v52 = vld [vmem:[%s10588_s0 + $0x5c8] sm:$0xff]  ;;  %s8171_s13 = smov 66   ;;  %s8172_s14 = smov 64   ;;  %vm2167_vm8 = vcmask 982016  }
  0x7b   :  { %v247_v53 = vld [vmem:[%s10588_s0 + $0x678] sm:$0xff]  ;;  %v7644_v54 = vpack.c.bf16 %v202_v51, %v180_v50  ;;  %v224_v56 = vld [vmem:[%s10588_s0 + $0x5c0] sm:$0xff]  ;;  %v246_v57 = vld [vmem:[%s10588_s0 + $0x670] sm:$0xff]  ;;  %s8173_s15 = smov 62   ;;  %s8174_s16 = smov 38   ;;  %vm1458_vm9 = vcmask 539648  }
  0x7c   :  { %v7646_v55 = vpack.c.bf16 %v247_v53, %v225_v52  ;;  %v269_v58 = vld [vmem:[%s10588_s0 + $0x728] sm:$0xff]  ;;  %v291_v59 = vld [vmem:[%s10588_s0 + $0x7d8] sm:$0xff]  ;;  %v7648_v60 = vpack.c.bf16 %v246_v57, %v224_v56  ;;  %v268_v62 = vld [vmem:[%s10588_s0 + $0x720] sm:$0xff]  ;;  %s8175_s18 = smov 36   ;;  %s8177_s17 = smov 30   ;;  %vm2524_vm10 = vcmask 785408  }
  0x7d   :  { %7625 = vmatpush1.bf16.msra.mxu0 %v7624_v23  ;;  %v7650_v61 = vpack.c.bf16 %v291_v59, %v269_v58  ;;  %v290_v63 = vld [vmem:[%s10588_s0 + $0x7d0] sm:$0xff]  ;;  %v313_v0 = vld [vmem:[%s10588_s0 + $0x888] sm:$0xff]  ;;  %v335_v1 = vld [vmem:[%s10588_s0 + $0x938] sm:$0xff]  ;;  %s8178_s23 = smov 8   ;;  %s8181_s2 = smov 2   ;;  %vm2881_vm11 = vcmask 752640  }
  0x7e   :  { %7627 = vmatprep.subr.bf16.mxu0 %v7626_v24  ;;  %v7652_v2 = vpack.c.bf16 %v290_v63, %v268_v62  ;;  %v7654_v3 = vpack.c.bf16 %v335_v1, %v313_v0  ;;  %v312_v4 = vld [vmem:[%s10588_s0 + $0x880] sm:$0xff]  ;;  %v334_v5 = vld [vmem:[%s10588_s0 + $0x930] sm:$0xff]  ;;  %v357_v6 = vld [vmem:[%s10588_s0 + $0x9e8] sm:$0xff]  ;;  %vm3060_vm12 = vcmask 736256   ;;  %vm3249_vm13 = vcmask 556032  }
  0x7f   :  { %v379_v8 = vld [vmem:[%s10588_s0 + $0xa98] sm:$0xff]  ;;  %v7656_v9 = vpack.c.bf16 %v334_v5, %v312_v4  ;;  %v356_v11 = vld [vmem:[%s10588_s0 + $0x9e0] sm:$0xff]  ;;  %v378_v12 = vld [vmem:[%s10588_s0 + $0xa90] sm:$0xff]  ;;  %vm3612_vm14 = vcmask 523264   ;;  %vm1477_vm15 = vcmask 1031168  }
  0x80   :  { %v7658_v10 = vpack.c.bf16 %v379_v8, %v357_v6  ;;  %v53_v13 = vld [vmem:[%s10588_s0 + $0x68] sm:$0xff]  ;;  %v75_v14 = vld [vmem:[%s10588_s0 + $0x118] sm:$0xff]  ;;  %v7660_v15 = vpack.c.bf16 %v378_v12, %v356_v11  ;;  %v52_v17 = vld [vmem:[%s10588_s0 + $0x60] sm:$0xff] }
  0x81   :  { %7629 = vmatpush1.bf16.msra.mxu0 %v7628_v29  ;;  %v7694_v16 = vpack.c.bf16 %v75_v14, %v53_v13  ;;  %v74_v18 = vld [vmem:[%s10588_s0 + $0x110] sm:$0xff]  ;;  %v97_v19 = vld [vmem:[%s10588_s0 + $0x1c8] sm:$0xff]  ;;  %v119_v20 = vld [vmem:[%s10588_s0 + $0x278] sm:$0xff] }
  0x82   :  { %7631 = vmatprep.subr.bf16.mxu0 %v7630_v30  ;;  %v7696_v21 = vpack.c.bf16 %v74_v18, %v52_v17  ;;  %v7698_v22 = vpack.c.bf16 %v119_v20, %v97_v19  ;;  %v96_v23 = vld [vmem:[%s10588_s0 + $0x1c0] sm:$0xff]  ;;  %v118_v24 = vld [vmem:[%s10588_s0 + $0x270] sm:$0xff]  ;;  %v141_v25 = vld [vmem:[%s10588_s0 + $0x328] sm:$0xff] }
  0x83   :  { %v163_v26 = vld [vmem:[%s10588_s0 + $0x3d8] sm:$0xff]  ;;  %v7700_v27 = vpack.c.bf16 %v118_v24, %v96_v23  ;;  %v140_v29 = vld [vmem:[%s10588_s0 + $0x320] sm:$0xff]  ;;  %v162_v30 = vld [vmem:[%s10588_s0 + $0x3d0] sm:$0xff] }
  0x84   :  { %676 = vmatmul.mubr.f32.vlgmr.msra.gmra.mrb[6].mxu0 %v8459_v37  ;;  %v7702_v28 = vpack.c.bf16 %v163_v26, %v141_v25  ;;  %v185_v31 = vld [vmem:[%s10588_s0 + $0x488] sm:$0xff]  ;;  %v207_v32 = vld [vmem:[%s10588_s0 + $0x538] sm:$0xff]  ;;  %v7704_v33 = vpack.c.bf16 %v162_v30, %v140_v29  ;;  %v188_v20 = vld [vmem:[%s10588_s0 + $0x4a0] sm:$0xff] }
  0x85   :  { %7633 = vmatpush1.bf16.msra.mxu0 %v7632_v35  ;;  %746 = vmatprep.mubr.f32.mxu0 %v8157_v7  ;;  %v7706_v34 = vpack.c.bf16 %v207_v32, %v185_v31  ;;  %v184_v35 = vld [vmem:[%s10588_s0 + $0x480] sm:$0xff]  ;;  %v229_v38 = vld [vmem:[%s10588_s0 + $0x5e8] sm:$0xff]  ;;  %v251_v39 = vld [vmem:[%s10588_s0 + $0x698] sm:$0xff] }
  0x86   :  { %7635 = vmatprep.subr.bf16.mxu0 %v7634_v36  ;;  %v206_v36 = vld [vmem:[%s10588_s0 + $0x530] sm:$0xff]  ;;  %v7710_v41 = vpack.c.bf16 %v251_v39, %v229_v38  ;;  %v273_v44 = vld [vmem:[%s10588_s0 + $0x748] sm:$0xff]  ;;  %v295_v45 = vld [vmem:[%s10588_s0 + $0x7f8] sm:$0xff] }
  0x87   :  { %v7708_v40 = vpack.c.bf16 %v206_v36, %v184_v35  ;;  %v7714_v47 = vpack.c.bf16 %v295_v45, %v273_v44  ;;  %v317_v50 = vld [vmem:[%s10588_s0 + $0x8a8] sm:$0xff]  ;;  %v339_v51 = vld [vmem:[%s10588_s0 + $0x958] sm:$0xff]  ;;  %v232_v26 = vld [vmem:[%s10588_s0 + $0x600] sm:$0xff] }
  0x88   :  { %v7718_v53 = vpack.c.bf16 %v339_v51, %v317_v50  ;;  %v361_v56 = vld [vmem:[%s10588_s0 + $0xa08] sm:$0xff]  ;;  %v383_v57 = vld [vmem:[%s10588_s0 + $0xab8] sm:$0xff]  ;;  %v276_v32 = vld [vmem:[%s10588_s0 + $0x760] sm:$0xff] }
  0x89   :  { %7637 = vmatpush1.bf16.msra.mxu0 %v7636_v42  ;;  %v228_v42 = vld [vmem:[%s10588_s0 + $0x5e0] sm:$0xff]  ;;  %v7722_v59 = vpack.c.bf16 %v383_v57, %v361_v56  ;;  %v57_v62 = vld [vmem:[%s10588_s0 + $0x88] sm:$0xff]  ;;  %v79_v63 = vld [vmem:[%s10588_s0 + $0x138] sm:$0xff] }
  0x8a   :  { %7639 = vmatprep.subr.bf16.mxu0 %v7638_v43  ;;  %v250_v43 = vld [vmem:[%s10588_s0 + $0x690] sm:$0xff]  ;;  %v7758_v1 = vpack.c.bf16 %v79_v63, %v57_v62  ;;  %v101_v4 = vld [vmem:[%s10588_s0 + $0x1e8] sm:$0xff]  ;;  %v123_v5 = vld [vmem:[%s10588_s0 + $0x298] sm:$0xff] }
  0x8b   :  { %v7712_v46 = vpack.c.bf16 %v250_v43, %v228_v42  ;;  %v7762_v8 = vpack.c.bf16 %v123_v5, %v101_v4  ;;  %v145_v11 = vld [vmem:[%s10588_s0 + $0x348] sm:$0xff]  ;;  %v167_v12 = vld [vmem:[%s10588_s0 + $0x3f8] sm:$0xff]  ;;  %v320_v39 = vld [vmem:[%s10588_s0 + $0x8c0] sm:$0xff] }
  0x8c   :  { %v7766_v14 = vpack.c.bf16 %v167_v12, %v145_v11  ;;  %v189_v17 = vld [vmem:[%s10588_s0 + $0x4a8] sm:$0xff]  ;;  %v255_v23 = vld [vmem:[%s10588_s0 + $0x6b8] sm:$0xff]  ;;  %v364_v45 = vld [vmem:[%s10588_s0 + $0xa20] sm:$0xff] }
  0x8d   :  { %7641 = vmatpush1.bf16.msra.mxu0 %v7640_v48  ;;  %v272_v48 = vld [vmem:[%s10588_s0 + $0x740] sm:$0xff]  ;;  %v299_v29 = vld [vmem:[%s10588_s0 + $0x818] sm:$0xff] }
  0x8e   :  { %7643 = vmatprep.subr.bf16.mxu0 %v7642_v49  ;;  %v294_v49 = vld [vmem:[%s10588_s0 + $0x7f0] sm:$0xff]  ;;  %v343_v35 = vld [vmem:[%s10588_s0 + $0x978] sm:$0xff]  ;;  %v60_v51 = vld [vmem:[%s10588_s0 + $0xa0] sm:$0xff] }
  0x8f   :  { %v7716_v52 = vpack.c.bf16 %v294_v49, %v272_v48  ;;  %v387_v42 = vld [vmem:[%s10588_s0 + $0xad8] sm:$0xff]  ;;  %v104_v57 = vld [vmem:[%s10588_s0 + $0x200] sm:$0xff] }
  0x90   :  { %v83_v48 = vld [vmem:[%s10588_s0 + $0x158] sm:$0xff] }
  0x91   :  { %7645 = vmatpush1.bf16.msra.mxu0 %v7644_v54  ;;  %v316_v54 = vld [vmem:[%s10588_s0 + $0x8a0] sm:$0xff] }
  0x92   :  { %7647 = vmatprep.subr.bf16.mxu0 %v7646_v55  ;;  %v338_v55 = vld [vmem:[%s10588_s0 + $0x950] sm:$0xff] }
  0x93   :  { %v7720_v58 = vpack.c.bf16 %v338_v55, %v316_v54  ;;  %v127_v54 = vld [vmem:[%s10588_s0 + $0x2b8] sm:$0xff] }
  0x95   :  { %7649 = vmatpush1.bf16.msra.mxu0 %v7648_v60  ;;  %v360_v60 = vld [vmem:[%s10588_s0 + $0xa00] sm:$0xff] }
  0x96   :  { %7651 = vmatprep.subr.bf16.mxu0 %v7650_v61  ;;  %v382_v61 = vld [vmem:[%s10588_s0 + $0xab0] sm:$0xff] }
  0x97   :  { %v7724_v0 = vpack.c.bf16 %v382_v61, %v360_v60  ;;  %v171_v60 = vld [vmem:[%s10588_s0 + $0x418] sm:$0xff]  ;;  %v8129_v61 = vld [vmem:[%s10589_s1] sm:$0xff]  ;;  %s8180_s1 = smov 4  }
  0x99   :  { %7653 = vmatpush1.bf16.msra.mxu0 %v7652_v2  ;;  %v56_v2 = vld [vmem:[%s10588_s0 + $0x80] sm:$0xff] }
  0x9a   :  { %7655 = vmatprep.subr.bf16.mxu0 %v7654_v3  ;;  %v78_v3 = vld [vmem:[%s10588_s0 + $0x130] sm:$0xff] }
  0x9b   :  { %v7760_v6 = vpack.c.bf16 %v78_v3, %v56_v2  ;;  %v193_v2 = vld [vmem:[%s10588_s0 + $0x4c8] sm:$0xff]  ;;  %v215_v3 = vld [vmem:[%s10588_s0 + $0x578] sm:$0xff] }
  0x9c   :  { %v7834_v5 = vpack.c.bf16 %v215_v3, %v193_v2 }
  0x9d   :  { %7657 = vmatpush1.bf16.msra.mxu0 %v7656_v9  ;;  %v100_v9 = vld [vmem:[%s10588_s0 + $0x1e0] sm:$0xff] }
  0x9e   :  { %7659 = vmatprep.subr.bf16.mxu0 %v7658_v10  ;;  %v122_v10 = vld [vmem:[%s10588_s0 + $0x290] sm:$0xff] }
  0x9f   :  { %v7764_v13 = vpack.c.bf16 %v122_v10, %v100_v9  ;;  %v237_v9 = vld [vmem:[%s10588_s0 + $0x628] sm:$0xff]  ;;  %v259_v10 = vld [vmem:[%s10588_s0 + $0x6d8] sm:$0xff] }
  0xa0   :  { %v7838_v12 = vpack.c.bf16 %v259_v10, %v237_v9 }
  0xa1   :  { %7661 = vmatpush1.bf16.msra.mxu0 %v7660_v15  ;;  %v144_v15 = vld [vmem:[%s10588_s0 + $0x340] sm:$0xff] }
  0xa2   :  { %7695 = vmatprep.subr.bf16.mxu0 %v7694_v16  ;;  %v166_v16 = vld [vmem:[%s10588_s0 + $0x3f0] sm:$0xff] }
  0xa3   :  { %v7768_v18 = vpack.c.bf16 %v166_v16, %v144_v15  ;;  %v281_v15 = vld [vmem:[%s10588_s0 + $0x788] sm:$0xff]  ;;  %v303_v16 = vld [vmem:[%s10588_s0 + $0x838] sm:$0xff] }
  0xa4   :  { %747 = vmatmul.mubr.f32.vlgmr.msra.gmra.mrb[8].mxu0 %v8459_v37 }
  0xa5   :  { %7697 = vmatpush1.bf16.msra.mxu0 %v7696_v21  ;;  %888 = vmatprep.mubr.f32.mxu0 %v8157_v7  ;;  %v210_v21 = vld [vmem:[%s10588_s0 + $0x550] sm:$0xff] }
  0xa6   :  { %7699 = vmatprep.subr.bf16.mxu0 %v7698_v22  ;;  %v233_v22 = vld [vmem:[%s10588_s0 + $0x608] sm:$0xff]  ;;  %v7772_v24 = vpack.c.bf16 %v210_v21, %v188_v20  ;;  %v347_v21 = vld [vmem:[%s10588_s0 + $0x998] sm:$0xff] }
  0xa7   :  { %v7774_v25 = vpack.c.bf16 %v255_v23, %v233_v22  ;;  %v325_v20 = vld [vmem:[%s10588_s0 + $0x8e8] sm:$0xff] }
  0xa8   :  { %v7846_v23 = vpack.c.bf16 %v347_v21, %v325_v20 }
  0xa9   :  { %7701 = vmatpush1.bf16.msra.mxu0 %v7700_v27  ;;  %v254_v27 = vld [vmem:[%s10588_s0 + $0x6b0] sm:$0xff] }
  0xaa   :  { %7703 = vmatprep.subr.bf16.mxu0 %v7702_v28  ;;  %v277_v28 = vld [vmem:[%s10588_s0 + $0x768] sm:$0xff]  ;;  %v7776_v30 = vpack.c.bf16 %v254_v27, %v232_v26 }
  0xab   :  { %v7778_v31 = vpack.c.bf16 %v299_v29, %v277_v28  ;;  %v369_v27 = vld [vmem:[%s10588_s0 + $0xa48] sm:$0xff]  ;;  %v391_v28 = vld [vmem:[%s10588_s0 + $0xaf8] sm:$0xff] }
  0xad   :  { %7705 = vmatpush1.bf16.msra.mxu0 %v7704_v33  ;;  %v298_v33 = vld [vmem:[%s10588_s0 + $0x810] sm:$0xff] }
  0xae   :  { %7707 = vmatprep.subr.bf16.mxu0 %v7706_v34  ;;  %v321_v34 = vld [vmem:[%s10588_s0 + $0x8c8] sm:$0xff]  ;;  %v7780_v36 = vpack.c.bf16 %v298_v33, %v276_v32  ;;  %v368_v32 = vld [vmem:[%s10588_s0 + $0xa40] sm:$0xff]  ;;  %v390_v33 = vld [vmem:[%s10588_s0 + $0xaf0] sm:$0xff] }
  0xaf   :  { %v7782_v38 = vpack.c.bf16 %v343_v35, %v321_v34  ;;  %v7852_v34 = vpack.c.bf16 %v390_v33, %v368_v32 }
  0xb1   :  { %7709 = vmatpush1.bf16.msra.mxu0 %v7708_v40  ;;  %v342_v40 = vld [vmem:[%s10588_s0 + $0x970] sm:$0xff] }
  0xb2   :  { %7711 = vmatprep.subr.bf16.mxu0 %v7710_v41  ;;  %v365_v41 = vld [vmem:[%s10588_s0 + $0xa28] sm:$0xff]  ;;  %v7784_v43 = vpack.c.bf16 %v342_v40, %v320_v39  ;;  %v9341_v35 = vpop.permute.xlu0 %395 }
  0xb3   :  { %v7786_v44 = vpack.c.bf16 %v387_v42, %v365_v41 }
  0xb5   :  { %7713 = vmatpush1.bf16.msra.mxu0 %v7712_v46  ;;  %v386_v46 = vld [vmem:[%s10588_s0 + $0xad0] sm:$0xff] }
  0xb6   :  { %7715 = vmatprep.subr.bf16.mxu0 %v7714_v47  ;;  %v61_v47 = vld [vmem:[%s10588_s0 + $0xa8] sm:$0xff]  ;;  %v7788_v49 = vpack.c.bf16 %v386_v46, %v364_v45 }
  0xb7   :  { %v7822_v50 = vpack.c.bf16 %v83_v48, %v61_v47 }
  0xb9   :  { %7717 = vmatpush1.bf16.msra.mxu0 %v7716_v52  ;;  %v82_v52 = vld [vmem:[%s10588_s0 + $0x150] sm:$0xff] }
  0xba   :  { %7719 = vmatprep.subr.bf16.mxu0 %v7718_v53  ;;  %v105_v53 = vld [vmem:[%s10588_s0 + $0x208] sm:$0xff]  ;;  %v7824_v55 = vpack.c.bf16 %v82_v52, %v60_v51 }
  0xbb   :  { %v7826_v56 = vpack.c.bf16 %v127_v54, %v105_v53 }
  0xbd   :  { %7721 = vmatpush1.bf16.msra.mxu0 %v7720_v58  ;;  %v126_v58 = vld [vmem:[%s10588_s0 + $0x2b0] sm:$0xff] }
  0xbe   :  { %7723 = vmatprep.subr.bf16.mxu0 %v7722_v59  ;;  %v149_v59 = vld [vmem:[%s10588_s0 + $0x368] sm:$0xff]  ;;  %v7828_v62 = vpack.c.bf16 %v126_v58, %v104_v57 }
  0xbf   :  { %v7830_v63 = vpack.c.bf16 %v171_v60, %v149_v59 }
  0xc1   :  { %7725 = vmatpush1.bf16.msra.mxu0 %v7724_v0  ;;  %v148_v0 = vld [vmem:[%s10588_s0 + $0x360] sm:$0xff] }
  0xc2   :  { %7759 = vmatprep.subr.bf16.mxu0 %v7758_v1  ;;  %v170_v1 = vld [vmem:[%s10588_s0 + $0x410] sm:$0xff] }
  0xc3   :  { %v7832_v4 = vpack.c.bf16 %v170_v1, %v148_v0 }
  0xc4   :  { %889 = vmatmul.mubr.f32.vlgmr.msra.gmra.mrb[10].mxu0 %v8459_v37  ;;  %v211_v37 = vld [vmem:[%s10588_s0 + $0x558] sm:$0xff] }
  0xc5   :  { %7761 = vmatpush1.bf16.msra.mxu0 %v7760_v6  ;;  %1030 = vmatprep.mubr.f32.mxu0 %v8157_v7  ;;  %v7770_v19 = vpack.c.bf16 %v211_v37, %v189_v17  ;;  %v192_v6 = vld [vmem:[%s10588_s0 + $0x4c0] sm:$0xff]  ;;  %v7842_v37 = vpack.c.bf16 %v303_v16, %v281_v15 }
  0xc6   :  { %7763 = vmatprep.subr.bf16.mxu0 %v7762_v8  ;;  %v214_v8 = vld [vmem:[%s10588_s0 + $0x570] sm:$0xff] }
  0xc7   :  { %v7836_v11 = vpack.c.bf16 %v214_v8, %v192_v6 }
  0xc9   :  { %7765 = vmatpush1.bf16.msra.mxu0 %v7764_v13  ;;  %v236_v13 = vld [vmem:[%s10588_s0 + $0x620] sm:$0xff] }
  0xca   :  { %7767 = vmatprep.subr.bf16.mxu0 %v7766_v14  ;;  %v258_v14 = vld [vmem:[%s10588_s0 + $0x6d0] sm:$0xff] }
  0xcb   :  { %v7840_v17 = vpack.c.bf16 %v258_v14, %v236_v13 }
  0xcd   :  { %7769 = vmatpush1.bf16.msra.mxu0 %v7768_v18  ;;  %v280_v18 = vld [vmem:[%s10588_s0 + $0x780] sm:$0xff] }
  0xce   :  { %7771 = vmatprep.subr.bf16.mxu0 %v7770_v19  ;;  %v302_v19 = vld [vmem:[%s10588_s0 + $0x830] sm:$0xff] }
  0xcf   :  { %v7844_v22 = vpack.c.bf16 %v302_v19, %v280_v18 }
  0xd1   :  { %7773 = vmatpush1.bf16.msra.mxu0 %v7772_v24  ;;  %v324_v24 = vld [vmem:[%s10588_s0 + $0x8e0] sm:$0xff] }
  0xd2   :  { %7775 = vmatprep.subr.bf16.mxu0 %v7774_v25  ;;  %v346_v25 = vld [vmem:[%s10588_s0 + $0x990] sm:$0xff]  ;;  %s8159_s0 = smov 98  }
  0xd5   :  { %7777 = vmatpush1.bf16.msra.mxu0 %v7776_v30  ;;  %v7848_v30 = vpack.c.bf16 %v346_v25, %v324_v24 }
  0xd6   :  { %7779 = vmatprep.subr.bf16.mxu0 %v7778_v31  ;;  %v7850_v31 = vpack.c.bf16 %v391_v28, %v369_v27 }
  0xd9   :  { %7781 = vmatpush1.bf16.msra.mxu0 %v7780_v36 }
  0xda   :  { %7783 = vmatprep.subr.bf16.mxu0 %v7782_v38 }
  0xdd   :  { %7785 = vmatpush1.bf16.msra.mxu0 %v7784_v43 }
  0xde   :  { %7787 = vmatprep.subr.bf16.mxu0 %v7786_v44 }
  0xe1   :  { %7789 = vmatpush1.bf16.msra.mxu0 %v7788_v49 }
  0xe2   :  { %7823 = vmatprep.subr.bf16.mxu0 %v7822_v50 }
  0xe4   :  { %1031 = vmatmul.mubr.f32.vlgmr.msra.gmra.mrb[12].mxu0 %v8129_v61 }
  0xe5   :  { %7825 = vmatpush1.bf16.msra.mxu0 %v7824_v55  ;;  %1172 = vmatprep.mubr.f32.mxu0 %v8157_v7 }
  0xe6   :  { %7827 = vmatprep.subr.bf16.mxu0 %v7826_v56 }
  0xe9   :  { %7829 = vmatpush1.bf16.msra.mxu0 %v7828_v62 }
  0xea   :  { %7831 = vmatprep.subr.bf16.mxu0 %v7830_v63 }
  0xed   :  { %7833 = vmatpush1.bf16.msra.mxu0 %v7832_v4 }
  0xee   :  { %7835 = vmatprep.subr.bf16.mxu0 %v7834_v5 }
  0xf1   :  { %7837 = vmatpush1.bf16.msra.mxu0 %v7836_v11 }
  0xf2   :  { %7839 = vmatprep.subr.bf16.mxu0 %v7838_v12 }
  0xf5   :  { %7841 = vmatpush1.bf16.msra.mxu0 %v7840_v17 }
  0xf6   :  { %7843 = vmatprep.subr.bf16.mxu0 %v7842_v37 }
  0xf7   :  { %v9325_v26 = vpop.f32.mrb[0].mxu0 }
  0xf8   :  { %v9333_v29 = vpop.f32.mrb[1].mxu0 }
  0xf9   :  { %7845 = vmatpush1.bf16.msra.mxu0 %v7844_v22 }
  0xfa   :  { %7847 = vmatprep.subr.bf16.mxu0 %v7846_v23 }
  0xfd   :  { %7849 = vmatpush1.bf16.msra.mxu0 %v7848_v30  ;;  %v819_v36 = vpop.f32.mrb[0].mxu1 }
  0xfe   :  { %7851 = vmatprep.subr.bf16.mxu0 %v7850_v31  ;;  %v9344_v38 = vadd.f32 %v819_v36, %v9341_v35  ;;  %v821_v39 = vpop.f32.mrb[1].mxu1 }
  0xff   :  { %v9347_v40 = vadd.f32 %v821_v39, %v9341_v35 }
 0x100   :  { %v1189_v41 = vmax.f32 %v9344_v38, 0.0 }
 0x101   :  { %7853 = vmatpush1.bf16.msra.mxu0 %v7852_v34  ;;  %v1190_v42 = vmax.f32 %v9347_v40, 0.0 }
 0x102   :  { %1296 = vrot.lane.b32.xlu1 %v1189_v41, %s8159_s0 }
 0x104   :  { %1173 = vmatmul.mubr.f32.vlgmr.msra.gmra.mrb[14].mxu0 %v8129_v61 }
 0x105   :  { %1554 = vmatprep.mubr.f32.mxu0 %v8157_v7 }
 0x106   :  { %1298 = vrot.lane.b32.xlu1 %v1190_v42, %s8159_s0 }
 0x117   :  { %v535_v43 = vpop.f32.mrb[2].mxu0 }
 0x118   :  { %v537_v44 = vpop.f32.mrb[3].mxu0  ;;  %v9414_v23 = vadd.f32 %v535_v43, %v9341_v35 }
 0x119   :  { %v538_v24 = vadd.f32 %v537_v44, %v9341_v35 }
 0x11a   :  { %v1181_v25 = vmax.f32 %v9414_v23, 0.0 }
 0x11b   :  { %v9423_v28 = vmax.f32 %v538_v24, 0.0 }
 0x11d   :  { %v961_v45 = vpop.f32.mrb[2].mxu1 }
 0x11e   :  { %v962_v46 = vadd.f32 %v961_v45, %v9341_v35  ;;  %v963_v47 = vpop.f32.mrb[3].mxu1 }
 0x11f   :  { %v9399_v20 = vadd.f32 %v963_v47, %v9341_v35 }
 0x120   :  { %v9357_v48 = vmax.f32 %v962_v46, 0.0 }
 0x121   :  { %v1194_v22 = vmax.f32 %v9399_v20, 0.0  ;;  %v7005_v20 = vld [vmem:[%s10591_s3 + $0x10] sm:$0xff] }
 0x122   :  { %1324 = vrot.lane.b32.xlu0 %v9357_v48, %s8160_s20  ;;  %7321 = vmatprep.mubr.msk.f32.mxu1 %vm1483_vm2, %v7005_v20 }
 0x137   :  { %v9361_v49 = vpop.f32.mrb[4].mxu0 }
 0x138   :  { %v608_v50 = vpop.f32.mrb[5].mxu0 }
 0x139   :  { %v609_v27 = vadd.f32 %v608_v50, %v9341_v35 }
 0x13b   :  { %v1184_v31 = vmax.f32 %v609_v27, 0.0 }
 0x13d   :  { %v1103_v51 = vpop.f32.mrb[4].mxu1 }
 0x13e   :  { %v1104_v52 = vadd.f32 %v1103_v51, %v9341_v35  ;;  %v1105_v53 = vpop.f32.mrb[5].mxu1 }
 0x13f   :  { %v1106_v54 = vadd.f32 %v1105_v53, %v9341_v35 }
 0x140   :  { %v9365_v55 = vmax.f32 %v1104_v52, 0.0 }
 0x141   :  { %v1198_v56 = vmax.f32 %v1106_v54, 0.0 }
 0x142   :  { %1377 = vrot.lane.b32.xlu1 %v9365_v55, %s8159_s0 }
 0x143   :  { %1403 = vrot.lane.b32.xlu0 %v1198_v56, %s8160_s20 }
 0x157   :  { %v677_v57 = vpop.f32.mrb[6].mxu0 }
 0x158   :  { %v679_v58 = vpop.f32.mrb[7].mxu0  ;;  %v678_v30 = vadd.f32 %v677_v57, %v9341_v35 }
 0x159   :  { %v680_v37 = vadd.f32 %v679_v58, %v9341_v35 }
 0x15a   :  { %v1185_v32 = vmax.f32 %v678_v30, 0.0 }
 0x15b   :  { %v9401_v21 = vmax.f32 %v680_v37, 0.0 }
 0x174   :  { %v1297_v34 = vpop.permute.xlu1 %1296 }
 0x177   :  { %v748_v59 = vpop.f32.mrb[8].mxu0 }
 0x178   :  { %v750_v60 = vpop.f32.mrb[9].mxu0  ;;  %v9392_v16 = vadd.f32 %v748_v59, %v9341_v35  ;;  %v1299_v39 = vpop.permute.xlu1 %1298 }
 0x179   :  { %v9371_v61 = vadd.f32 %v750_v60, %v9341_v35  ;;  %v1303_v43 = vsel %vm1239_vm0, %v1297_v34, %v1299_v39 }
 0x17a   :  { %v1187_v19 = vmax.f32 %v9392_v16, 0.0  ;;  %v1311_v46 = vmax.f32 %v1189_v41, %v1303_v43 }
 0x17b   :  { %v1188_v62 = vmax.f32 %v9371_v61, 0.0 }
 0x17d   :  { %1294 = vrot.lane.b32.xlu0 %v1188_v62, %s8159_s0 }
 0x194   :  { %v1325_v33 = vpop.permute.xlu0 %1324 }
 0x197   :  { %v890_v63 = vpop.f32.mrb[10].mxu0 }
 0x198   :  { %v891_v0 = vadd.f32 %v890_v63, %v9341_v35  ;;  %v892_v1 = vpop.f32.mrb[11].mxu0  ;;  %v9451_v63 = vadd.f32 %v9333_v29, %v9341_v35  ;;  %v607_v29 = vadd.f32 %v9361_v49, %v9341_v35 }
 0x199   :  { %v893_v2 = vadd.f32 %v892_v1, %v9341_v35 }
 0x19a   :  { %v1191_v3 = vmax.f32 %v891_v0, 0.0 }
 0x19b   :  { %v1192_v4 = vmax.f32 %v893_v2, 0.0 }
 0x19c   :  { %1320 = vrot.lane.b32.xlu0 %v1191_v3, %s8160_s20  ;;  %v9457_v3 = vadd.f32 %v9325_v26, %v9341_v35 }
 0x19d   :  { %1322 = vrot.lane.b32.xlu1 %v1192_v4, %s8160_s20 }
 0x1b5   :  { %v1404_v36 = vpop.permute.xlu0 %1403 }
 0x1b7   :  { %v1032_v5 = vpop.f32.mrb[12].mxu0 }
 0x1b8   :  { %v9380_v6 = vadd.f32 %v1032_v5, %v9341_v35  ;;  %v1034_v8 = vpop.f32.mrb[13].mxu0 }
 0x1b9   :  { %v9383_v9 = vadd.f32 %v1034_v8, %v9341_v35  ;;  %v1179_v8 = vmax.f32 %v9457_v3, 0.0 }
 0x1ba   :  { %v1195_v10 = vmax.f32 %v9380_v6, 0.0  ;;  %v1180_v6 = vmax.f32 %v9451_v63, 0.0 }
 0x1bb   :  { %v1196_v11 = vmax.f32 %v9383_v9, 0.0 }
 0x1bc   :  { %1373 = vrot.lane.b32.xlu1 %v1195_v10, %s8159_s0 }
 0x1bd   :  { %1375 = vrot.lane.b32.xlu0 %v1196_v11, %s8159_s0 }
 0x1d7   :  { %v1174_v12 = vpop.f32.mrb[14].mxu0 }
 0x1d8   :  { %v1175_v13 = vadd.f32 %v1174_v12, %v9341_v35  ;;  %v1176_v14 = vpop.f32.mrb[15].mxu0  ;;  %v1183_v12 = vmax.f32 %v607_v29, 0.0 }
 0x1d9   :  { %v1177_v15 = vadd.f32 %v1176_v14, %v9341_v35 }
 0x1da   :  { %v1199_v17 = vmax.f32 %v1175_v13, 0.0 }
 0x1db   :  { %v1200_v18 = vmax.f32 %v1177_v15, 0.0 }
 0x1dc   :  { %1405 = vrot.lane.b32.xlu1 %v1199_v17, %s8160_s20 }
 0x1dd   :  { %1407 = vrot.lane.b32.xlu0 %v1200_v18, %s8160_s20 }
 0x1e0   :  { %1292 = vrot.lane.b32.xlu1 %v1187_v19, %s8159_s0 }
 0x1e1   :  { %1290 = vrot.lane.b32.xlu0 %v9401_v21, %s8159_s0 }
 0x1e4   :  { %1318 = vrot.lane.b32.xlu1 %v1190_v42, %s8160_s20  ;;  %v9433_v42 = vpop.permute.xlu1 %1377 }
 0x1e5   :  { %1371 = vrot.lane.b32.xlu0 %v1194_v22, %s8159_s0  ;;  %v1392_v3 = vmax.f32 %v9365_v55, %v9433_v42 }
 0x1e8   :  { %1369 = vrot.lane.b32.xlu1 %v9357_v48, %s8159_s0 }
 0x1e9   :  { %1401 = vrot.lane.b32.xlu0 %v9365_v55, %s8160_s20 }
 0x1ec   :  { %1235 = vrot.lane.b32.xlu1 %v1181_v25, %s8159_s0 }
 0x1ed   :  { %1237 = vrot.lane.b32.xlu0 %v9423_v28, %s8159_s0 }
 0x1ef   :  { %v1295_v40 = vpop.permute.xlu0 %1294 }
 0x1f0   :  { %1263 = vrot.lane.b32.xlu1 %v1184_v31, %s8160_s20  ;;  %v1302_v44 = vsel %vm1239_vm0, %v1295_v40, %v1297_v34 }
 0x1f1   :  { %1265 = vrot.lane.b32.xlu0 %v1185_v32, %s8160_s20  ;;  %v1310_v47 = vmax.f32 %v1188_v62, %v1302_v44 }
 0x20e   :  { %v1321_v45 = vpop.permute.xlu0 %1320 }
 0x20f   :  { %v1323_v50 = vpop.permute.xlu1 %1322 }
 0x210   :  { %v1328_v51 = vsel %vm1269_vm1, %v1323_v50, %v1325_v33  ;;  %v1327_v52 = vsel %vm1269_vm1, %v1321_v45, %v1323_v50 }
 0x211   :  { %v1336_v53 = vmax.f32 %v1311_v46, %v1328_v51  ;;  %v1335_v54 = vmax.f32 %v1310_v47, %v1327_v52 }
 0x213   :  { %1347 = vrot.lane.b32.xlu0 %v1336_v53, %s8161_s21  ;;  %1345 = vrot.lane.b32.xlu1 %v1335_v54, %s8161_s21 }
 0x22e   :  { %v1374_v56 = vpop.permute.xlu1 %1373 }
 0x22f   :  { %v1376_v57 = vpop.permute.xlu0 %1375 }
 0x230   :  { %v1381_v58 = vsel %vm1239_vm0, %v1374_v56, %v1376_v57  ;;  %v1382_v38 = vsel %vm1239_vm0, %v1376_v57, %v9433_v42  ;;  %v1460_v42 = vld [vmem:[%s10591_s3] sm:$0xff] }
 0x231   :  { %v1390_v41 = vmax.f32 %v1195_v10, %v1381_v58  ;;  %v1391_v60 = vmax.f32 %v1196_v11, %v1382_v38 }
 0x24e   :  { %v1406_v59 = vpop.permute.xlu1 %1405 }
 0x24f   :  { %v1410_v61 = vsel %vm1269_vm1, %v1404_v36, %v1406_v59  ;;  %v9447_v62 = vpop.permute.xlu0 %1407 }
 0x250   :  { %v1411_v0 = vsel %vm1269_vm1, %v1406_v59, %v9447_v62  ;;  %v1419_v1 = vmax.f32 %v1390_v41, %v1410_v61 }
 0x251   :  { %v1420_v2 = vmax.f32 %v1391_v60, %v1411_v0 }
 0x252   :  { %v1293_v4 = vpop.permute.xlu1 %1292  ;;  %1431 = vrot.lane.b32.xlu1 %v1419_v1, %s8162_s22 }
 0x253   :  { %v1291_v5 = vpop.permute.xlu0 %1290  ;;  %1433 = vrot.lane.b32.xlu0 %v1420_v2, %s8162_s22  ;;  %v1301_v26 = vsel %vm1239_vm0, %v1293_v4, %v1295_v40 }
 0x254   :  { %v1300_v9 = vsel %vm1239_vm0, %v1291_v5, %v1293_v4  ;;  %v1309_v49 = vmax.f32 %v1187_v19, %v1301_v26 }
 0x255   :  { %v1308_v13 = vmax.f32 %v9401_v21, %v1300_v9 }
 0x256   :  { %v1319_v10 = vpop.permute.xlu1 %1318  ;;  %1233 = vrot.lane.b32.xlu1 %v1180_v6, %s8159_s0 }
 0x257   :  { %v1372_v11 = vpop.permute.xlu0 %1371  ;;  %1231 = vrot.lane.b32.xlu0 %v1179_v8, %s8159_s0  ;;  %v1326_v35 = vsel %vm1269_vm1, %v1319_v10, %v1321_v45  ;;  %v1333_v24 = vmax.f32 %v1308_v13, %v1319_v10 }
 0x258   :  { %v1380_v15 = vsel %vm1239_vm0, %v1372_v11, %v1374_v56  ;;  %v1334_v18 = vmax.f32 %v1309_v49, %v1326_v35 }
 0x259   :  { %v1389_v16 = vmax.f32 %v1194_v22, %v1380_v15 }
 0x25a   :  { %v1370_v14 = vpop.permute.xlu1 %1369  ;;  %1261 = vrot.lane.b32.xlu1 %v1183_v12, %s8160_s20 }
 0x25b   :  { %v1379_v17 = vsel %vm1239_vm0, %v1370_v14, %v1372_v11  ;;  %v1402_v37 = vpop.permute.xlu0 %1401  ;;  %1259 = vrot.lane.b32.xlu0 %v9423_v28, %s8160_s20 }
 0x25c   :  { %v1388_v27 = vmax.f32 %v9357_v48, %v1379_v17  ;;  %v1409_v30 = vsel %vm1269_vm1, %v1402_v37, %v1404_v36  ;;  %v7015_v17 = vld [vmem:[%s10591_s3 + $0x20] sm:$0xff] }
 0x25d   :  { %v1418_v19 = vmax.f32 %v1389_v16, %v1409_v30 }
 0x25e   :  { %1343 = vrot.lane.b32.xlu1 %v1334_v18, %s8161_s21  ;;  %v1417_v31 = vmax.f32 %v1388_v27, %v1402_v37  ;;  %v1236_v32 = vpop.permute.xlu1 %1235  ;;  %v7016_v27 = vld [vmem:[%s10591_s3 + $0x28] sm:$0xff] }
 0x25f   :  { %1341 = vrot.lane.b32.xlu0 %v1333_v24, %s8161_s21  ;;  %v9490_v33 = vpop.permute.xlu0 %1237 }
 0x260   :  { %v1242_v22 = vsel %vm1239_vm0, %v1236_v32, %v9490_v33 }
 0x261   :  { %v1249_v43 = vmax.f32 %v1181_v25, %v1242_v22 }
 0x262   :  { %1429 = vrot.lane.b32.xlu1 %v1418_v19, %s8162_s22  ;;  %v1264_v34 = vpop.permute.xlu1 %1263 }
 0x263   :  { %1427 = vrot.lane.b32.xlu0 %v1417_v31, %s8162_s22  ;;  %v9492_v48 = vpop.permute.xlu0 %1265 }
 0x264   :  { %v1272_v40 = vsel %vm1269_vm1, %v1264_v34, %v9492_v48 }
 0x265   :  { %v1280_v45 = vmax.f32 %v1249_v43, %v1272_v40  ;;  %v7022_v40 = vld [vmem:[%s10591_s3 + $0x38] sm:$0xff] }
 0x285   :  { %v9500_v36 = vpop.permute.xlu0 %1347  ;;  %v1346_v39 = vpop.permute.xlu1 %1345 }
 0x286   :  { %v1352_v44 = vsel %vm1349_vm3, %v1346_v39, %v9500_v36 }
 0x287   :  { %v1359_v47 = vmax.f32 %v1280_v45, %v1352_v44 }
 0x2c4   :  { %v1432_v46 = vpop.permute.xlu1 %1431 }
 0x2c5   :  { %v9508_v50 = vpop.permute.xlu0 %1433 }
 0x2c6   :  { %v1440_v51 = vsel %vm1437_vm4, %v1432_v46, %v9508_v50 }
 0x2c7   :  { %v9512_v52 = vmax.f32 %v1359_v47, %v1440_v51  ;;  %v7027_v47 = vld [vmem:[%s10591_s3 + $0x40] sm:$0xff] }
 0x2c8   :  { %v1234_v53 = vpop.permute.xlu1 %1233 }
 0x2c9   :  { %1457 = vst [vmem:[#allocation3 + $0x10] sm:$0xff] %v9512_v52  ;;  %v1232_v54 = vpop.permute.xlu0 %1231  ;;  %1475 = vrot.lane.b32.xlu1 %v9512_v52, %s8163_s24  ;;  %v1241_v25 = vsel %vm1239_vm0, %v1234_v53, %v1236_v32  ;;  %v1250_v32 = vmax.f32 %v9423_v28, %v9490_v33 }
 0x2ca   :  { %v1240_v57 = vsel %vm1239_vm0, %v1232_v54, %v1234_v53  ;;  %v1248_v38 = vmax.f32 %v1180_v6, %v1241_v25 }
 0x2cb   :  { %v1247_v60 = vmax.f32 %v1179_v8, %v1240_v57  ;;  %v1421_v8 = vmax.f32 %v1392_v3, %v9447_v62  ;;  %v1461_v62 = vld [vmem:[%s10591_s3 + $0x8] sm:$0xff] }
 0x2cc   :  { %v1262_v23 = vpop.permute.xlu1 %1261 }
 0x2cd   :  { %v1260_v56 = vpop.permute.xlu0 %1259  ;;  %1807 = vrot.lane.b32.xlu1 %v9512_v52, %s8164_s25  ;;  %v1271_v58 = vsel %vm1269_vm1, %v1262_v23, %v1264_v34 }
 0x2ce   :  { %v1270_v41 = vsel %vm1269_vm1, %v1260_v56, %v1262_v23  ;;  %v1279_v1 = vmax.f32 %v1248_v38, %v1271_v58  ;;  %v7028_v23 = vld [vmem:[%s10591_s3 + $0x48] sm:$0xff]  ;;  %v7033_v38 = vld [vmem:[%s10591_s3 + $0x50] sm:$0xff] }
 0x2cf   :  { %v1278_v4 = vmax.f32 %v1247_v60, %v1270_v41 }
 0x2d0   :  { %v1344_v59 = vpop.permute.xlu1 %1343 }
 0x2d1   :  { %v1351_v61 = vsel %vm1349_vm3, %v1344_v59, %v1346_v39  ;;  %v1342_v0 = vpop.permute.xlu0 %1341  ;;  %v7021_v39 = vld [vmem:[%s10591_s3 + $0x30] sm:$0xff] }
 0x2d2   :  { %v1350_v2 = vsel %vm1349_vm3, %v1342_v0, %v1344_v59  ;;  %v1358_v5 = vmax.f32 %v1279_v1, %v1351_v61  ;;  %v7034_v61 = vld [vmem:[%s10591_s3 + $0x58] sm:$0xff] }
 0x2d3   :  { %v1357_v9 = vmax.f32 %v1278_v4, %v1350_v2  ;;  %v5949_v2 = vld [vmem:[%s10592_s4] sm:$0xff] }
 0x2d4   :  { %v1430_v29 = vpop.permute.xlu1 %1429 }
 0x2d5   :  { %v1439_v10 = vsel %vm1437_vm4, %v1430_v29, %v1432_v46  ;;  %v1428_v63 = vpop.permute.xlu0 %1427 }
 0x2d6   :  { %v9530_v6 = vmax.f32 %v1358_v5, %v1439_v10  ;;  %v1438_v26 = vsel %vm1437_vm4, %v1428_v63, %v1430_v29  ;;  %v7039_v5 = vld [vmem:[%s10591_s3 + $0x60] sm:$0xff]  ;;  %v7040_v63 = vld [vmem:[%s10591_s3 + $0x68] sm:$0xff] }
 0x2d7   :  { %v9533_v11 = vmax.f32 %v1357_v9, %v1438_v26 }
 0x2d8   :  { %1456 = vst [vmem:[#allocation3 + $0x8] sm:$0xff] %v9530_v6  ;;  %1984 = vrot.lane.b32.xlu1 %v9530_v6, %s8165_s26  ;;  %1805 = vrot.lane.b32.xlu0 %v9530_v6, %s8164_s25 }
 0x2dc   :  { %1982 = vrot.lane.b32.xlu1 %v9533_v11, %s8165_s26  ;;  %1803 = vrot.lane.b32.xlu0 %v9533_v11, %s8164_s25 }
 0x2e0   :  { %2165 = vrot.lane.b32.xlu1 %v9512_v52, %s8166_s27  ;;  %1986 = vrot.lane.b32.xlu0 %v9512_v52, %s8165_s26  ;;  %s8176_s26 = smov 34  }
 0x2e4   :  { %1267 = vrot.lane.b32.xlu1 %v9401_v21, %s8160_s20  ;;  %2163 = vrot.lane.b32.xlu0 %v9530_v6, %s8166_s27  ;;  %v9609_v21 = vld [vmem:[%s10591_s3 + $0x18] sm:$0xff] }
 0x2e8   :  { %2342 = vrot.lane.b32.xlu1 %v9530_v6, %s8159_s0  ;;  %2161 = vrot.lane.b32.xlu0 %v9533_v11, %s8166_s27 }
 0x2ec   :  { %2340 = vrot.lane.b32.xlu1 %v9533_v11, %s8159_s0  ;;  %1435 = vrot.lane.b32.xlu0 %v1421_v8, %s8162_s22 }
 0x2f0   :  { %2522 = vrot.lane.b32.xlu1 %v9512_v52, %s8167_s28  ;;  %2344 = vrot.lane.b32.xlu0 %v9512_v52, %s8159_s0 }
 0x2f4   :  { %2699 = vrot.lane.b32.xlu1 %v9530_v6, %s8161_s21  ;;  %2520 = vrot.lane.b32.xlu0 %v9530_v6, %s8167_s28 }
 0x2f8   :  { %2697 = vrot.lane.b32.xlu1 %v9533_v11, %s8161_s21  ;;  %2518 = vrot.lane.b32.xlu0 %v9533_v11, %s8167_s28 }
 0x2fc   :  { %2879 = vrot.lane.b32.xlu1 %v9512_v52, %s8168_s29  ;;  %2701 = vrot.lane.b32.xlu0 %v9512_v52, %s8161_s21 }
 0x300   :  { %3056 = vrot.lane.b32.xlu1 %v9530_v6, %s8169_s30  ;;  %2877 = vrot.lane.b32.xlu0 %v9530_v6, %s8168_s29 }
 0x304   :  { %3054 = vrot.lane.b32.xlu1 %v9533_v11, %s8169_s30  ;;  %2875 = vrot.lane.b32.xlu0 %v9533_v11, %s8168_s29  ;;  %s8179_s29 = smov 6  }
 0x308   :  { %3245 = vrot.lane.b32.xlu1 %v9512_v52, %s8170_s12  ;;  %3058 = vrot.lane.b32.xlu0 %v9512_v52, %s8169_s30 }
 0x30c   :  { %3243 = vrot.lane.b32.xlu0 %v9530_v6, %s8170_s12 }
 0x310   :  { %3241 = vrot.lane.b32.xlu0 %v9533_v11, %s8170_s12 }
 0x314   :  { %3425 = vrot.lane.b32.xlu0 %v9530_v6, %s8171_s13 }
 0x318   :  { %3423 = vrot.lane.b32.xlu0 %v9533_v11, %s8171_s13 }
 0x31c   :  { %3606 = vrot.lane.b32.xlu0 %v9530_v6, %s8172_s14 }
 0x320   :  { %3604 = vrot.lane.b32.xlu0 %v9533_v11, %s8172_s14 }
 0x324   :  { %3788 = vrot.lane.b32.xlu0 %v9530_v6, %s8173_s15 }
 0x328   :  { %3786 = vrot.lane.b32.xlu0 %v9533_v11, %s8173_s15 }
 0x32c   :  { %3970 = vrot.lane.b32.xlu0 %v9530_v6, %s8162_s22 }
 0x330   :  { %3968 = vrot.lane.b32.xlu0 %v9533_v11, %s8162_s22 }
 0x334   :  { %4151 = vrot.lane.b32.xlu0 %v9530_v6, %s8174_s16 }
 0x338   :  { %4149 = vrot.lane.b32.xlu0 %v9533_v11, %s8174_s16 }
 0x33b   :  { %v9604_v55 = vpop.permute.xlu1 %1475 }
 0x33c   :  { %7319 = vmatprep.subr.mxu1 %v9604_v55  ;;  %4333 = vrot.lane.b32.xlu0 %v9530_v6, %s8175_s18 }
 0x33d   :  { %7320 = vmatpush3.msra.mxu1 %v9604_v55 }
 0x33e   :  { %7322 = vmatmul.mubr.msk.f32.vlgmr.msra.gmra.mrb[6].mxu1 %vm1483_vm2, %v9609_v21  ;;  %1648 = vmatprep.subr.mxu1 %v9530_v6 }
 0x33f   :  { %1649 = vmatpush1.msra.mxu1 %v9533_v11  ;;  %1712 = vmatprep.mubr.f32.mxu1 %v8157_v7  ;;  %v1808_v12 = vpop.permute.xlu1 %1807 }
 0x340   :  { %4331 = vrot.lane.b32.xlu0 %v9533_v11, %s8175_s18  ;;  %7324 = vmatprep.subr.mxu1 %v9512_v52 }
 0x342   :  { %7011 = vmatmul.mubr.msk.f32.vlgmr.msra.gmra.mrb[8].mxu1 %vm1483_vm2, %v1460_v42 }
 0x343   :  { %7325 = vmatpush3.msra.mxu1 %v9512_v52  ;;  %1718 = vmatprep.mubr.f32.mxu1 %v8157_v7 }
 0x344   :  { %4515 = vrot.lane.b32.xlu0 %v9530_v6, %s8176_s26 }
 0x346   :  { %7012 = vmatmul.mubr.msk.f32.gmra.mrb[10].mxu1 %vm1483_vm2, %v1461_v62 }
 0x347   :  { %7326 = vmatprep.mubr.msk.f32.mxu1 %vm1483_vm2, %v1460_v42  ;;  %v7045_v42 = vld [vmem:[%s10591_s3 + $0x70] sm:$0xff] }
 0x348   :  { %4513 = vrot.lane.b32.xlu0 %v9533_v11, %s8176_s26 }
 0x34a   :  { %v1985_v13 = vpop.permute.xlu1 %1984  ;;  %v1806_v35 = vpop.permute.xlu0 %1805  ;;  %7327 = vmatmul.mubr.msk.f32.vlgmr.msra.gmra.mrb[6].mxu1 %vm1483_vm2, %v1461_v62 }
 0x34b   :  { %v1811_v49 = vsel %vm1809_vm6, %v1806_v35, %v1808_v12  ;;  %1885 = vmatprep.mubr.f32.mxu1 %v8157_v7 }
 0x34c   :  { %4697 = vrot.lane.b32.xlu0 %v9530_v6, %s8160_s20  ;;  %1821 = vmatprep.subr.mxu1 %v1811_v49 }
 0x34e   :  { %v1983_v14 = vpop.permute.xlu1 %1982  ;;  %v1804_v15 = vpop.permute.xlu0 %1803 }
 0x34f   :  { %v1810_v37 = vsel %vm1809_vm6, %v1804_v15, %v1806_v35  ;;  %v1989_v34 = vsel %vm1988_vm7, %v1983_v14, %v1985_v13  ;;  %v7046_v35 = vld [vmem:[%s10591_s3 + $0x78] sm:$0xff] }
 0x350   :  { %4695 = vrot.lane.b32.xlu0 %v9533_v11, %s8160_s20  ;;  %1822 = vmatpush1.msra.mxu1 %v1810_v37 }
 0x351   :  { %7017 = vmatmul.mubr.msk.f32.vlgmr.msra.gmra.mrb[8].mxu1 %vm1483_vm2, %v7015_v17  ;;  %7329 = vmatprep.subr.mxu1 %v1808_v12 }
 0x352   :  { %v2166_v18 = vpop.permute.xlu1 %2165  ;;  %7330 = vmatpush3.msra.mxu1 %v1808_v12  ;;  %v1987_v24 = vpop.permute.xlu0 %1986  ;;  %1891 = vmatprep.mubr.f32.mxu1 %v8157_v7 }
 0x353   :  { %v1990_v30 = vsel %vm1988_vm7, %v1985_v13, %v1987_v24  ;;  %vm4157_vm7 = vcmask 310272  }
 0x354   :  { %4878 = vrot.lane.b32.xlu0 %v9530_v6, %s8177_s17  ;;  %2000 = vmatprep.subr.mxu1 %v1990_v30 }
 0x355   :  { %7018 = vmatmul.mubr.msk.f32.gmra.mrb[10].mxu1 %vm1483_vm2, %v7016_v27 }
 0x356   :  { %v1268_v16 = vpop.permute.xlu1 %1267  ;;  %v2164_v19 = vpop.permute.xlu0 %2163  ;;  %7331 = vmatprep.mubr.msk.f32.mxu1 %vm1483_vm2, %v7015_v17  ;;  %v7051_v17 = vld [vmem:[%s10591_s3 + $0x80] sm:$0xff] }
 0x357   :  { %v1273_v31 = vsel %vm1269_vm1, %v9492_v48, %v1268_v16  ;;  %v2169_v28 = vsel %vm2167_vm8, %v2164_v19, %v2166_v18 }
 0x358   :  { %4876 = vrot.lane.b32.xlu0 %v9533_v11, %s8177_s17  ;;  %v1281_v20 = vmax.f32 %v1250_v32, %v1273_v31  ;;  %v7057_v32 = vld [vmem:[%s10591_s3 + $0x90] sm:$0xff] }
 0x359   :  { %7332 = vmatmul.mubr.msk.f32.vlgmr.msra.gmra.mrb[6].mxu1 %vm1483_vm2, %v7016_v27  ;;  %v7052_v27 = vld [vmem:[%s10591_s3 + $0x88] sm:$0xff] }
 0x35a   :  { %2001 = vmatpush1.msra.mxu1 %v1989_v34  ;;  %v2162_v22 = vpop.permute.xlu0 %2161  ;;  %2064 = vmatprep.mubr.f32.mxu1 %v8157_v7  ;;  %v1360_v33 = vmax.f32 %v1281_v20, %v9500_v36 }
 0x35b   :  { %7334 = vmatprep.subr.mxu1 %v1987_v24  ;;  %v2168_v45 = vsel %vm2167_vm8, %v2162_v22, %v2164_v19 }
 0x35c   :  { %5060 = vrot.lane.b32.xlu0 %v9530_v6, %s8178_s23 }
 0x35d   :  { %7023 = vmatmul.mubr.msk.f32.vlgmr.msra.gmra.mrb[8].mxu1 %vm1483_vm2, %v7021_v39 }
 0x35e   :  { %7335 = vmatpush3.msra.mxu1 %v1987_v24  ;;  %v1436_v48 = vpop.permute.xlu0 %1435  ;;  %2070 = vmatprep.mubr.f32.mxu1 %v8157_v7 }
 0x35f   :  { %2179 = vmatprep.subr.mxu1 %v2169_v28  ;;  %v1441_v43 = vsel %vm1437_vm4, %v9508_v50, %v1436_v48  ;;  %v2343_v50 = vpop.permute.xlu1 %2342 }
 0x360   :  { %v1449_v44 = vmax.f32 %v1360_v33, %v1441_v43  ;;  %5058 = vrot.lane.b32.xlu0 %v9533_v11, %s8178_s23 }
 0x361   :  { %7024 = vmatmul.mubr.msk.f32.gmra.mrb[10].mxu1 %vm1483_vm2, %v7022_v40 }
 0x362   :  { %1459 = vst.msk [vmem:[#allocation3 + $0x18] sm:$0xff] %vm1458_vm9, %v1449_v44  ;;  %v2345_v36 = vpop.permute.xlu0 %2344  ;;  %7336 = vmatprep.mubr.msk.f32.mxu1 %vm1483_vm2, %v7021_v39  ;;  %v7058_v39 = vld [vmem:[%s10591_s3 + $0x98] sm:$0xff]  ;;  %v7064_v44 = vld [vmem:[%s10591_s3 + $0xa8] sm:$0xff] }
 0x363   :  { %v2347_v53 = vsel %vm1239_vm0, %v2343_v50, %v2345_v36  ;;  %v2341_v25 = vpop.permute.xlu1 %2340 }
 0x364   :  { %5241 = vrot.lane.b32.xlu0 %v9530_v6, %s8179_s29  ;;  %v2346_v57 = vsel %vm1239_vm0, %v2341_v25, %v2343_v50 }
 0x365   :  { %7337 = vmatmul.mubr.msk.f32.vlgmr.msra.gmra.mrb[6].mxu1 %vm1483_vm2, %v7022_v40  ;;  %v7063_v40 = vld [vmem:[%s10591_s3 + $0xa0] sm:$0xff] }
 0x366   :  { %2180 = vmatpush1.msra.mxu1 %v2168_v45  ;;  %v2521_v46 = vpop.permute.xlu0 %2520  ;;  %2243 = vmatprep.mubr.f32.mxu1 %v8157_v7 }
 0x367   :  { %7339 = vmatprep.subr.mxu1 %v2166_v18  ;;  %v2523_v41 = vpop.permute.xlu1 %2522 }
 0x368   :  { %5239 = vrot.lane.b32.xlu0 %v9533_v11, %s8179_s29  ;;  %v2526_v59 = vsel %vm2524_vm10, %v2521_v46, %v2523_v41 }
 0x369   :  { %v9697_v51 = vld [vmem:[#allocation3 + $0x18] sm:$0xff]  ;;  %7029 = vmatmul.mubr.msk.f32.vlgmr.msra.gmra.mrb[8].mxu1 %vm1483_vm2, %v7027_v47 }
 0x36a   :  { %7340 = vmatpush3.msra.mxu1 %v2166_v18  ;;  %3247 = vrot.lane.b32.xlu1 %v9697_v51, %s8170_s12  ;;  %v2519_v54 = vpop.permute.xlu0 %2518 }
 0x36b   :  { %2357 = vmatprep.subr.mxu1 %v2347_v53  ;;  %2249 = vmatprep.mubr.f32.mxu1 %v8157_v7  ;;  %v2525_v1 = vsel %vm2524_vm10, %v2519_v54, %v2521_v46  ;;  %v2700_v29 = vpop.permute.xlu1 %2699  ;;  %vm4884_vm10 = vcmask 244736  }
 0x36c   :  { %5423 = vrot.lane.b32.xlu0 %v9530_v6, %s8180_s1 }
 0x36d   :  { %7030 = vmatmul.mubr.msk.f32.gmra.mrb[10].mxu1 %vm1483_vm2, %v7028_v23 }
 0x36e   :  { %3427 = vrot.lane.b32.xlu1 %v9512_v52, %s8171_s13  ;;  %v9712_v56 = vpop.permute.xlu0 %2701  ;;  %7341 = vmatprep.mubr.msk.f32.mxu1 %vm1483_vm2, %v7027_v47 }
 0x36f   :  { %v2704_v9 = vsel %vm1349_vm3, %v2700_v29, %v9712_v56 }
 0x370   :  { %5421 = vrot.lane.b32.xlu0 %v9533_v11, %s8180_s1 }
 0x371   :  { %7342 = vmatmul.mubr.msk.f32.vlgmr.msra.gmra.mrb[6].mxu1 %vm1483_vm2, %v7028_v23 }
 0x372   :  { %2358 = vmatpush1.msra.mxu1 %v2346_v57  ;;  %3429 = vrot.lane.b32.xlu1 %v9697_v51, %s8171_s13  ;;  %v9721_v58 = vpop.permute.xlu0 %2877 }
 0x373   :  { %7344 = vmatprep.subr.mxu1 %v2345_v36  ;;  %2421 = vmatprep.mubr.f32.mxu1 %v8157_v7 }
 0x374   :  { %5605 = vrot.lane.b32.xlu0 %v9530_v6, %s8181_s2 }
 0x375   :  { %7035 = vmatmul.mubr.msk.f32.vlgmr.msra.gmra.mrb[8].mxu1 %vm1483_vm2, %v7033_v38 }
 0x376   :  { %7345 = vmatpush3.msra.mxu1 %v2345_v36  ;;  %3608 = vrot.lane.b32.xlu1 %v9512_v52, %s8172_s14  ;;  %v2876_v60 = vpop.permute.xlu0 %2875 }
 0x377   :  { %2536 = vmatprep.subr.mxu1 %v2526_v59  ;;  %2427 = vmatprep.mubr.f32.mxu1 %v8157_v7  ;;  %v2882_v14 = vsel %vm2881_vm11, %v2876_v60, %v9721_v58 }
 0x378   :  { %5603 = vrot.lane.b32.xlu0 %v9533_v11, %s8181_s2 }
 0x379   :  { %7036 = vmatmul.mubr.msk.f32.gmra.mrb[10].mxu1 %vm1483_vm2, %v7034_v61 }
 0x37a   :  { %3610 = vrot.lane.b32.xlu1 %v9697_v51, %s8172_s14  ;;  %v9742_v0 = vpop.permute.xlu0 %3058  ;;  %7346 = vmatprep.mubr.msk.f32.mxu1 %vm1483_vm2, %v7033_v38 }
 0x37c   :  { %1473 = vrot.lane.b32.xlu0 %v9530_v6, %s8163_s24  ;;  %v2698_v6 = vpop.permute.xlu1 %2697 }
 0x37d   :  { %7347 = vmatmul.mubr.msk.f32.vlgmr.msra.gmra.mrb[6].mxu1 %vm1483_vm2, %v7034_v61  ;;  %v2703_v3 = vsel %vm1349_vm3, %v2698_v6, %v2700_v29  ;;  %v7075_v6 = vld [vmem:[%s10591_s3 + $0xc0] sm:$0xff]  ;;  %vm3794_vm3 = vcmask 506880  }
 0x37e   :  { %2537 = vmatpush1.msra.mxu1 %v2525_v1  ;;  %3790 = vrot.lane.b32.xlu1 %v9512_v52, %s8173_s15  ;;  %v9754_v4 = vpop.permute.xlu0 %3243  ;;  %v7070_v1 = vld [vmem:[%s10591_s3 + $0xb8] sm:$0xff] }
 0x37f   :  { %7349 = vmatprep.subr.mxu1 %v2523_v41  ;;  %2600 = vmatprep.mubr.f32.mxu1 %v8157_v7 }
 0x380   :  { %5953 = vperm.xlu0 %8126, %v5949_v2   ;;  %v2880_v62 = vpop.permute.xlu1 %2879 }
 0x381   :  { %7041 = vmatmul.mubr.msk.f32.vlgmr.msra.gmra.mrb[8].mxu1 %vm1483_vm2, %v7039_v5  ;;  %v2883_v12 = vsel %vm2881_vm11, %v9721_v58, %v2880_v62  ;;  %vm5429_vm11 = vcmask 31744  }
 0x382   :  { %7350 = vmatpush3.msra.mxu1 %v2523_v41  ;;  %3792 = vrot.lane.b32.xlu1 %v9697_v51, %s8173_s15  ;;  %v9765_v10 = vpop.permute.xlu0 %3241 }
 0x383   :  { %2714 = vmatprep.subr.mxu1 %v2704_v9  ;;  %2606 = vmatprep.mubr.f32.mxu1 %v8157_v7  ;;  %v3250_v33 = vsel %vm3249_vm13, %v9765_v10, %v9754_v4 }
 0x384   :  { %v3057_v37 = vpop.permute.xlu1 %3056 }
 0x385   :  { %7042 = vmatmul.mubr.msk.f32.gmra.mrb[10].mxu1 %vm1483_vm2, %v7040_v63  ;;  %v3062_v18 = vsel %vm3060_vm12, %v3057_v37, %v9742_v0 }
 0x386   :  { %3972 = vrot.lane.b32.xlu1 %v9512_v52, %s8162_s22  ;;  %v9774_v26 = vpop.permute.xlu0 %3425  ;;  %7351 = vmatprep.mubr.msk.f32.mxu1 %vm1483_vm2, %v7039_v5 }
 0x388   :  { %v3055_v30 = vpop.permute.xlu1 %3054 }
 0x389   :  { %7352 = vmatmul.mubr.msk.f32.vlgmr.msra.gmra.mrb[6].mxu1 %vm1483_vm2, %v7040_v63  ;;  %v3061_v19 = vsel %vm3060_vm12, %v3055_v30, %v3057_v37  ;;  %v7087_v30 = vld [vmem:[%s10591_s3 + $0xe0] sm:$0xff]  ;;  %vm5611_vm12 = vcmask 15360  }
 0x38a   :  { %2715 = vmatpush1.msra.mxu1 %v2703_v3  ;;  %3974 = vrot.lane.b32.xlu1 %v9697_v51, %s8162_s22  ;;  %v9781_v8 = vpop.permute.xlu0 %3423 }
 0x38b   :  { %7354 = vmatprep.subr.mxu1 %v9712_v56  ;;  %2778 = vmatprep.mubr.f32.mxu1 %v8157_v7  ;;  %v3431_v59 = vsel %vm1458_vm9, %v9781_v8, %v9774_v26 }
 0x38c   :  { %v3246_v34 = vpop.permute.xlu1 %3245 }
 0x38d   :  { %7047 = vmatmul.mubr.msk.f32.vlgmr.msra.gmra.mrb[8].mxu1 %vm1483_vm2, %v7045_v42  ;;  %v3251_v20 = vsel %vm3249_vm13, %v9754_v4, %v3246_v34 }
 0x38e   :  { %7355 = vmatpush3.msra.mxu1 %v9712_v56  ;;  %4153 = vrot.lane.b32.xlu1 %v9512_v52, %s8174_s16  ;;  %v9794_v13 = vpop.permute.xlu0 %3606 }
 0x38f   :  { %2893 = vmatprep.subr.mxu1 %v2883_v12  ;;  %2784 = vmatprep.mubr.f32.mxu1 %v8157_v7 }
 0x391   :  { %7048 = vmatmul.mubr.msk.f32.gmra.mrb[10].mxu1 %vm1483_vm2, %v7046_v35 }
 0x392   :  { %4155 = vrot.lane.b32.xlu1 %v9697_v51, %s8174_s16  ;;  %v9803_v49 = vpop.permute.xlu0 %3604  ;;  %7356 = vmatprep.mubr.msk.f32.mxu1 %vm1483_vm2, %v7045_v42 }
 0x393   :  { %v3613_v9 = vsel %vm3612_vm14, %v9803_v49, %v9794_v13  ;;  %v7081_v49 = vld [vmem:[%s10591_s3 + $0xd0] sm:$0xff] }
 0x395   :  { %7357 = vmatmul.mubr.msk.f32.vlgmr.msra.gmra.mrb[6].mxu1 %vm1483_vm2, %v7046_v35 }
 0x396   :  { %2894 = vmatpush1.msra.mxu1 %v2882_v14  ;;  %4335 = vrot.lane.b32.xlu1 %v9512_v52, %s8175_s18  ;;  %v9811_v15 = vpop.permute.xlu0 %3788 }
 0x397   :  { %7359 = vmatprep.subr.mxu1 %v2880_v62  ;;  %2957 = vmatprep.mubr.f32.mxu1 %v8157_v7 }
 0x399   :  { %7053 = vmatmul.mubr.msk.f32.vlgmr.msra.gmra.mrb[8].mxu1 %vm1483_vm2, %v7051_v17 }
 0x39a   :  { %7360 = vmatpush3.msra.mxu1 %v2880_v62  ;;  %4337 = vrot.lane.b32.xlu1 %v9697_v51, %s8175_s18  ;;  %v9821_v24 = vpop.permute.xlu0 %3786  ;;  %v7076_v62 = vld [vmem:[%s10591_s3 + $0xc8] sm:$0xff] }
 0x39b   :  { %3072 = vmatprep.subr.mxu1 %v3062_v18  ;;  %2963 = vmatprep.mubr.f32.mxu1 %v8157_v7 }
 0x39d   :  { %7054 = vmatmul.mubr.msk.f32.gmra.mrb[10].mxu1 %vm1483_vm2, %v7052_v27 }
 0x39e   :  { %4517 = vrot.lane.b32.xlu1 %v9512_v52, %s8176_s26  ;;  %v9830_v16 = vpop.permute.xlu0 %3970  ;;  %7361 = vmatprep.mubr.msk.f32.mxu1 %vm1483_vm2, %v7051_v17  ;;  %v7082_v17 = vld [vmem:[%s10591_s3 + $0xd8] sm:$0xff] }
 0x3a1   :  { %7362 = vmatmul.mubr.msk.f32.vlgmr.msra.gmra.mrb[6].mxu1 %vm1483_vm2, %v7052_v27 }
 0x3a2   :  { %3073 = vmatpush1.msra.mxu1 %v3061_v19  ;;  %4519 = vrot.lane.b32.xlu1 %v9697_v51, %s8176_s26  ;;  %v9836_v31 = vpop.permute.xlu0 %3968 }
 0x3a3   :  { %7364 = vmatprep.subr.mxu1 %v9742_v0  ;;  %3136 = vmatprep.mubr.f32.mxu1 %v8157_v7  ;;  %v3976_v18 = vsel %vm1437_vm4, %v9836_v31, %v9830_v16 }
 0x3a5   :  { %7059 = vmatmul.mubr.msk.f32.vlgmr.msra.gmra.mrb[8].mxu1 %vm1483_vm2, %v7057_v32 }
 0x3a6   :  { %7365 = vmatpush3.msra.mxu1 %v9742_v0  ;;  %4699 = vrot.lane.b32.xlu1 %v9512_v52, %s8160_s20  ;;  %v9849_v22 = vpop.permute.xlu0 %4151 }
 0x3a7   :  { %3262 = vmatprep.subr.mxu1 %v3251_v20  ;;  %3142 = vmatprep.mubr.f32.mxu1 %v8157_v7 }
 0x3a9   :  { %7060 = vmatmul.mubr.msk.f32.gmra.mrb[10].mxu1 %vm1483_vm2, %v7058_v39 }
 0x3aa   :  { %4701 = vrot.lane.b32.xlu1 %v9697_v51, %s8160_s20  ;;  %v9858_v28 = vpop.permute.xlu0 %4149  ;;  %7366 = vmatprep.mubr.msk.f32.mxu1 %vm1483_vm2, %v7057_v32  ;;  %v7088_v32 = vld [vmem:[%s10591_s3 + $0xe8] sm:$0xff] }
 0x3ab   :  { %v4158_v20 = vsel %vm4157_vm7, %v9858_v28, %v9849_v22  ;;  %v7094_v28 = vld [vmem:[%s10591_s3 + $0xf8] sm:$0xff] }
 0x3ad   :  { %7367 = vmatmul.mubr.msk.f32.vlgmr.msra.gmra.mrb[6].mxu1 %vm1483_vm2, %v7058_v39 }
 0x3ae   :  { %3263 = vmatpush1.msra.mxu1 %v3250_v33  ;;  %4880 = vrot.lane.b32.xlu1 %v9512_v52, %s8177_s17  ;;  %v9867_v48 = vpop.permute.xlu0 %4333 }
 0x3af   :  { %3326 = vmatprep.mubr.f32.mxu1 %v8157_v7 }
 0x3b1   :  { %7065 = vmatmul.mubr.msk.f32.vlgmr.msra.gmra.mrb[8].mxu1 %vm1483_vm2, %v7063_v40 }
 0x3b2   :  { %4882 = vrot.lane.b32.xlu1 %v9697_v51, %s8177_s17  ;;  %v9876_v43 = vpop.permute.xlu0 %4331  ;;  %3332 = vmatprep.mubr.f32.mxu1 %v8157_v7 }
 0x3b5   :  { %7066 = vmatmul.mubr.msk.f32.gmra.mrb[10].mxu1 %vm1483_vm2, %v7064_v44 }
 0x3b6   :  { %5062 = vrot.lane.b32.xlu1 %v9512_v52, %s8178_s23  ;;  %v9885_v36 = vpop.permute.xlu0 %4515  ;;  %7371 = vmatprep.mubr.msk.f32.mxu1 %vm1483_vm2, %v7063_v40  ;;  %v7093_v40 = vld [vmem:[%s10591_s3 + $0xf0] sm:$0xff] }
 0x3ba   :  { %5064 = vrot.lane.b32.xlu1 %v9697_v51, %s8178_s23  ;;  %v9890_v45 = vpop.permute.xlu0 %4513 }
 0x3be   :  { %5243 = vrot.lane.b32.xlu1 %v9512_v52, %s8179_s29  ;;  %v9894_v46 = vpop.permute.xlu0 %4697 }
 0x3c2   :  { %5245 = vrot.lane.b32.xlu1 %v9697_v51, %s8179_s29  ;;  %v9898_v47 = vpop.permute.xlu0 %4695 }
 0x3c6   :  { %5425 = vrot.lane.b32.xlu1 %v9512_v52, %s8180_s1  ;;  %v9902_v50 = vpop.permute.xlu0 %4878 }
 0x3ca   :  { %5427 = vrot.lane.b32.xlu1 %v9697_v51, %s8180_s1  ;;  %v9906_v53 = vpop.permute.xlu0 %4876 }
 0x3ce   :  { %5607 = vrot.lane.b32.xlu1 %v9512_v52, %s8181_s2  ;;  %v9910_v54 = vpop.permute.xlu0 %5060 }
 0x3d2   :  { %5609 = vrot.lane.b32.xlu1 %v9697_v51, %s8181_s2  ;;  %v9914_v23 = vpop.permute.xlu0 %5058 }
 0x3d6   :  { %1471 = vrot.lane.b32.xlu1 %v9533_v11, %s8163_s24  ;;  %v9918_v25 = vpop.permute.xlu0 %5241  ;;  %v7069_v11 = vld [vmem:[%s10591_s3 + $0xb0] sm:$0xff] }
 0x3da   :  { %v9920_v56 = vpop.permute.xlu0 %5239 }
 0x3dc   :  { %v3248_v57 = vpop.permute.xlu1 %3247 }
 0x3dd   :  { %v3252_v58 = vsel %vm3249_vm13, %v3246_v34, %v3248_v57 }
 0x3de   :  { %7369 = vmatprep.subr.mxu1 %v3252_v58  ;;  %v9923_v38 = vpop.permute.xlu0 %5423 }
 0x3df   :  { %7370 = vmatpush3.msra.mxu1 %v3252_v58 }
 0x3e0   :  { %v3428_v52 = vpop.permute.xlu1 %3427  ;;  %7372 = vmatmul.mubr.msk.f32.vlgmr.msra.gmra.mrb[6].mxu1 %vm1483_vm2, %v7064_v44 }
 0x3e1   :  { %v3432_v41 = vsel %vm1458_vm9, %v9774_v26, %v3428_v52  ;;  %3507 = vmatprep.mubr.f32.mxu1 %v8157_v7 }
 0x3e2   :  { %3443 = vmatprep.subr.mxu1 %v3432_v41  ;;  %v9935_v60 = vpop.permute.xlu0 %5421 }
 0x3e3   :  { %3444 = vmatpush1.msra.mxu1 %v3431_v59 }
 0x3e4   :  { %v3430_v61 = vpop.permute.xlu1 %3429  ;;  %7071 = vmatmul.mubr.msk.f32.vlgmr.msra.gmra.mrb[8].mxu1 %vm1483_vm2, %v7069_v11 }
 0x3e5   :  { %v3433_v0 = vsel %vm1458_vm9, %v3428_v52, %v3430_v61  ;;  %3513 = vmatprep.mubr.f32.mxu1 %v8157_v7  ;;  %vm4521_vm9 = vcmask 277504  }
 0x3e6   :  { %7374 = vmatprep.subr.mxu1 %v3433_v0  ;;  %v9943_v2 = vpop.permute.xlu0 %5605 }
 0x3e7   :  { %7375 = vmatpush3.msra.mxu1 %v3433_v0  ;;  %v4522_v0 = vsel %vm4521_vm9, %v9890_v45, %v9885_v36  ;;  %v7106_v45 = vld [vmem:[%s10591_s3 + $0x118] sm:$0xff] }
 0x3e8   :  { %v3609_v4 = vpop.permute.xlu1 %3608  ;;  %7072 = vmatmul.mubr.msk.f32.gmra.mrb[10].mxu1 %vm1483_vm2, %v7070_v1 }
 0x3e9   :  { %v3614_v5 = vsel %vm3612_vm14, %v9794_v13, %v3609_v4  ;;  %7376 = vmatprep.mubr.msk.f32.mxu1 %vm1483_vm2, %v7069_v11  ;;  %v7099_v11 = vld [vmem:[%s10591_s3 + $0x100] sm:$0xff] }
 0x3ea   :  { %3625 = vmatprep.subr.mxu1 %v3614_v5  ;;  %v9948_v29 = vpop.permute.xlu0 %5603  ;;  %v7105_v5 = vld [vmem:[%s10591_s3 + $0x110] sm:$0xff] }
 0x3ec   :  { %v3611_v10 = vpop.permute.xlu1 %3610  ;;  %7377 = vmatmul.mubr.msk.f32.vlgmr.msra.gmra.mrb[6].mxu1 %vm1483_vm2, %v7070_v1 }
 0x3ed   :  { %3626 = vmatpush1.msra.mxu1 %v3613_v9  ;;  %v3615_v63 = vsel %vm3612_vm14, %v3609_v4, %v3611_v10  ;;  %3689 = vmatprep.mubr.f32.mxu1 %v8157_v7  ;;  %vm6315_vm14 = vcmask 386304  }
 0x3ee   :  { %7379 = vmatprep.subr.mxu1 %v3615_v63  ;;  %v9957_v26 = vpop.permute.xlu0 %1473 }
 0x3ef   :  { %v1479_v3 = vsel %vm1477_vm15, %v9957_v26, %v9604_v55  ;;  %v3795_v55 = vsel %vm3794_vm3, %v9821_v24, %v9811_v15 }
 0x3f0   :  { %v3791_v8 = vpop.permute.xlu1 %3790  ;;  %1490 = vmatprep.subr.mxu0 %v1479_v3  ;;  %7077 = vmatmul.mubr.msk.f32.vlgmr.msra.gmra.mrb[8].mxu1 %vm1483_vm2, %v7075_v6 }
 0x3f1   :  { %7380 = vmatpush3.msra.mxu1 %v3615_v63  ;;  %v3796_v42 = vsel %vm3794_vm3, %v9811_v15, %v3791_v8  ;;  %3695 = vmatprep.mubr.f32.mxu1 %v8157_v7  ;;  %v4703_v63 = vsel %vm1269_vm1, %v9898_v47, %v9894_v46  ;;  %v7112_v47 = vld [vmem:[%s10591_s3 + $0x128] sm:$0xff] }
 0x3f2   :  { %3807 = vmatprep.subr.mxu1 %v3796_v42 }
 0x3f4   :  { %v3793_v12 = vpop.permute.xlu1 %3792  ;;  %7078 = vmatmul.mubr.msk.f32.gmra.mrb[10].mxu1 %vm1483_vm2, %v7076_v62 }
 0x3f5   :  { %7381 = vmatprep.mubr.msk.f32.mxu1 %vm1483_vm2, %v7075_v6  ;;  %v3797_v35 = vsel %vm3794_vm3, %v3791_v8, %v3793_v12  ;;  %v7111_v8 = vld [vmem:[%s10591_s3 + $0x120] sm:$0xff]  ;;  %v4885_v12 = vsel %vm4884_vm10, %v9906_v53, %v9902_v50  ;;  %v7118_v53 = vld [vmem:[%s10591_s3 + $0x138] sm:$0xff]  ;;  %vm6343_vm3 = vcmask 648704  }
 0x3f8   :  { %v3973_v13 = vpop.permute.xlu1 %3972  ;;  %7382 = vmatmul.mubr.msk.f32.vlgmr.msra.gmra.mrb[6].mxu1 %vm1483_vm2, %v7076_v62 }
 0x3f9   :  { %3808 = vmatpush1.msra.mxu1 %v3795_v55  ;;  %3871 = vmatprep.mubr.f32.mxu1 %v8157_v7  ;;  %v3977_v15 = vsel %vm1437_vm4, %v9830_v16, %v3973_v13  ;;  %v5950_v16 = vld [vmem:[%s10592_s4 + $0x8] sm:$0xff] }
 0x3fa   :  { %7384 = vmatprep.subr.mxu1 %v3797_v35  ;;  %5958 = vperm.xlu1 %8127, %v5950_v16   ;;  %v7135_v16 = vld [vmem:[%s10591_s3 + $0x160] sm:$0xff] }
 0x3fc   :  { %v3975_v14 = vpop.permute.xlu1 %3974  ;;  %7083 = vmatmul.mubr.msk.f32.vlgmr.msra.gmra.mrb[8].mxu1 %vm1483_vm2, %v7081_v49 }
 0x3fd   :  { %7385 = vmatpush3.msra.mxu1 %v3797_v35  ;;  %3877 = vmatprep.mubr.f32.mxu1 %v8157_v7  ;;  %v3978_v27 = vsel %vm1437_vm4, %v3973_v13, %v3975_v14  ;;  %vm4339_vm4 = vcmask 293888   ;;  %v7117_v35 = vld [vmem:[%s10591_s3 + $0x130] sm:$0xff] }
 0x3fe   :  { %3988 = vmatprep.subr.mxu1 %v3977_v15  ;;  %v4340_v58 = vsel %vm4339_vm4, %v9876_v43, %v9867_v48 }
 0x400   :  { %v4154_v37 = vpop.permute.xlu1 %4153  ;;  %7084 = vmatmul.mubr.msk.f32.gmra.mrb[10].mxu1 %vm1483_vm2, %v7082_v17 }
 0x401   :  { %7386 = vmatprep.mubr.msk.f32.mxu1 %vm1483_vm2, %v7081_v49  ;;  %v4159_v31 = vsel %vm4157_vm7, %v9849_v22, %v4154_v37 }
 0x404   :  { %v4156_v24 = vpop.permute.xlu1 %4155  ;;  %7387 = vmatmul.mubr.msk.f32.vlgmr.msra.gmra.mrb[6].mxu1 %vm1483_vm2, %v7082_v17  ;;  %v8130_v17 = vld [vmem:[%s10591_s3 + $0x10] sm:$0xff] }
 0x405   :  { %3989 = vmatpush1.msra.mxu1 %v3976_v18  ;;  %4052 = vmatprep.mubr.f32.mxu1 %v8157_v7  ;;  %v4160_v33 = vsel %vm4157_vm7, %v4154_v37, %v4156_v24  ;;  %v5066_v37 = vsel %vm1483_vm2, %v9914_v23, %v9910_v54  ;;  %v7123_v18 = vld [vmem:[%s10591_s3 + $0x140] sm:$0xff]  ;;  %v7124_v23 = vld [vmem:[%s10591_s3 + $0x148] sm:$0xff]  ;;  %vm6357_vm7 = vcmask 779904  }
 0x406   :  { %7389 = vmatprep.subr.mxu1 %v3978_v27 }
 0x408   :  { %v4336_v19 = vpop.permute.xlu1 %4335  ;;  %7089 = vmatmul.mubr.msk.f32.vlgmr.msra.gmra.mrb[8].mxu1 %vm1483_vm2, %v7087_v30 }
 0x409   :  { %7390 = vmatpush3.msra.mxu1 %v3978_v27  ;;  %4058 = vmatprep.mubr.f32.mxu1 %v8157_v7  ;;  %v4341_v22 = vsel %vm4339_vm4, %v9867_v48, %v4336_v19  ;;  %v7100_v48 = vld [vmem:[%s10591_s3 + $0x108] sm:$0xff]  ;;  %v7129_v27 = vld [vmem:[%s10591_s3 + $0x150] sm:$0xff] }
 0x40a   :  { %4170 = vmatprep.subr.mxu1 %v4159_v31  ;;  %v5612_v31 = vsel %vm5611_vm12, %v9948_v29, %v9943_v2  ;;  %v8131_v29 = vld [vmem:[#allocation3 + $0x10] sm:$0xff] }
 0x40c   :  { %v4338_v34 = vpop.permute.xlu1 %4337  ;;  %7090 = vmatmul.mubr.msk.f32.gmra.mrb[10].mxu1 %vm1483_vm2, %v7088_v32 }
 0x40d   :  { %7391 = vmatprep.mubr.msk.f32.mxu1 %vm1483_vm2, %v7087_v30  ;;  %v4342_v41 = vsel %vm4339_vm4, %v4336_v19, %v4338_v34  ;;  %v7141_v34 = vld [vmem:[%s10591_s3 + $0x170] sm:$0xff]  ;;  %vm6371_vm4 = vcmask 911104  }
 0x410   :  { %v4518_v39 = vpop.permute.xlu1 %4517  ;;  %7392 = vmatmul.mubr.msk.f32.vlgmr.msra.gmra.mrb[6].mxu1 %vm1483_vm2, %v7088_v32 }
 0x411   :  { %4171 = vmatpush1.msra.mxu1 %v4158_v20  ;;  %4234 = vmatprep.mubr.f32.mxu1 %v8157_v7  ;;  %v4523_v61 = vsel %vm4521_vm9, %v9885_v36, %v4518_v39  ;;  %v8132_v20 = vld [vmem:[#allocation3 + $0x8] sm:$0xff] }
 0x412   :  { %7394 = vmatprep.subr.mxu1 %v4160_v33 }
 0x414   :  { %v4520_v44 = vpop.permute.xlu1 %4519  ;;  %7095 = vmatmul.mubr.msk.f32.vlgmr.msra.gmra.mrb[8].mxu1 %vm1483_vm2, %v7093_v40 }
 0x415   :  { %7395 = vmatpush3.msra.mxu1 %v4160_v33  ;;  %4240 = vmatprep.mubr.f32.mxu1 %v8157_v7  ;;  %v4524_v4 = vsel %vm4521_vm9, %v4518_v39, %v4520_v44  ;;  %v7147_v39 = vld [vmem:[%s10591_s3 + $0x180] sm:$0xff]  ;;  %v7148_v33 = vld [vmem:[%s10591_s3 + $0x188] sm:$0xff]  ;;  %vm6385_vm9 = vcmask 1042304  }
 0x416   :  { %4352 = vmatprep.subr.mxu1 %v4341_v22 }
 0x418   :  { %v4700_v57 = vpop.permute.xlu1 %4699  ;;  %7096 = vmatmul.mubr.msk.f32.gmra.mrb[10].mxu1 %vm1483_vm2, %v7094_v28 }
 0x419   :  { %7396 = vmatprep.mubr.msk.f32.mxu1 %vm1483_vm2, %v7093_v40  ;;  %v4704_v36 = vsel %vm1269_vm1, %v9894_v46, %v4700_v57 }
 0x41c   :  { %v4702_v52 = vpop.permute.xlu1 %4701  ;;  %7397 = vmatmul.mubr.msk.f32.vlgmr.msra.gmra.mrb[6].mxu1 %vm1483_vm2, %v7094_v28 }
 0x41d   :  { %4353 = vmatpush1.msra.mxu1 %v4340_v58  ;;  %4416 = vmatprep.mubr.f32.mxu1 %v8157_v7  ;;  %v4705_v3 = vsel %vm1269_vm1, %v4700_v57, %v4702_v52  ;;  %vm5247_vm1 = vcmask 48128  }
 0x41e   :  { %7399 = vmatprep.subr.mxu1 %v4342_v41 }
 0x420   :  { %v4881_v59 = vpop.permute.xlu1 %4880  ;;  %7101 = vmatmul.mubr.msk.f32.vlgmr.msra.gmra.mrb[8].mxu1 %vm1483_vm2, %v7099_v11 }
 0x421   :  { %7400 = vmatpush3.msra.mxu1 %v4342_v41  ;;  %4422 = vmatprep.mubr.f32.mxu1 %v8157_v7  ;;  %v4886_v46 = vsel %vm4884_vm10, %v9902_v50, %v4881_v59 }
 0x422   :  { %4534 = vmatprep.subr.mxu1 %v4523_v61 }
 0x424   :  { %v4883_v43 = vpop.permute.xlu1 %4882  ;;  %7102 = vmatmul.mubr.msk.f32.gmra.mrb[10].mxu1 %vm1483_vm2, %v7100_v48 }
 0x425   :  { %7401 = vmatprep.mubr.msk.f32.mxu1 %vm1483_vm2, %v7099_v11  ;;  %v4887_v13 = vsel %vm4884_vm10, %v4881_v59, %v4883_v43  ;;  %vm8188_vm10 = vmmov 0  }
 0x428   :  { %v10044_v1 = vpop.permute.xlu1 %5062  ;;  %7402 = vmatmul.mubr.msk.f32.vlgmr.msra.gmra.mrb[6].mxu1 %vm1483_vm2, %v7100_v48 }
 0x429   :  { %4535 = vmatpush1.msra.mxu1 %v4522_v0  ;;  %4598 = vmatprep.mubr.f32.mxu1 %v8157_v7  ;;  %v5067_v50 = vsel %vm1483_vm2, %v9910_v54, %v10044_v1 }
 0x42a   :  { %7404 = vmatprep.subr.mxu1 %v4524_v4 }
 0x42c   :  { %v5065_v9 = vpop.permute.xlu1 %5064  ;;  %7107 = vmatmul.mubr.msk.f32.vlgmr.msra.gmra.mrb[8].mxu1 %vm1483_vm2, %v7105_v5 }
 0x42d   :  { %7405 = vmatpush3.msra.mxu1 %v4524_v4  ;;  %4604 = vmatprep.mubr.f32.mxu1 %v8157_v7 }
 0x42e   :  { %4715 = vmatprep.subr.mxu1 %v4704_v36 }
 0x430   :  { %v10058_v10 = vpop.permute.xlu1 %5243  ;;  %7108 = vmatmul.mubr.msk.f32.gmra.mrb[10].mxu1 %vm1483_vm2, %v7106_v45 }
 0x431   :  { %7406 = vmatprep.mubr.msk.f32.mxu1 %vm1483_vm2, %v7105_v5  ;;  %v5249_v54 = vsel %vm5247_vm1, %v9918_v25, %v10058_v10 }
 0x434   :  { %v5246_v6 = vpop.permute.xlu1 %5245  ;;  %7407 = vmatmul.mubr.msk.f32.vlgmr.msra.gmra.mrb[6].mxu1 %vm1483_vm2, %v7106_v45 }
 0x435   :  { %4716 = vmatpush1.msra.mxu1 %v4703_v63  ;;  %4779 = vmatprep.mubr.f32.mxu1 %v8157_v7  ;;  %v5250_v24 = vsel %vm5247_vm1, %v10058_v10, %v5246_v6 }
 0x436   :  { %7409 = vmatprep.subr.mxu1 %v4705_v3 }
 0x438   :  { %v10071_v42 = vpop.permute.xlu1 %5425  ;;  %7113 = vmatmul.mubr.msk.f32.vlgmr.msra.gmra.mrb[8].mxu1 %vm1483_vm2, %v7111_v8 }
 0x439   :  { %7410 = vmatpush3.msra.mxu1 %v4705_v3  ;;  %4785 = vmatprep.mubr.f32.mxu1 %v8157_v7  ;;  %v5431_v30 = vsel %vm5429_vm11, %v9923_v38, %v10071_v42 }
 0x43a   :  { %4897 = vmatprep.subr.mxu1 %v4886_v46 }
 0x43c   :  { %v10079_v62 = vpop.permute.xlu1 %5427  ;;  %7114 = vmatmul.mubr.msk.f32.gmra.mrb[10].mxu1 %vm1483_vm2, %v7112_v47 }
 0x43d   :  { %7411 = vmatprep.mubr.msk.f32.mxu1 %vm1483_vm2, %v7111_v8  ;;  %v5432_v19 = vsel %vm5429_vm11, %v10071_v42, %v10079_v62 }
 0x440   :  { %v10085_v55 = vpop.permute.xlu1 %5607  ;;  %7412 = vmatmul.mubr.msk.f32.vlgmr.msra.gmra.mrb[6].mxu1 %vm1483_vm2, %v7112_v47 }
 0x441   :  { %4898 = vmatpush1.msra.mxu1 %v4885_v12  ;;  %4961 = vmatprep.mubr.f32.mxu1 %v8157_v7 }
 0x442   :  { %7414 = vmatprep.subr.mxu1 %v4887_v13 }
 0x444   :  { %v10092_v49 = vpop.permute.xlu1 %5609  ;;  %7119 = vmatmul.mubr.msk.f32.vlgmr.msra.gmra.mrb[8].mxu1 %vm1483_vm2, %v7117_v35 }
 0x445   :  { %7415 = vmatpush3.msra.mxu1 %v4887_v13  ;;  %4967 = vmatprep.mubr.f32.mxu1 %v8157_v7  ;;  %v5614_v32 = vsel %vm5611_vm12, %v10085_v55, %v10092_v49 }
 0x446   :  { %5078 = vmatprep.subr.mxu1 %v5067_v50 }
 0x448   :  { %v1472_v14 = vpop.permute.xlu1 %1471  ;;  %7120 = vmatmul.mubr.msk.f32.gmra.mrb[10].mxu1 %vm1483_vm2, %v7118_v53 }
 0x449   :  { %v1478_v15 = vsel %vm1477_vm15, %v1472_v14, %v9957_v26  ;;  %7416 = vmatprep.mubr.msk.f32.mxu1 %vm1483_vm2, %v7117_v35  ;;  %v5068_v26 = vsel %vm1483_vm2, %v10044_v1, %v5065_v9 }
 0x44a   :  { %1491 = vmatpush1.msra.mxu0 %v1478_v15 }
 0x44b   :  { %7007 = vmatmul.mubr.msk.f32.vlgmr.msra.gmra.mrb[16].mxu0 %vm1483_vm2, %v8130_v17 }
 0x44c   :  { %7417 = vmatmul.mubr.msk.f32.vlgmr.msra.gmra.mrb[6].mxu1 %vm1483_vm2, %v7118_v53  ;;  %1560 = vmatprep.mubr.f32.mxu0 %v8157_v7 }
 0x44d   :  { %5079 = vmatpush1.msra.mxu1 %v5066_v37  ;;  %5142 = vmatprep.mubr.f32.mxu1 %v8157_v7 }
 0x44e   :  { %7419 = vmatprep.subr.mxu1 %v5068_v26 }
 0x44f   :  { %7008 = vmatmul.mubr.msk.f32.gmra.mrb[18].mxu0 %vm1483_vm2, %v9609_v21  ;;  %v5248_v21 = vsel %vm5247_vm1, %v9920_v56, %v9918_v25  ;;  %v7130_v25 = vld [vmem:[%s10591_s3 + $0x158] sm:$0xff]  ;;  %v5430_v56 = vsel %vm5429_vm11, %v9935_v60, %v9923_v38  ;;  %v5613_v38 = vsel %vm5611_vm12, %v9943_v2, %v10085_v55  ;;  %v7136_v60 = vld [vmem:[%s10591_s3 + $0x168] sm:$0xff]  ;;  %vm6911_vm1 = vcmask 687104  }
 0x450   :  { %7125 = vmatmul.mubr.msk.f32.vlgmr.msra.gmra.mrb[8].mxu1 %vm1483_vm2, %v7123_v18  ;;  %v7142_v2 = vld [vmem:[%s10591_s3 + $0x178] sm:$0xff]  ;;  %s8182_s3 = smov 16   ;;  %vm6989_vm11 = vcmask 41984  }
 0x451   :  { %7420 = vmatpush3.msra.mxu1 %v5068_v26  ;;  %5148 = vmatprep.mubr.f32.mxu1 %v8157_v7 }
 0x452   :  { %5260 = vmatprep.subr.mxu1 %v5249_v54 }
 0x454   :  { %7126 = vmatmul.mubr.msk.f32.gmra.mrb[10].mxu1 %vm1483_vm2, %v7124_v23 }
 0x455   :  { %7421 = vmatprep.mubr.msk.f32.mxu1 %vm1483_vm2, %v7123_v18 }
 0x458   :  { %7422 = vmatmul.mubr.msk.f32.vlgmr.msra.gmra.mrb[6].mxu1 %vm1483_vm2, %v7124_v23 }
 0x459   :  { %5261 = vmatpush1.msra.mxu1 %v5248_v21  ;;  %5324 = vmatprep.mubr.f32.mxu1 %v8157_v7 }
 0x45a   :  { %7424 = vmatprep.subr.mxu1 %v5250_v24 }
 0x45c   :  { %7131 = vmatmul.mubr.msk.f32.vlgmr.msra.gmra.mrb[8].mxu1 %vm1483_vm2, %v7129_v27 }
 0x45d   :  { %7425 = vmatpush3.msra.mxu1 %v5250_v24  ;;  %5330 = vmatprep.mubr.f32.mxu1 %v8157_v7 }
 0x45e   :  { %5442 = vmatprep.subr.mxu1 %v5431_v30 }
 0x460   :  { %7132 = vmatmul.mubr.msk.f32.gmra.mrb[10].mxu1 %vm1483_vm2, %v7130_v25 }
 0x461   :  { %7426 = vmatprep.mubr.msk.f32.mxu1 %vm1483_vm2, %v7129_v27 }
 0x464   :  { %7427 = vmatmul.mubr.msk.f32.vlgmr.msra.gmra.mrb[6].mxu1 %vm1483_vm2, %v7130_v25 }
 0x465   :  { %5443 = vmatpush1.msra.mxu1 %v5430_v56  ;;  %5506 = vmatprep.mubr.f32.mxu1 %v8157_v7 }
 0x466   :  { %7429 = vmatprep.subr.mxu1 %v5432_v19 }
 0x468   :  { %7137 = vmatmul.mubr.msk.f32.vlgmr.msra.gmra.mrb[8].mxu1 %vm1483_vm2, %v7135_v16 }
 0x469   :  { %7430 = vmatpush3.msra.mxu1 %v5432_v19  ;;  %5512 = vmatprep.mubr.f32.mxu1 %v8157_v7 }
 0x46a   :  { %5624 = vmatprep.subr.mxu1 %v5613_v38 }
 0x46c   :  { %7138 = vmatmul.mubr.msk.f32.gmra.mrb[10].mxu1 %vm1483_vm2, %v7136_v60 }
 0x46d   :  { %7431 = vmatprep.mubr.msk.f32.mxu1 %vm1483_vm2, %v7135_v16 }
 0x470   :  { %7432 = vmatmul.mubr.msk.f32.vlgmr.msra.gmra.mrb[6].mxu1 %vm1483_vm2, %v7136_v60 }
 0x471   :  { %5625 = vmatpush1.msra.mxu1 %v5612_v31  ;;  %5688 = vmatprep.mubr.f32.mxu1 %v8157_v7 }
 0x472   :  { %7434 = vmatprep.subr.mxu1 %v5614_v32 }
 0x474   :  { %7143 = vmatmul.mubr.msk.f32.vlgmr.msra.gmra.mrb[8].mxu1 %vm1483_vm2, %v7141_v34 }
 0x475   :  { %7435 = vmatpush3.msra.mxu1 %v5614_v32  ;;  %5694 = vmatprep.mubr.f32.mxu1 %v8157_v7 }
 0x476   :  { %5791 = vmatprep.subr.mxu1 %v8131_v29 }
 0x478   :  { %7144 = vmatmul.mubr.msk.f32.gmra.mrb[10].mxu1 %vm1483_vm2, %v7142_v2 }
 0x479   :  { %7436 = vmatprep.mubr.msk.f32.mxu1 %vm1483_vm2, %v7141_v34  ;;  %v5959_v5 = vpop.permute.xlu1 %5958 }
 0x47c   :  { %7437 = vmatmul.mubr.msk.f32.vlgmr.msra.gmra.mrb[6].mxu1 %vm1483_vm2, %v7142_v2 }
 0x47d   :  { %5792 = vmatpush1.msra.mxu1 %v8132_v20  ;;  %5855 = vmatprep.mubr.f32.mxu1 %v8157_v7 }
 0x47e   :  { %7439 = vmatprep.subr.mxu1 %v9697_v51 }
 0x480   :  { %7149 = vmatmul.mubr.msk.f32.vlgmr.msra.gmra.mrb[8].mxu1 %vm1483_vm2, %v7147_v39 }
 0x481   :  { %7440 = vmatpush3.msra.mxu1 %v9697_v51  ;;  %5861 = vmatprep.mubr.f32.mxu1 %v8157_v7  ;;  %v5954_v51 = vpop.permute.xlu0 %5953 }
 0x484   :  { %7150 = vmatmul.mubr.msk.f32.gmra.mrb[10].mxu1 %vm1483_vm2, %v7148_v33 }
 0x485   :  { %7441 = vmatprep.mubr.msk.f32.mxu1 %vm1483_vm2, %v7147_v39 }
 0x488   :  { %7442 = vmatmul.mubr.msk.f32.vlgmr.msra.gmra.mrb[6].mxu1 %vm1483_vm2, %v7148_v33  ;;  %vm6049_vm2 = vcmask 572416  }
 0x51e   :  { %v1556_v40 = vpop.f32.mrb[16].mxu0 }
 0x51f   :  { %v1558_v44 = vpop.f32.mrb[17].mxu0 }
 0x522   :  { %v1562_v22 = vpop.f32.mrb[18].mxu0 }
 0x523   :  { %v1564_v28 = vpop.f32.mrb[19].mxu0 }
 0x553   :  { %v5857_v57 = vpop.f32.mrb[8].mxu1 }
 0x554   :  { %v7949_v58 = vadd.f32 %v5857_v57, %v1556_v40  ;;  %v5859_v52 = vpop.f32.mrb[9].mxu1 }
 0x555   :  { %v7950_v41 = vadd.f32 %v5859_v52, %v1558_v44 }
 0x556   :  { %v5961_v11 = vadd.f32 %v7949_v58, %v5954_v51 }
 0x557   :  { %v5962_v59 = vadd.f32 %v7950_v41, %v5954_v51  ;;  %v5863_v61 = vpop.f32.mrb[10].mxu1 }
 0x558   :  { %v5967_v48 = vmax.f32 %v5961_v11, 0.0  ;;  %v7951_v43 = vadd.f32 %v5863_v61, %v1562_v22  ;;  %v5865_v0 = vpop.f32.mrb[11].mxu1 }
 0x559   :  { %v10198_v1 = vmax.f32 %v5962_v59, 0.0  ;;  %v7952_v4 = vadd.f32 %v5865_v0, %v1564_v28 }
 0x55a   :  { %5991 = vrot.lane.b32.xlu0 %v5967_v48, %s8163_s24  ;;  %v5964_v63 = vadd.f32 %v7951_v43, %v5959_v5 }
 0x55b   :  { %v7443_v9 = vpop.f32.mrb[6].mxu1  ;;  %5993 = vrot.lane.b32.xlu1 %v10198_v1, %s8163_s24  ;;  %v5965_v36 = vadd.f32 %v7952_v4, %v5959_v5 }
 0x55c   :  { %v5966_v45 = vadd.f32 %v7443_v9, %v5959_v5  ;;  %v5934_v10 = vpop.f32.mrb[7].mxu1  ;;  %v5970_v46 = vmax.f32 %v5964_v63, 0.0 }
 0x55d   :  { %v5963_v6 = vadd.f32 %v5954_v51, %v5934_v10  ;;  %v5971_v42 = vmax.f32 %v5965_v36, 0.0 }
 0x55e   :  { %v5972_v3 = vmax.f32 %v5966_v45, 0.0  ;;  %6019 = vrot.lane.b32.xlu0 %v5967_v48, %s8164_s25 }
 0x55f   :  { %v5969_v8 = vmax.f32 %v5963_v6, 0.0  ;;  %6021 = vrot.lane.b32.xlu1 %v10198_v1, %s8164_s25 }
 0x560   :  { %5978 = vst.msk [vmem:[#allocation4 + $0x28] sm:$0xff] %vm1453_vm5, %v5972_v3 }
 0x561   :  { %5975 = vst.msk [vmem:[#allocation4 + $0x10] sm:$0xff] %vm1453_vm5, %v5969_v8  ;;  %vm6130_vm5 = vcmask 80896  }
 0x562   :  { %5999 = vrot.lane.b32.xlu0 %v5971_v42, %s8163_s24 }
 0x563   :  { %5997 = vrot.lane.b32.xlu1 %v5970_v46, %s8163_s24 }
 0x567   :  { %6025 = vrot.lane.b32.xlu1 %v5970_v46, %s8164_s25  ;;  %v5984_v62 = vld [vmem:[#allocation4 + $0x28] sm:$0xff] }
 0x568   :  { %v5981_v47 = vld [vmem:[#allocation4 + $0x10] sm:$0xff] }
 0x569   :  { %5995 = vrot.lane.b32.xlu0 %v5981_v47, %s8163_s24 }
 0x56b   :  { %6001 = vrot.lane.b32.xlu1 %v5984_v62, %s8163_s24  ;;  %s8184_s24 = smov 48  }
 0x56d   :  { %6023 = vrot.lane.b32.xlu0 %v5981_v47, %s8164_s25 }
 0x56f   :  { %6029 = vrot.lane.b32.xlu1 %v5984_v62, %s8164_s25 }
 0x571   :  { %6027 = vrot.lane.b32.xlu0 %v5971_v42, %s8164_s25 }
 0x5cc   :  { %v5992_v12 = vpop.permute.xlu0 %5991 }
 0x5cd   :  { %v5994_v55 = vpop.permute.xlu1 %5993 }
 0x5ce   :  { %v6003_v13 = vsel %vm1477_vm15, %v5992_v12, %v5994_v55 }
 0x5cf   :  { %v6013_v49 = vmax.f32 %v5967_v48, %v6003_v13 }
 0x5d0   :  { %v6020_v35 = vpop.permute.xlu0 %6019 }
 0x5d1   :  { %v6022_v50 = vpop.permute.xlu1 %6021 }
 0x5d2   :  { %v6031_v53 = vsel %vm1809_vm6, %v6020_v35, %v6022_v50 }
 0x5d3   :  { %v10218_v14 = vmax.f32 %v6013_v49, %v6031_v53 }
 0x5d4   :  { %v6000_v17 = vpop.permute.xlu0 %5999 }
 0x5d5   :  { %v5998_v15 = vpop.permute.xlu1 %5997  ;;  %6066 = vrot.lane.b32.xlu0 %v10218_v14, %s8159_s0 }
 0x5d6   :  { %v6005_v21 = vsel %vm1477_vm15, %v5998_v15, %v6000_v17 }
 0x5d7   :  { %v6016_v56 = vmax.f32 %v5970_v46, %v6005_v21 }
 0x5d9   :  { %v6026_v37 = vpop.permute.xlu1 %6025  ;;  %6094 = vrot.lane.b32.xlu0 %v10218_v14, %s8170_s12 }
 0x5db   :  { %v5996_v26 = vpop.permute.xlu0 %5995 }
 0x5dc   :  { %v6015_v54 = vmax.f32 %v5981_v47, %v5996_v26  ;;  %v6004_v20 = vsel %vm1477_vm15, %v5994_v55, %v5996_v26 }
 0x5dd   :  { %v6002_v18 = vpop.permute.xlu1 %6001  ;;  %v6014_v33 = vmax.f32 %v10198_v1, %v6004_v20 }
 0x5de   :  { %v6018_v27 = vmax.f32 %v5984_v62, %v6002_v18  ;;  %v6006_v60 = vsel %vm1477_vm15, %v6000_v17, %v6002_v18  ;;  %vm6329_vm15 = vcmask 517504  }
 0x5df   :  { %v6024_v23 = vpop.permute.xlu0 %6023  ;;  %v6017_v34 = vmax.f32 %v5971_v42, %v6006_v60 }
 0x5e0   :  { %v6043_v24 = vmax.f32 %v6015_v54, %v6024_v23  ;;  %v6032_v39 = vsel %vm1809_vm6, %v6022_v50, %v6024_v23 }
 0x5e1   :  { %v6030_v30 = vpop.permute.xlu1 %6029  ;;  %v6042_v40 = vmax.f32 %v6014_v33, %v6032_v39 }
 0x5e2   :  { %v6046_v25 = vmax.f32 %v6018_v27, %v6030_v30  ;;  %6050 = vst.msk [vmem:[#allocation4 + $0x10] sm:$0xff] %vm6049_vm2, %v6043_v24 }
 0x5e3   :  { %v6028_v19 = vpop.permute.xlu0 %6027 }
 0x5e4   :  { %v6033_v16 = vsel %vm1809_vm6, %v6026_v37, %v6028_v19  ;;  %6053 = vst.msk [vmem:[#allocation4 + $0x28] sm:$0xff] %vm6049_vm2, %v6046_v25  ;;  %v6034_v32 = vsel %vm1809_vm6, %v6028_v19, %v6030_v30  ;;  %vm6237_vm6 = vcmask 130048  }
 0x5e5   :  { %v6044_v38 = vmax.f32 %v6016_v56, %v6033_v16  ;;  %v6045_v29 = vmax.f32 %v6017_v34, %v6034_v32 }
 0x5e7   :  { %6100 = vrot.lane.b32.xlu1 %v6044_v38, %s8170_s12  ;;  %6072 = vrot.lane.b32.xlu0 %v6044_v38, %s8159_s0 }
 0x5e9   :  { %v6056_v31 = vld [vmem:[#allocation4 + $0x10] sm:$0xff] }
 0x5ea   :  { %6124 = vst [vmem:[#allocation4 + $0x10] sm:$0xff] %v8157_v7 }
 0x5eb   :  { %v6059_v2 = vld [vmem:[#allocation4 + $0x28] sm:$0xff]  ;;  %6070 = vrot.lane.b32.xlu0 %v6056_v31, %s8159_s0 }
 0x5ec   :  { %6127 = vst [vmem:[#allocation4 + $0x28] sm:$0xff] %v8157_v7  ;;  %6076 = vrot.lane.b32.xlu1 %v6059_v2, %s8159_s0 }
 0x5ef   :  { %6102 = vrot.lane.b32.xlu0 %v6045_v29, %s8170_s12 }
 0x5f0   :  { %6104 = vrot.lane.b32.xlu1 %v6059_v2, %s8170_s12 }
 0x5f3   :  { %6098 = vrot.lane.b32.xlu0 %v6056_v31, %s8170_s12 }
 0x5f4   :  { %6074 = vrot.lane.b32.xlu1 %v6045_v29, %s8159_s0 }
 0x5f8   :  { %6068 = vrot.lane.b32.xlu1 %v6042_v40, %s8159_s0  ;;  %s8183_s0 = smov 80  }
 0x5fc   :  { %6096 = vrot.lane.b32.xlu1 %v6042_v40, %s8170_s12 }
 0x647   :  { %v6067_v44 = vpop.permute.xlu0 %6066 }
 0x64b   :  { %v6095_v22 = vpop.permute.xlu0 %6094 }
 0x659   :  { %v6101_v28 = vpop.permute.xlu1 %6100  ;;  %v6073_v57 = vpop.permute.xlu0 %6072 }
 0x65d   :  { %v6071_v58 = vpop.permute.xlu0 %6070 }
 0x65e   :  { %v6077_v52 = vpop.permute.xlu1 %6076  ;;  %v6090_v61 = vmax.f32 %v6056_v31, %v6071_v58 }
 0x65f   :  { %v6093_v51 = vmax.f32 %v6059_v2, %v6077_v52 }
 0x661   :  { %v6103_v41 = vpop.permute.xlu0 %6102 }
 0x662   :  { %v6105_v11 = vpop.permute.xlu1 %6104  ;;  %v6108_v36 = vsel %vm3249_vm13, %v6101_v28, %v6103_v41 }
 0x663   :  { %v6121_v59 = vmax.f32 %v6093_v51, %v6105_v11  ;;  %v6109_v45 = vsel %vm3249_vm13, %v6103_v41, %v6105_v11 }
 0x665   :  { %6134 = vst.msk [vmem:[#allocation4 + $0x28] sm:$0xff] %vm6130_vm5, %v6121_v59  ;;  %v6099_v48 = vpop.permute.xlu0 %6098 }
 0x666   :  { %v6075_v43 = vpop.permute.xlu1 %6074  ;;  %v6118_v0 = vmax.f32 %v6090_v61, %v6099_v48 }
 0x667   :  { %v6080_v1 = vsel %vm1239_vm0, %v6073_v57, %v6075_v43  ;;  %v6081_v4 = vsel %vm1239_vm0, %v6075_v43, %v6077_v52 }
 0x668   :  { %v6091_v5 = vmax.f32 %v6044_v38, %v6080_v1  ;;  %v6092_v9 = vmax.f32 %v6045_v29, %v6081_v4  ;;  %6131 = vst.msk [vmem:[#allocation4 + $0x10] sm:$0xff] %vm6130_vm5, %v6118_v0 }
 0x66a   :  { %v6119_v10 = vmax.f32 %v6091_v5, %v6108_v36  ;;  %v6120_v63 = vmax.f32 %v6092_v9, %v6109_v45  ;;  %v6069_v6 = vpop.permute.xlu1 %6068  ;;  %v6592_v45 = vld [vmem:[%s10593_s5 + $0x80] sm:$0xff] }
 0x66b   :  { %v6078_v3 = vsel %vm1239_vm0, %v6067_v44, %v6069_v6  ;;  %v6079_v8 = vsel %vm1239_vm0, %v6069_v6, %v6071_v58  ;;  %vm6287_vm0 = vcmask 123904  }
 0x66c   :  { %v6088_v42 = vmax.f32 %v10218_v14, %v6078_v3  ;;  %v6089_v46 = vmax.f32 %v6042_v40, %v6079_v8  ;;  %v6577_v3 = vld [vmem:[%s10593_s5 + $0x8] sm:$0xff]  ;;  %v6594_v8 = vld [vmem:[%s10593_s5 + $0x90] sm:$0xff] }
 0x66e   :  { %v6097_v47 = vpop.permute.xlu1 %6096 }
 0x66f   :  { %v6106_v62 = vsel %vm3249_vm13, %v6095_v22, %v6097_v47  ;;  %v6107_v12 = vsel %vm3249_vm13, %v6097_v47, %v6099_v48  ;;  %vm6301_vm13 = vcmask 255104  }
 0x670   :  { %v6116_v55 = vmax.f32 %v6088_v42, %v6106_v62  ;;  %v6117_v13 = vmax.f32 %v6089_v46, %v6107_v12  ;;  %v6595_v42 = vld [vmem:[%s10593_s5 + $0x98] sm:$0xff]  ;;  %v6578_v12 = vld [vmem:[%s10593_s5 + $0x10] sm:$0xff] }
 0x671   :  { %v7858_v62 = vpack.c.bf16 %v6595_v42, %v6594_v8 }
 0x672   :  { %6141 = vxpose.xlu0.b32.start [1/2] (short) %v6116_v55, 128  ;;  %6173 = vxpose.xlu1.b32.start [1/2] (short) %v6117_v13, 128  ;;  %v6579_v55 = vld [vmem:[%s10593_s5 + $0x18] sm:$0xff] }
 0x676   :  { %6142 = vxpose.xlu0.b32.end [2/2] (short) %v6119_v10, 128  ;;  %6174 = vxpose.xlu1.b32.end [2/2] (short) %v6120_v63, 128  ;;  %v6593_v10 = vld [vmem:[%s10593_s5 + $0x88] sm:$0xff]  ;;  %v6576_v63 = vld [vmem:[%s10593_s5] sm:$0xff] }
 0x677   :  { %v7854_v6 = vpack.c.bf16 %v6593_v10, %v6592_v45  ;;  %v7856_v47 = vpack.c.bf16 %v6577_v3, %v6576_v63 }
 0x679   :  { %7855 = vmatprep.subr.bf16.mxu0 %v7854_v6 }
 0x67a   :  { %7857 = vmatpush3.bf16.msra.mxu0 %v7856_v47 }
 0x67b   :  { %7859 = vmatprep.subr.bf16.mxu0 %v7858_v62 }
 0x6f2   :  { %v6189_v35 = vpop.trf.xlu1  ;;  %v6157_v49 = vpop.trf.xlu0 }
 0x6f3   :  { %6254 = vst.msk [vmem:[#allocation5 + $0x80] sm:$0xff] %vm6237_vm6, %v6189_v35  ;;  %6238 = vst.msk [vmem:[#allocation5] sm:$0xff] %vm6237_vm6, %v6157_v49  ;;  %v6596_v35 = vld [vmem:[%s10593_s5 + $0xa0] sm:$0xff]  ;;  %v6597_v49 = vld [vmem:[%s10593_s5 + $0xa8] sm:$0xff] }
 0x6f6   :  { %v6190_v50 = vpop.trf.xlu1  ;;  %v6158_v53 = vpop.trf.xlu0 }
 0x6f7   :  { %6255 = vst.msk [vmem:[#allocation5 + $0x88] sm:$0xff] %vm6237_vm6, %v6190_v50  ;;  %6239 = vst.msk [vmem:[#allocation5 + $0x8] sm:$0xff] %vm6237_vm6, %v6158_v53  ;;  %v7860_v50 = vpack.c.bf16 %v6579_v55, %v6578_v12 }
 0x6f9   :  { %7861 = vmatpush3.bf16.msra.mxu0 %v7860_v50 }
 0x6fa   :  { %v6191_v14 = vpop.trf.xlu1  ;;  %v6159_v15 = vpop.trf.xlu0  ;;  %v7153_v17 = vld.sshfl [vmem:[#allocation5 + $0x4] sm:$0x3 pattern:$0x76325410]  ;;  %v6286_v37 = vld [vmem:[#allocation5] sm:$0x3] }
 0x6fb   :  { %6240 = vst.msk [vmem:[#allocation5 + $0x10] sm:$0xff] %vm6237_vm6, %v6159_v15  ;;  %6298 = vrot.lane.b32.xlu0 %v7153_v17, %s8182_s3  ;;  %v7164_v26 = vld.sshfl [vmem:[#allocation5 + $0x84] sm:$0x3 pattern:$0x76325410]  ;;  %v7862_v14 = vpack.c.bf16 %v6597_v49, %v6596_v35  ;;  %v6580_v15 = vld [vmem:[%s10593_s5 + $0x20] sm:$0xff] }
 0x6fc   :  { %6288 = vst.msk [vmem:[#allocation6] sm:$0x3] %vm6287_vm0, %v6286_v37  ;;  %6450 = vrot.lane.b32.xlu1 %v7164_v26, %s8183_s0  ;;  %v7163_v23 = vld.sshfl [vmem:[#allocation5 + $0x80] sm:$0x3 pattern:$0x76325410] }
 0x6fd   :  { %v6581_v17 = vld [vmem:[%s10593_s5 + $0x28] sm:$0xff]  ;;  %7863 = vmatprep.subr.bf16.mxu0 %v7862_v14 }
 0x6fe   :  { %v6192_v18 = vpop.trf.xlu1  ;;  %v6160_v54 = vpop.trf.xlu0  ;;  %v7155_v21 = vld.sshfl [vmem:[#allocation5 + $0xc] sm:$0x3 pattern:$0x76325410] }
 0x6ff   :  { %6437 = vrot.lane.b32.xlu0 %v7163_v23, %s8172_s14  ;;  %v7154_v24 = vld.sshfl [vmem:[#allocation5 + $0x8] sm:$0x3 pattern:$0x76325410]  ;;  %v7864_v18 = vpack.c.bf16 %v6581_v17, %v6580_v15  ;;  %v6137_v23 = vld [vmem:[#allocation4 + $0x10] sm:$0xff]  ;;  %v6638_v15 = vlaneseq }
 0x700   :  { %6312 = vrot.lane.b32.xlu1 %v7154_v24, %s8160_s20  ;;  %v7165_v16 = vld.sshfl [vmem:[#allocation5 + $0x88] sm:$0x3 pattern:$0x76325410] }
 0x701   :  { %7865 = vmatpush3.bf16.msra.mxu0 %v7864_v18  ;;  %v6599_v24 = vld [vmem:[%s10593_s5 + $0xb8] sm:$0xff] }
 0x702   :  { %v6193_v27 = vpop.trf.xlu1  ;;  %v6161_v30 = vpop.trf.xlu0  ;;  %v7156_v25 = vld.sshfl [vmem:[#allocation5 + $0x10] sm:$0x3 pattern:$0x76325410] }
 0x703   :  { %6326 = vrot.lane.b32.xlu0 %v7155_v21, %s8184_s24  ;;  %v6598_v21 = vld [vmem:[%s10593_s5 + $0xb0] sm:$0xff] }
 0x704   :  { %6340 = vrot.lane.b32.xlu1 %v7156_v25, %s8172_s14  ;;  %v7866_v27 = vpack.c.bf16 %v6599_v24, %v6598_v21  ;;  %v6582_v30 = vld [vmem:[%s10593_s5 + $0x30] sm:$0xff]  ;;  %v6583_v25 = vld [vmem:[%s10593_s5 + $0x38] sm:$0xff]  ;;  %v6609_v21 = vld [vmem:[%s10593_s5 + $0x108] sm:$0xff] }
 0x706   :  { %v6194_v56 = vpop.trf.xlu1  ;;  %v6162_v19 = vpop.trf.xlu0  ;;  %7867 = vmatprep.subr.bf16.mxu0 %v7866_v27 }
 0x707   :  { %6463 = vrot.lane.b32.xlu0 %v7165_v16, %s8167_s28  ;;  %v7868_v56 = vpack.c.bf16 %v6583_v25, %v6582_v30  ;;  %v6140_v19 = vld [vmem:[#allocation4 + $0x28] sm:$0xff]  ;;  %v6600_v16 = vld [vmem:[%s10593_s5 + $0xc0] sm:$0xff] }
 0x709   :  { %7869 = vmatpush3.bf16.msra.mxu0 %v7868_v56 }
 0x70a   :  { %v6195_v38 = vpop.trf.xlu1  ;;  %v6163_v60 = vpop.trf.xlu0 }
 0x70b   :  { %6260 = vst.msk [vmem:[#allocation5 + $0xb0] sm:$0xff] %vm6237_vm6, %v6195_v38  ;;  %v6601_v38 = vld [vmem:[%s10593_s5 + $0xc8] sm:$0xff] }
 0x70e   :  { %v6196_v31 = vpop.trf.xlu1  ;;  %v6164_v32 = vpop.trf.xlu0 }
 0x70f   :  { %6261 = vst.msk [vmem:[#allocation5 + $0xb8] sm:$0xff] %vm6237_vm6, %v6196_v31  ;;  %6245 = vst.msk [vmem:[#allocation5 + $0x38] sm:$0xff] %vm6237_vm6, %v6164_v32  ;;  %v7870_v31 = vpack.c.bf16 %v6601_v38, %v6600_v16  ;;  %v6584_v32 = vld [vmem:[%s10593_s5 + $0x40] sm:$0xff]  ;;  %v6611_v16 = vld [vmem:[%s10593_s5 + $0x118] sm:$0xff] }
 0x711   :  { %7871 = vmatprep.subr.bf16.mxu0 %v7870_v31  ;;  %v6612_v31 = vld [vmem:[%s10593_s5 + $0x120] sm:$0xff] }
 0x712   :  { %v6197_v34 = vpop.trf.xlu1  ;;  %v6165_v2 = vpop.trf.xlu0  ;;  %v7166_v13 = vld.sshfl [vmem:[#allocation5 + $0xb4] sm:$0x3 pattern:$0x76325410] }
 0x713   :  { %6262 = vst.msk [vmem:[#allocation5 + $0xc0] sm:$0xff] %vm6237_vm6, %v6197_v34  ;;  %6246 = vst.msk [vmem:[#allocation5 + $0x40] sm:$0xff] %vm6237_vm6, %v6165_v2  ;;  %v6585_v34 = vld [vmem:[%s10593_s5 + $0x48] sm:$0xff] }
 0x714   :  { %v7872_v2 = vpack.c.bf16 %v6585_v34, %v6584_v32  ;;  %v6613_v32 = vld [vmem:[%s10593_s5 + $0x128] sm:$0xff] }
 0x715   :  { %v7893_v34 = vpack.c.bf16 %v6613_v32, %v6612_v31  ;;  %v6900_v31 = vld [vmem:[%s10597_s9 + $0x38] sm:$0xff] }
 0x716   :  { %v6198_v29 = vpop.trf.xlu1  ;;  %v6166_v20 = vpop.trf.xlu0  ;;  %v7167_v39 = vld.sshfl [vmem:[#allocation5 + $0xbc] sm:$0x3 pattern:$0x76325410]  ;;  %v6480_v33 = vld [vmem:[#allocation5 + $0xb8] sm:$0x3]  ;;  %7873 = vmatpush3.bf16.msra.mxu0 %v7872_v2 }
 0x717   :  { %6247 = vst.msk [vmem:[#allocation5 + $0x48] sm:$0xff] %vm6237_vm6, %v6166_v20  ;;  %6491 = vrot.lane.b32.xlu0 %v7167_v39, %s8182_s3  ;;  %v7157_v40 = vld.sshfl [vmem:[#allocation5 + $0x3c] sm:$0x3 pattern:$0x76325410]  ;;  %v6602_v20 = vld [vmem:[%s10593_s5 + $0xd0] sm:$0xff] }
 0x718   :  { %6481 = vst.msk [vmem:[#allocation6 + $0x4] sm:$0x3] %vm6287_vm0, %v6480_v33  ;;  %v6603_v39 = vld [vmem:[%s10593_s5 + $0xd8] sm:$0xff]  ;;  %v6614_v2 = vld [vmem:[%s10593_s5 + $0x130] sm:$0xff] }
 0x71a   :  { %v6199_v44 = vpop.trf.xlu1  ;;  %v6167_v22 = vpop.trf.xlu0  ;;  %v7168_v28 = vld.sshfl [vmem:[#allocation5 + $0xc0] sm:$0x3 pattern:$0x76325410] }
 0x71b   :  { %6354 = vrot.lane.b32.xlu0 %v7157_v40, %s8183_s0  ;;  %6504 = vrot.lane.b32.xlu1 %v7168_v28, %s8160_s20  ;;  %v7158_v57 = vld.sshfl [vmem:[#allocation5 + $0x40] sm:$0x3 pattern:$0x76325410]  ;;  %v7874_v40 = vpack.c.bf16 %v6603_v39, %v6602_v20  ;;  %v6587_v22 = vld [vmem:[%s10593_s5 + $0x58] sm:$0xff]  ;;  %v6616_v39 = vld [vmem:[%s10593_s5 + $0x140] sm:$0xff] }
 0x71c   :  { %v7169_v51 = vld.sshfl [vmem:[#allocation5 + $0xc4] sm:$0x3 pattern:$0x76325410] }
 0x71d   :  { %v7159_v37 = vld.sshfl [vmem:[#allocation5 + $0x44] sm:$0x3 pattern:$0x76325410]  ;;  %7875 = vmatprep.subr.bf16.mxu0 %v7874_v40 }
 0x71e   :  { %v6200_v58 = vpop.trf.xlu1  ;;  %v6168_v52 = vpop.trf.xlu0  ;;  %v6387_v41 = vld [vmem:[#allocation5 + $0x48] sm:$0x3]  ;;  %v7160_v11 = vld.sshfl [vmem:[#allocation5 + $0x4c] sm:$0x3 pattern:$0x76325410] }
 0x71f   :  { %6517 = vrot.lane.b32.xlu0 %v7169_v51, %s8184_s24  ;;  %6368 = vrot.lane.b32.xlu1 %v7158_v57, %s8167_s28  ;;  %6388 = vst.msk [vmem:[#allocation6 + $0x2] sm:$0x3] %vm6287_vm0, %v6387_v41  ;;  %v6586_v44 = vld [vmem:[%s10593_s5 + $0x50] sm:$0xff]  ;;  %v6604_v57 = vld [vmem:[%s10593_s5 + $0xe0] sm:$0xff] }
 0x720   :  { %v7876_v28 = vpack.c.bf16 %v6587_v22, %v6586_v44  ;;  %v6605_v58 = vld [vmem:[%s10593_s5 + $0xe8] sm:$0xff]  ;;  %v6588_v52 = vld [vmem:[%s10593_s5 + $0x60] sm:$0xff]  ;;  %v6618_v44 = vld [vmem:[%s10593_s5 + $0x150] sm:$0xff] }
 0x721   :  { %v7878_v41 = vpack.c.bf16 %v6605_v58, %v6604_v57  ;;  %v6619_v22 = vld [vmem:[%s10593_s5 + $0x158] sm:$0xff]  ;;  %v6620_v57 = vld [vmem:[%s10593_s5 + $0x160] sm:$0xff]  ;;  %v6621_v58 = vld [vmem:[%s10593_s5 + $0x168] sm:$0xff] }
 0x722   :  { %v6201_v59 = vpop.trf.xlu1  ;;  %v6169_v61 = vpop.trf.xlu0  ;;  %7877 = vmatpush3.bf16.msra.mxu0 %v7876_v28  ;;  %v7902_v28 = vpack.c.bf16 %v6619_v22, %v6618_v44 }
 0x723   :  { %6398 = vrot.lane.b32.xlu1 %v7160_v11, %s8182_s3  ;;  %v6589_v11 = vld [vmem:[%s10593_s5 + $0x68] sm:$0xff]  ;;  %v6606_v59 = vld [vmem:[%s10593_s5 + $0xf0] sm:$0xff]  ;;  %v6607_v61 = vld [vmem:[%s10593_s5 + $0xf8] sm:$0xff]  ;;  %7879 = vmatprep.subr.bf16.mxu0 %v7878_v41 }
 0x724   :  { %v6623_v41 = vld [vmem:[%s10593_s5 + $0x178] sm:$0xff] }
 0x726   :  { %v6202_v48 = vpop.trf.xlu1  ;;  %v6170_v43 = vpop.trf.xlu0 }
 0x727   :  { %v7880_v48 = vpack.c.bf16 %v6589_v11, %v6588_v52  ;;  %v7905_v52 = vpack.c.bf16 %v6621_v58, %v6620_v57 }
 0x729   :  { %7881 = vmatpush3.bf16.msra.mxu0 %v7880_v48 }
 0x72a   :  { %v6203_v0 = vpop.trf.xlu1  ;;  %v6171_v1 = vpop.trf.xlu0 }
 0x72b   :  { %6268 = vst.msk [vmem:[#allocation5 + $0xf0] sm:$0xff] %vm6237_vm6, %v6203_v0  ;;  %v7882_v0 = vpack.c.bf16 %v6607_v61, %v6606_v59  ;;  %v6590_v1 = vld [vmem:[%s10593_s5 + $0x70] sm:$0xff]  ;;  %v6624_v59 = vld [vmem:[%s10593_s5 + $0x180] sm:$0xff]  ;;  %v6625_v61 = vld [vmem:[%s10593_s5 + $0x188] sm:$0xff] }
 0x72c   :  { %v7911_v48 = vpack.c.bf16 %v6625_v61, %v6624_v59 }
 0x72d   :  { %7883 = vmatprep.subr.bf16.mxu0 %v7882_v0  ;;  %v6798_v0 = vld [vmem:[%s10595_s7 + $0x8] sm:$0xff] }
 0x72e   :  { %v6172_v4 = vpop.trf.xlu0  ;;  %v6204_v5 = vpop.trf.xlu1 }
 0x72f   :  { %6253 = vst.msk [vmem:[#allocation5 + $0x78] sm:$0xff] %vm6237_vm6, %v6172_v4  ;;  %6269 = vst.msk [vmem:[#allocation5 + $0xf8] sm:$0xff] %vm6237_vm6, %v6204_v5  ;;  %v6591_v4 = vld [vmem:[%s10593_s5 + $0x78] sm:$0xff] }
 0x732   :  { %v7171_v9 = vld.sshfl [vmem:[#allocation5 + $0xf4] sm:$0x3 pattern:$0x76325410] }
 0x733   :  { %6543 = vrot.lane.b32.xlu0 %v7171_v9, %s8183_s0  ;;  %v7170_v36 = vld.sshfl [vmem:[#allocation5 + $0xf0] sm:$0x3 pattern:$0x76325410]  ;;  %s8185_s0 = smov 112   ;;  %v7884_v9 = vpack.c.bf16 %v6591_v4, %v6590_v1  ;;  %v6799_v1 = vld [vmem:[%s10595_s7 + $0x10] sm:$0xff] }
 0x734   :  { %6530 = vrot.lane.b32.xlu1 %v7170_v36, %s8172_s14  ;;  %v8186_v36 = vmov 0.0|0.0   ;;  %s8189_s14 = smov [#allocation7]  }
 0x735   :  { %7885 = vmatpush3.bf16.msra.mxu0 %v7884_v9 }
 0x736   :  { %v7161_v46 = vld.sshfl [vmem:[#allocation5 + $0x78] sm:$0x3 pattern:$0x76325410]  ;;  %7886 = vmatprep.subr.bf16.mxu0 %v8186_v36 }
 0x737   :  { %6411 = vrot.lane.b32.xlu0 %v7161_v46, %s8160_s20  ;;  %v7162_v53 = vld.sshfl [vmem:[#allocation5 + $0x7c] sm:$0x3 pattern:$0x76325410] }
 0x738   :  { %6476 = vrot.lane.b32.xlu1 %v7166_v13, %s8185_s0  ;;  %v7173_v26 = vld.sshfl [vmem:[#allocation5 + $0xfc] sm:$0x3 pattern:$0x76325410] }
 0x739   :  { %v7172_v54 = vld.sshfl [vmem:[#allocation5 + $0xf8] sm:$0x3 pattern:$0x76325410] }
 0x73b   :  { %6382 = vrot.lane.b32.xlu0 %v7159_v37, %s8185_s0 }
 0x73c   :  { %6424 = vrot.lane.b32.xlu1 %v7162_v53, %s8184_s24  ;;  %v8187_v53 = vmov 1983009808  }
 0x73d   :  { %v6636_v14 = vunpack.c.l.s4 %v8187_v53 }
 0x73f   :  { %6569 = vrot.lane.b32.xlu0 %v7173_v26, %s8185_s0  ;;  %v6637_v37 = vunpack.c.0.s8 %v6636_v14  ;;  %v6639_v26 = vshrl.u32 %v6638_v15, 7 }
 0x740   :  { %6556 = vrot.lane.b32.xlu1 %v7172_v54, %s8167_s28 }
 0x741   :  { %v6640_v18 = vsub.s32 %v6637_v37, %v6639_v26  ;;  %v6893_v26 = vld [vmem:[%s10597_s9] sm:$0xff] }
 0x769   :  { %6205 = vxpose.xlu1.b32.start [1/2] (short) %v6137_v23, 128  ;;  %v6608_v23 = vld [vmem:[%s10593_s5 + $0x100] sm:$0xff] }
 0x76a   :  { %v7887_v25 = vpack.c.bf16 %v6609_v21, %v6608_v23 }
 0x76d   :  { %6206 = vxpose.xlu1.b32.end [2/2] (short) %v6140_v19, 128  ;;  %v6299_v60 = vpop.permute.xlu0 %6298  ;;  %v6610_v19 = vld [vmem:[%s10593_s5 + $0x110] sm:$0xff] }
 0x76e   :  { %6302 = vst.msk [vmem:[#allocation6] sm:$0x3] %vm6301_vm13, %v6299_v60  ;;  %v10348_v29 = vpop.permute.xlu1 %6450  ;;  %v7890_v60 = vpack.c.bf16 %v6611_v16, %v6610_v19  ;;  %v6897_v19 = vld [vmem:[%s10597_s9 + $0x20] sm:$0xff]  ;;  %v6898_v16 = vld [vmem:[%s10597_s9 + $0x28] sm:$0xff] }
 0x771   :  { %v6438_v33 = vpop.permute.xlu0 %6437 }
 0x772   :  { %v6313_v51 = vpop.permute.xlu1 %6312 }
 0x773   :  { %6316 = vst.msk [vmem:[#allocation6] sm:$0x3] %vm6315_vm14, %v6313_v51  ;;  %v6622_v51 = vld [vmem:[%s10593_s5 + $0x170] sm:$0xff] }
 0x774   :  { %v7908_v11 = vpack.c.bf16 %v6623_v41, %v6622_v51 }
 0x775   :  { %v6327_v43 = vpop.permute.xlu0 %6326 }
 0x776   :  { %6330 = vst.msk [vmem:[#allocation6] sm:$0x3] %vm6329_vm15, %v6327_v43  ;;  %v6341_v5 = vpop.permute.xlu1 %6340  ;;  %v6797_v43 = vld [vmem:[%s10595_s7] sm:$0xff] }
 0x777   :  { %6344 = vst.msk [vmem:[#allocation6] sm:$0x3] %vm6343_vm3, %v6341_v5  ;;  %v7914_v4 = vpack.c.bf16 %v6798_v0, %v6797_v43  ;;  %v6800_v5 = vld [vmem:[%s10595_s7 + $0x18] sm:$0xff] }
 0x778   :  { %v7917_v9 = vpack.c.bf16 %v6800_v5, %v6799_v1 }
 0x779   :  { %v6464_v45 = vpop.permute.xlu0 %6463 }
 0x789   :  { %v6492_v10 = vpop.permute.xlu0 %6491 }
 0x78a   :  { %6494 = vst.msk [vmem:[#allocation6 + $0x4] sm:$0x3] %vm6301_vm13, %v6492_v10  ;;  %v6802_v10 = vld [vmem:[%s10595_s7 + $0x28] sm:$0xff] }
 0x78d   :  { %v6355_v63 = vpop.permute.xlu0 %6354  ;;  %v6505_v6 = vpop.permute.xlu1 %6504 }
 0x78e   :  { %6358 = vst.msk [vmem:[#allocation6] sm:$0x3] %vm6357_vm7, %v6355_v63 }
 0x78f   :  { %6507 = vst.msk [vmem:[#allocation6 + $0x4] sm:$0x3] %vm6315_vm14, %v6505_v6  ;;  %v6803_v6 = vld [vmem:[%s10595_s7 + $0x30] sm:$0xff] }
 0x791   :  { %v6518_v3 = vpop.permute.xlu0 %6517  ;;  %v6369_v8 = vpop.permute.xlu1 %6368 }
 0x792   :  { %6520 = vst.msk [vmem:[#allocation6 + $0x4] sm:$0x3] %vm6329_vm15, %v6518_v3  ;;  %v6804_v3 = vld [vmem:[%s10595_s7 + $0x38] sm:$0xff] }
 0x793   :  { %6372 = vst.msk [vmem:[#allocation6] sm:$0x3] %vm6371_vm4, %v6369_v8  ;;  %v7923_v8 = vpack.c.bf16 %v6804_v3, %v6803_v6 }
 0x795   :  { %v6399_v42 = vpop.permute.xlu1 %6398 }
 0x796   :  { %6401 = vst.msk [vmem:[#allocation6 + $0x2] sm:$0x3] %vm6301_vm13, %v6399_v42  ;;  %v6805_v42 = vld [vmem:[%s10595_s7 + $0x40] sm:$0xff] }
 0x7a5   :  { %v6544_v46 = vpop.permute.xlu0 %6543 }
 0x7a6   :  { %v6531_v47 = vpop.permute.xlu1 %6530 }
 0x7a7   :  { %6533 = vst.msk [vmem:[#allocation6 + $0x4] sm:$0x3] %vm6343_vm3, %v6531_v47 }
 0x7a8   :  { %6546 = vst.msk [vmem:[#allocation6 + $0x4] sm:$0x3] %vm6357_vm7, %v6544_v46  ;;  %v6806_v46 = vld [vmem:[%s10595_s7 + $0x48] sm:$0xff] }
 0x7a9   :  { %v6412_v62 = vpop.permute.xlu0 %6411  ;;  %v7926_v47 = vpack.c.bf16 %v6806_v46, %v6805_v42 }
 0x7aa   :  { %v6477_v12 = vpop.permute.xlu1 %6476  ;;  %6414 = vst.msk [vmem:[#allocation6 + $0x2] sm:$0x3] %vm6315_vm14, %v6412_v62  ;;  %v6807_v62 = vld [vmem:[%s10595_s7 + $0x50] sm:$0xff] }
 0x7ad   :  { %v6383_v55 = vpop.permute.xlu0 %6382 }
 0x7ae   :  { %v6425_v13 = vpop.permute.xlu1 %6424  ;;  %6386 = vst.msk [vmem:[#allocation6] sm:$0x3] %vm6385_vm9, %v6383_v55 }
 0x7af   :  { %6427 = vst.msk [vmem:[#allocation6 + $0x2] sm:$0x3] %vm6329_vm15, %v6425_v13  ;;  %v6809_v13 = vld [vmem:[%s10595_s7 + $0x60] sm:$0xff] }
 0x7b0   :  { %6440 = vst.msk [vmem:[#allocation6 + $0x2] sm:$0x3] %vm6343_vm3, %v6438_v33  ;;  %v6617_v33 = vld [vmem:[%s10593_s5 + $0x148] sm:$0xff] }
 0x7b1   :  { %6453 = vst.msk [vmem:[#allocation6 + $0x2] sm:$0x3] %vm6357_vm7, %v10348_v29  ;;  %v6570_v35 = vpop.permute.xlu0 %6569  ;;  %v6615_v29 = vld [vmem:[%s10593_s5 + $0x138] sm:$0xff]  ;;  %v7899_v40 = vpack.c.bf16 %v6617_v33, %v6616_v39  ;;  %s6997_s5 = sshll.u32 %s8189_s14, 4  ;;  %s6998_s5 = int_to_ptr.vmem [resolvable:$true] %s6997_s5 }
 0x7b2   :  { %6466 = vst.msk [vmem:[#allocation6 + $0x2] sm:$0x3] %vm6371_vm4, %v6464_v45  ;;  %v6557_v49 = vpop.permute.xlu1 %6556  ;;  %v7896_v20 = vpack.c.bf16 %v6615_v29, %v6614_v2  ;;  %v6801_v45 = vld [vmem:[%s10595_s7 + $0x20] sm:$0xff]  ;;  %v6902_v2 = vld [vmem:[%s10597_s9 + $0x48] sm:$0xff]  ;;  %p8138_p1 = scmp.lt.s32.totalorder %s6998_s5, %s6998_s5 }
 0x7b3   :  { %6479 = vst.msk [vmem:[#allocation6 + $0x2] sm:$0x3] %vm6385_vm9, %v6477_v12  ;;  %v7920_v63 = vpack.c.bf16 %v6802_v10, %v6801_v45  ;;  %v6808_v12 = vld [vmem:[%s10595_s7 + $0x58] sm:$0xff] }
 0x7b4   :  { %6559 = vst.msk [vmem:[#allocation6 + $0x4] sm:$0x3] %vm6371_vm4, %v6557_v49  ;;  %v7929_v55 = vpack.c.bf16 %v6808_v12, %v6807_v62 }
 0x7b5   :  { %6572 = vst.msk [vmem:[#allocation6 + $0x4] sm:$0x3] %vm6385_vm9, %v6570_v35  ;;  %v6810_v35 = vld [vmem:[%s10595_s7 + $0x68] sm:$0xff] }
 0x7b6   :  { %v7932_v49 = vpack.c.bf16 %v6810_v35, %v6809_v13 }
 0x7e9   :  { %v6221_v50 = vpop.trf.xlu1 }
 0x7ea   :  { %6270 = vst.msk [vmem:[#allocation5 + $0x100] sm:$0xff] %vm6237_vm6, %v6221_v50  ;;  %v6811_v50 = vld [vmem:[%s10595_s7 + $0x70] sm:$0xff] }
 0x7ed   :  { %v6222_v39 = vpop.trf.xlu1 }
 0x7f1   :  { %v6573_v17 = vld [vmem:[#allocation5 + $0x100] sm:$0x3] }
 0x7f2   :  { %6574 = vst.msk [vmem:[#allocation6 + $0x6] sm:$0x3] %vm6287_vm0, %v6573_v17  ;;  %v7174_v17 = vld [vmem:[%s10594_s6] ss:$0 sm:$0xff] }
 0x7f9   :  { %v6575_v54 = vld [vmem:[#allocation6] sm:$0xff] }
 0x7fa   :  { %v6634_v24 = vcombine.high %v6575_v54, %v6575_v54  ;;  %v6641_v27 = vrot.slane %v6575_v54, %v6640_v18 }
 0x7fc   :  { %v6649_v30 = vcombine.high %v6641_v27, %v6641_v27  ;;  %v6648_v56 = vrot.slane %v6634_v24, %v6640_v18  ;;  %v6894_v18 = vld [vmem:[%s10597_s9 + $0x8] sm:$0xff] }
 0x7fd   :  { %v7935_v24 = vpack.c.bf16 %v6894_v18, %v6893_v26 }
 0x7fe   :  { %6720 = vmatprep.mubr.f32.mxu0 %v6649_v30  ;;  %v6650_v38 = vcombine.high %v6648_v56, %v6648_v56  ;;  %v6895_v30 = vld [vmem:[%s10597_s9 + $0x10] sm:$0xff] }
 0x7ff   :  { %6721 = vmatmul.mubr.f32.vlgmr.msra.gmra.mrb[20].mxu0 %v6641_v27 }
 0x800   :  { %7888 = vmatpush1.bf16.msra.mxu0 %v7887_v25  ;;  %7175 = vmatprep.mubr.msk.f32.mxu0 %vm6237_vm6, %v6650_v38  ;;  %v6896_v25 = vld [vmem:[%s10597_s9 + $0x18] sm:$0xff]  ;;  %v7941_v38 = vpack.c.bf16 %v6898_v16, %v6897_v19 }
 0x801   :  { %7889 = vmatprep.subr.bf16.mxu0 %v8186_v36 }
 0x804   :  { %7891 = vmatpush1.bf16.msra.mxu0 %v7890_v60  ;;  %v6899_v60 = vld [vmem:[%s10597_s9 + $0x30] sm:$0xff] }
 0x805   :  { %7892 = vmatprep.subr.bf16.mxu0 %v8186_v36  ;;  %v7944_v32 = vpack.c.bf16 %v6900_v31, %v6899_v60 }
 0x808   :  { %7894 = vmatpush1.bf16.msra.mxu0 %v7893_v34  ;;  %v6901_v34 = vld [vmem:[%s10597_s9 + $0x40] sm:$0xff] }
 0x809   :  { %7895 = vmatprep.subr.bf16.mxu0 %v8186_v36  ;;  %v7947_v29 = vpack.c.bf16 %v6902_v2, %v6901_v34 }
 0x80c   :  { %7897 = vmatpush1.bf16.msra.mxu0 %v7896_v20  ;;  %v6903_v20 = vld [vmem:[%s10597_s9 + $0x50] sm:$0xf] }
 0x80d   :  { %7898 = vmatprep.subr.bf16.mxu0 %v8186_v36 }
 0x810   :  { %7900 = vmatpush1.bf16.msra.mxu0 %v7899_v40 }
 0x811   :  { %7901 = vmatprep.subr.bf16.mxu0 %v8186_v36 }
 0x814   :  { %7903 = vmatpush1.bf16.msra.mxu0 %v7902_v28 }
 0x815   :  { %7904 = vmatprep.subr.bf16.mxu0 %v8186_v36 }
 0x818   :  { %7906 = vmatpush1.bf16.msra.mxu0 %v7905_v52 }
 0x819   :  { %7907 = vmatprep.subr.bf16.mxu0 %v8186_v36 }
 0x81c   :  { %7909 = vmatpush1.bf16.msra.mxu0 %v7908_v11 }
 0x81d   :  { %7910 = vmatprep.subr.bf16.mxu0 %v8186_v36 }
 0x820   :  { %7912 = vmatpush1.bf16.msra.mxu0 %v7911_v48 }
 0x821   :  { %7913 = vmatprep.subr.bf16.mxu0 %v8186_v36 }
 0x823   :  { %6791 = vmatmul.mubr.f32.vlgmr.msra.gmra.mrb[22].mxu0 %v6648_v56  ;;  %v7938_v56 = vpack.c.bf16 %v6896_v25, %v6895_v30 }
 0x824   :  { %7915 = vmatpush3.bf16.msra.mxu0 %v7914_v4  ;;  %7474 = vmatprep.mubr.msk.f32.mxu0 %vm8188_vm10, %v8157_v7  ;;  %v7178_v4 = vld [vmem:[%s10598_s10] ss:$0 sm:$0xff] }
 0x825   :  { %7916 = vmatprep.subr.bf16.mxu0 %v8186_v36 }
 0x828   :  { %7918 = vmatpush3.bf16.msra.mxu0 %v7917_v9 }
 0x829   :  { %7919 = vmatprep.subr.bf16.mxu0 %v8186_v36 }
 0x82c   :  { %7921 = vmatpush3.bf16.msra.mxu0 %v7920_v63 }
 0x82d   :  { %7922 = vmatprep.subr.bf16.mxu0 %v8186_v36 }
 0x830   :  { %7924 = vmatpush3.bf16.msra.mxu0 %v7923_v8 }
 0x831   :  { %7925 = vmatprep.subr.bf16.mxu0 %v8186_v36 }
 0x834   :  { %7927 = vmatpush3.bf16.msra.mxu0 %v7926_v47 }
 0x835   :  { %7928 = vmatprep.subr.bf16.mxu0 %v8186_v36 }
 0x838   :  { %7930 = vmatpush3.bf16.msra.mxu0 %v7929_v55 }
 0x839   :  { %7931 = vmatprep.subr.bf16.mxu0 %v8186_v36 }
 0x83c   :  { %7933 = vmatpush3.bf16.msra.mxu0 %v7932_v49 }
 0x83d   :  { %7472 = vmatprep.subr.mxu0 %v8157_v7 }
 0x840   :  { %7473 = vmatpush3.msra.mxu0 %v6811_v50 }
 0x841   :  { %7934 = vmatprep.subr.bf16.mxu0 %v8186_v36 }
 0x8d2   :  { %v7288_v53 = vpop.f32.mrb[20].mxu0 }
 0x8d3   :  { %v7289_v14 = vpop.f32.mrb[21].mxu0 }
 0x8d4   :  { %v7290_v15 = vadd.f32 %v7289_v14, %v7288_v53 }
 0x8d6   :  { %v6723_v37 = vadd.f32 %v7290_v15, %v7174_v17 }
 0x8f6   :  { %v6792_v54 = vpop.f32.mrb[22].mxu0 }
 0x8f7   :  { %v6793_v23 = vadd.f32 %v6792_v54, %v6723_v37  ;;  %v6794_v21 = vpop.f32.mrb[23].mxu0 }
 0x8f9   :  { %v6796_v27 = vmax.f32 %v6793_v23, 0.0 }
 0x8fb   :  { %7475 = vmatmul.mubr.msk.f32.vlgmr.msra.gmra.mrb[24].mxu0 %vm2167_vm8, %v6796_v27  ;;  %vm6915_vm8 = vcmask 1043456  }
 0x8fc   :  { %7936 = vmatpush3.bf16.msra.mxu0 %v7935_v24  ;;  %7499 = vmatprep.mubr.msk.f32.mxu0 %vm8188_vm10, %v8157_v7 }
 0x8fd   :  { %7937 = vmatprep.subr.bf16.mxu0 %v8186_v36 }
 0x900   :  { %7939 = vmatpush3.bf16.msra.mxu0 %v7938_v56 }
 0x901   :  { %7940 = vmatprep.subr.bf16.mxu0 %v8186_v36 }
 0x904   :  { %7942 = vmatpush3.bf16.msra.mxu0 %v7941_v38 }
 0x905   :  { %7943 = vmatprep.subr.bf16.mxu0 %v8186_v36 }
 0x908   :  { %7945 = vmatpush3.bf16.msra.mxu0 %v7944_v32 }
 0x909   :  { %7946 = vmatprep.subr.bf16.mxu0 %v8186_v36  ;;  %v6223_v36 = vpop.trf.xlu1 }
 0x90c   :  { %7948 = vmatpush3.bf16.msra.mxu0 %v7947_v29 }
 0x90d   :  { %7497 = vmatprep.subr.mxu0 %v8157_v7  ;;  %v6224_v33 = vpop.trf.xlu1  ;;  %v7176_v7 = vld [vmem:[%s10596_s8] ss:$0 sm:$0xff]  ;;  %s8133_s8 = scalar_lea.vmem %s6998_s5, 32 }
 0x90e   :  { %p8134_p0 = scmp.ne.s32.totalorder %s6998_s5, %s8133_s8  ;;  %p8139_p2 = scmp.lt.s32.totalorder %s8133_s8, %s8133_s8 }
 0x910   :  { %7498 = vmatpush3.msk.msra.mxu0 %vm6915_vm8, %v6903_v20  ;;  %p8140_p3 = por %p8139_p2, %p8138_p1 }
 0x911   :  { %v6225_v40 = vpop.trf.xlu1 }
 0x912   :  { %p8141_p4 = pnand %p8140_p3, %p8134_p0 }
 0x915   :  { %v6226_v44 = vpop.trf.xlu1 }
 0x919   :  { %v6227_v22 = vpop.trf.xlu1 }
 0x91d   :  { %v6228_v28 = vpop.trf.xlu1 }
 0x921   :  { %v6229_v57 = vpop.trf.xlu1 }
 0x925   :  { %v6230_v58 = vpop.trf.xlu1 }
 0x929   :  { %v6231_v52 = vpop.trf.xlu1 }
 0x92d   :  { %v6232_v51 = vpop.trf.xlu1 }
 0x931   :  { %v6233_v41 = vpop.trf.xlu1 }
 0x935   :  { %v6234_v43 = vpop.trf.xlu1 }
 0x939   :  { %v6235_v0 = vpop.trf.xlu1 }
 0x93d   :  { %v6236_v1 = vpop.trf.xlu1 }
 0x9ce   :  { %v6888_v11 = vpop.f32.mrb[24].mxu0 }
 0x9cf   :  { %v6889_v59 = vadd.f32 %v7176_v7, %v6888_v11  ;;  %v7476_v61 = vpop.f32.mrb[25].mxu0 }
 0x9d1   :  { %v6892_v48 = vmax.f32 %v6889_v59, 0.0 }
 0x9d3   :  { %7500 = vmatmul.mubr.msk.f32.vlgmr.msra.gmra.mrb[26].mxu0 %vm6911_vm1, %v6892_v48 }
 0xaa6   :  { %v6985_v5 = vpop.f32.mrb[26].mxu0 }
 0xaa7   :  { %v6986_v9 = vadd.f32 %v7178_v4, %v6985_v5  ;;  %v7501_v45 = vpop.f32.mrb[27].mxu0 }
 0xaa9   :  { %6990 = vst.msk [vmem:[#allocation7] sm:$0x3] %vm6989_vm11, %v6986_v9 }
 0xaaa   :  { %8144 = shalt.err (!%p8141_p4)
}
 0xaab   :  { %s8145_s7 = scalar_lea.hbm %s10599_s11, 32 }
 0xaac   :  { %p8146_p5 = scmp.ne.s32.totalorder %s10599_s11, %s8145_s7  ;;  %p8149_p6 = scmp.lt.u32.totalorder %s8145_s7, %s10599_s11 }
 0xaae   :  { %p8151_p7 = pnand %p8149_p6, %p8146_p5 }
 0xab0   :  { %8154 = shalt.err (!%p8151_p7)
}
 0xab1   :  { %7000 = dma.vmem_to_hbm [thread:$0]  %s6998_s5, 32, %s10599_s11, [#allocation8]  }
 0xab2   :  { %8155 = dma.done.wait [#allocation8], 32  }
 0xab3   :  { %8156 = vsyncadd [#allocation8], 4294967264 }
 0xab4   :  { %7004 = vsyncpa [#allocation8], 1 }

</bundles_post_ra>
